<compile_context>
chip_gen: v7x
topology: tpu7x:2x2x1
jax: 0.10.0
libtpu: 0.0.40
codegen_flags: <defaults>
</compile_context>

<pallas_src>
import functools
import math

import jax
import jax.numpy as jnp
from jax.experimental import pallas as pl
from jax.experimental.pallas import tpu as pltpu

LN_EPS = 1e-5  # torch.nn.LayerNorm default eps


def _layernorm(x, w, b):
    mu = jnp.mean(x, axis=-1, keepdims=True)
    var = jnp.mean((x - mu) ** 2, axis=-1, keepdims=True)
    return (x - mu) * jax.lax.rsqrt(var + LN_EPS) * w + b


def _gelu(x):
    # exact (erf-based) GELU, matching nn.GELU() default approximate='none'
    return 0.5 * x * (1.0 + jax.lax.erf(x * (1.0 / math.sqrt(2.0))))


def _dot(a, b):
    # bf16 (or f32) operands, f32 accumulation on the MXU
    return jnp.dot(a, b, preferred_element_type=jnp.float32)


def block_kernel(
    x_ref,
    n1w_ref, n1b_ref,
    wq_ref, bq_ref, wk_ref, bk_ref, wv_ref, bv_ref,   # q/k/v projections (pre-transposed)
    wo_ref, bo_ref,                                   # attention out_proj (pre-transposed)
    n2w_ref, n2b_ref,
    cw_ref, cb_ref,                                   # depthwise conv taps (3, D) + bias
    tnw_ref, tnb_ref,                                 # TemporalConv LayerNorm
    n3w_ref, n3b_ref,
    w1t_ref, b1_ref,                                  # mlp linear1 (transposed) + bias
    w2t_ref, b2_ref,                                  # mlp linear2 (transposed) + bias
    o_ref,
    attn_scr,                                         # VMEM scratch (S, D) f32
    *, heads, hid_chunk, fast_path):
    x = x_ref[0]                                      # (S, D) f32
    S, D = x.shape
    hd = D // heads
    scale = 1.0 / math.sqrt(hd)
    bf16 = jnp.bfloat16

    # ---- 1) self-attention branch: x1 = x + attn(norm1(x)) ------------------
    n1 = _layernorm(x, n1w_ref[...], n1b_ref[...])
    n1_bf = n1.astype(bf16)
    # separate q/k/v matmuls: no (S, 3D) fused intermediate, bf16 in / f32 out
    q = _dot(n1_bf, wq_ref[...]) + bq_ref[...]
    k = _dot(n1_bf, wk_ref[...]) + bk_ref[...]
    v = _dot(n1_bf, wv_ref[...]) + bv_ref[...]
    qb, kb, vb = q.astype(bf16), k.astype(bf16), v.astype(bf16)

    for h in range(heads):                            # static, heads is small
        sl = slice(h * hd, (h + 1) * hd)
        # scores = q_h @ k_h^T (no materialized transpose), f32 accumulate
        s = jax.lax.dot_general(qb[:, sl], kb[:, sl],
                                (((1,), (1,)), ((), ())),
                                preferred_element_type=jnp.float32) * scale
        m = jnp.max(s, axis=-1, keepdims=True)
        e = jnp.exp(s - m)
        den = jnp.sum(e, axis=-1, keepdims=True)
        if fast_path:
            p = e * pl.reciprocal(den, approx=True)   # EUP slot, effectively free
        else:
            p = e / den
        # each head's output goes straight into the VMEM slab (no concat / live list)
        attn_scr[:, sl] = jnp.dot(p.astype(bf16), vb[:, sl],
                                  preferred_element_type=jnp.float32)

    a = _dot(attn_scr[...].astype(bf16), wo_ref[...]) + bo_ref[...]
    x1 = x + a

    # ---- 2) temporal conv branch: x2 = x1 + tc(norm2(x1)) -------------------
    # TemporalConv(y) = y + gelu(LN(depthwise_conv3(y))), applied to y = norm2(x1)
    n2 = _layernorm(x1, n2w_ref[...], n2b_ref[...])   # (S, D) f32
    if fast_path:
        # depthwise Conv1d over sequence, kernel=3, zero padding=1, via XLU rolls
        prev = pltpu.roll(n2, shift=1, axis=0)        # prev[t] = n2[t-1] (wrapped)
        nxt = pltpu.roll(n2, shift=S - 1, axis=0)     # shift S-1 == -1 (non-negative!)
        row = jax.lax.broadcasted_iota(jnp.int32, (S, D), 0)
        prev = jnp.where(row == 0, 0.0, prev)         # zero-pad left edge
        nxt = jnp.where(row == S - 1, 0.0, nxt)       # zero-pad right edge
    else:
        # portable fallback: row-shift via tiny banded matmuls (zero-padded edges)
        r = jax.lax.broadcasted_iota(jnp.int32, (S, S), 0)
        c = jax.lax.broadcasted_iota(jnp.int32, (S, S), 1)
        prev = _dot((r == c + 1).astype(jnp.float32), n2)   # row t <- n2[t-1]
        nxt = _dot((r + 1 == c).astype(jnp.float32), n2)    # row t <- n2[t+1]
    conv = (prev * cw_ref[0:1, :] + n2 * cw_ref[1:2, :] + nxt * cw_ref[2:3, :]
            + cb_ref[...])
    x2 = x1 + n2 + _gelu(_layernorm(conv, tnw_ref[...], tnb_ref[...]))

    # ---- 3) MLP branch: out = x2 + mlp(norm3(x2)), hidden dim chunked -------
    n3_bf = _layernorm(x2, n3w_ref[...], n3b_ref[...]).astype(bf16)
    hid = w1t_ref.shape[1]
    mlp = jnp.zeros((S, D), jnp.float32)
    for lo in range(0, hid, hid_chunk):               # static chunk loop
        h1 = _gelu(_dot(n3_bf, w1t_ref[:, lo:lo + hid_chunk])
                   + b1_ref[:, lo:lo + hid_chunk])
        mlp = mlp + _dot(h1.astype(bf16), w2t_ref[lo:lo + hid_chunk, :])

    o_ref[0] = x2 + mlp + b2_ref[...]


def enhanced_transformer_block(x, params, heads):
    """x: (B, S, D) float32; params: PyTorch-shaped weights (see __main__)."""
    B, S, D = x.shape
    assert D % heads == 0
    f32, bf16 = jnp.float32, jnp.bfloat16

    def vec(v):  # keep 1-D params 2-D (1, N) for clean VMEM layout
        return jnp.asarray(v, f32).reshape(1, -1)

    inw = jnp.asarray(params["in_proj_w"], f32)       # (3D, D) PyTorch layout
    inb = jnp.asarray(params["in_proj_b"], f32)       # (3D,)
    # PyTorch depthwise Conv1d weight is (D, 1, 3): permute to taps-major (3, D)
    cw = jnp.transpose(jnp.asarray(params["conv_w"], f32)[:, 0, :], (1, 0))

    args = [
        jnp.asarray(x, f32),
        vec(params["norm1_w"]), vec(params["norm1_b"]),
        inw[0:D].T.astype(bf16),          vec(inb[0:D]),
        inw[D:2 * D].T.astype(bf16),      vec(inb[D:2 * D]),
        inw[2 * D:3 * D].T.astype(bf16),  vec(inb[2 * D:3 * D]),
        jnp.asarray(params["out_proj_w"], f32).T.astype(bf16), vec(params["out_proj_b"]),
        vec(params["norm2_w"]), vec(params["norm2_b"]),
        cw, vec(params["conv_b"]),
        vec(params["tc_norm_w"]), vec(params["tc_norm_b"]),
        vec(params["norm3_w"]), vec(params["norm3_b"]),
        jnp.asarray(params["mlp_w1"], f32).T.astype(bf16), vec(params["mlp_b1"]),
        jnp.asarray(params["mlp_w2"], f32).T.astype(bf16), vec(params["mlp_b2"]),
    ]

    hid = 4 * D
    hid_chunk = 512 if (hid > 512 and hid % 512 == 0) else hid

    # VMEM budget derived from actual sizes (weights + activation transients),
    # capped safely below v7x's 64 MiB physical VMEM.
    weight_bytes = sum(int(a.size) * a.dtype.itemsize for a in args[1:])
    act_bytes = S * D * 4
    transient = 12 * act_bytes + 2 * S * hid_chunk * 4 + 2 * S * S * 4
    vmem_limit = int(min(max(2 * weight_bytes + 4 * act_bytes + transient + (8 << 20),
                             32 << 20), 48 << 20))

    flops = B * (24 * S * D * D + 4 * S * S * D)
    transcendentals = B * (heads * S * S + 5 * S * D + 8 * S)
    bytes_accessed = 2 * B * S * D * 4 + weight_bytes
    cost = pl.CostEstimate(flops=flops, transcendentals=transcendentals,
                           bytes_accessed=bytes_accessed)

    def build(fast_path):
        kernel = functools.partial(block_kernel, heads=heads,
                                   hid_chunk=hid_chunk, fast_path=fast_path)

        def wspec(a):
            # Weights/biases have a constant block index across the grid; in the
            # fast path keep a single resident VMEM copy (no pointless double buffer).
            nd = a.ndim
            kw = {"pipeline_mode": pl.Buffered(1)} if fast_path else {}
            return pl.BlockSpec(a.shape, lambda b, _nd=nd: (0,) * _nd, **kw)

        in_specs = [pl.BlockSpec((1, S, D), lambda b: (b, 0, 0))]
        in_specs += [wspec(a) for a in args[1:]]

        return pl.pallas_call(
            kernel,
            out_shape=jax.ShapeDtypeStruct((B, S, D), f32),
            grid=(B,),
            in_specs=in_specs,
            out_specs=pl.BlockSpec((1, S, D), lambda b: (b, 0, 0)),
            scratch_shapes=[pltpu.VMEM((S, D), jnp.float32)],
            compiler_params=pltpu.CompilerParams(
                dimension_semantics=("parallel",),
                vmem_limit_bytes=vmem_limit),
            cost_estimate=cost,
        )

    try:
        out = build(fast_path=True)(*args)
        jax.block_until_ready(out)
        return out
    except Exception:
        # Portable fallback for jax builds / interpret environments that lack
        # pl.Buffered(1), pltpu.roll or pl.reciprocal support: identical math,
        # only vanilla jnp/lax ops and default buffering.
        out = build(fast_path=False)(*args)
        jax.block_until_ready(out)
        return out


if __name__ == "__main__":
    # S multiple of 8, D multiple of 128 -> fully lane-dense loads/stores on TPU.
    B, S, D, H = 2, 16, 128, 4

    key = jax.random.PRNGKey(0)
    ks = jax.random.split(key, 12)

    def rnd(k, shape, scale=0.05):
        return scale * jax.random.normal(k, shape, dtype=jnp.float32)

    params = {
        # LayerNorms: PyTorch init (ones / zeros)
        "norm1_w": jnp.ones((D,), jnp.float32), "norm1_b": jnp.zeros((D,), jnp.float32),
        "norm2_w": jnp.ones((D,), jnp.float32), "norm2_b": jnp.zeros((D,), jnp.float32),
        "norm3_w": jnp.ones((D,), jnp.float32), "norm3_b": jnp.zeros((D,), jnp.float32),
        "tc_norm_w": jnp.ones((D,), jnp.float32), "tc_norm_b": jnp.zeros((D,), jnp.float32),
        # nn.MultiheadAttention: in_proj (3D, D) + (3D,), out_proj (D, D) + (D,)
        "in_proj_w": rnd(ks[0], (3 * D, D)), "in_proj_b": rnd(ks[1], (3 * D,)),
        "out_proj_w": rnd(ks[2], (D, D)), "out_proj_b": rnd(ks[3], (D,)),
        # TemporalConv depthwise Conv1d(D, D, 3, groups=D): PyTorch weight (D, 1, 3)
        "conv_w": rnd(ks[4], (D, 1, 3)), "conv_b": rnd(ks[5], (D,)),
        # MLP: Linear(D, 4D) and Linear(4D, D)
        "mlp_w1": rnd(ks[6], (4 * D, D)), "mlp_b1": rnd(ks[7], (4 * D,)),
        "mlp_w2": rnd(ks[8], (D, 4 * D)), "mlp_b2": rnd(ks[9], (D,)),
    }

    x = jax.random.normal(ks[10], (B, S, D), dtype=jnp.float32)

    out = enhanced_transformer_block(x, params, H)
    jax.block_until_ready(out)
    assert out.shape == (B, S, D) and out.dtype == jnp.float32
    print("KERNEL_OK")
</pallas_src>

<mosaic_0001>
module attributes {stable_mosaic.version = 11 : i64} {
  func.func @block_kernel(%arg0: i32, %arg1: memref<1x16x128xf32, #tpu.memory_space<vmem>>, %arg2: memref<1x128xf32, #tpu.memory_space<vmem>>, %arg3: memref<1x128xf32, #tpu.memory_space<vmem>>, %arg4: memref<128x128xbf16, #tpu.memory_space<vmem>>, %arg5: memref<1x128xf32, #tpu.memory_space<vmem>>, %arg6: memref<128x128xbf16, #tpu.memory_space<vmem>>, %arg7: memref<1x128xf32, #tpu.memory_space<vmem>>, %arg8: memref<128x128xbf16, #tpu.memory_space<vmem>>, %arg9: memref<1x128xf32, #tpu.memory_space<vmem>>, %arg10: memref<128x128xbf16, #tpu.memory_space<vmem>>, %arg11: memref<1x128xf32, #tpu.memory_space<vmem>>, %arg12: memref<1x128xf32, #tpu.memory_space<vmem>>, %arg13: memref<1x128xf32, #tpu.memory_space<vmem>>, %arg14: memref<3x128xf32, #tpu.memory_space<vmem>>, %arg15: memref<1x128xf32, #tpu.memory_space<vmem>>, %arg16: memref<1x128xf32, #tpu.memory_space<vmem>>, %arg17: memref<1x128xf32, #tpu.memory_space<vmem>>, %arg18: memref<1x128xf32, #tpu.memory_space<vmem>>, %arg19: memref<1x128xf32, #tpu.memory_space<vmem>>, %arg20: memref<128x512xbf16, #tpu.memory_space<vmem>>, %arg21: memref<1x512xf32, #tpu.memory_space<vmem>>, %arg22: memref<512x128xbf16, #tpu.memory_space<vmem>>, %arg23: memref<1x128xf32, #tpu.memory_space<vmem>>, %arg24: memref<1x16x128xf32, #tpu.memory_space<vmem>>, %arg25: memref<16x128xf32, #tpu.memory_space<vmem>>) attributes {dimension_semantics = [#tpu.dimension_semantics<parallel>], iteration_bounds = array<i64: 2>, scalar_prefetch = 0 : i64, scratch_operands = 1 : i64, tpu.core_type = #tpu.core_type<tc>, window_params = [{transform_indices = @transform_0, window_bounds = array<i64: 1, 16, 128>}, {pipeline_mode = #tpu.pipeline_mode<synchronous>, transform_indices = @transform_1, window_bounds = array<i64: 1, 128>}, {pipeline_mode = #tpu.pipeline_mode<synchronous>, transform_indices = @transform_2, window_bounds = array<i64: 1, 128>}, {pipeline_mode = #tpu.pipeline_mode<synchronous>, transform_indices = @transform_3, window_bounds = array<i64: 128, 128>}, {pipeline_mode = #tpu.pipeline_mode<synchronous>, transform_indices = @transform_4, window_bounds = array<i64: 1, 128>}, {pipeline_mode = #tpu.pipeline_mode<synchronous>, transform_indices = @transform_5, window_bounds = array<i64: 128, 128>}, {pipeline_mode = #tpu.pipeline_mode<synchronous>, transform_indices = @transform_6, window_bounds = array<i64: 1, 128>}, {pipeline_mode = #tpu.pipeline_mode<synchronous>, transform_indices = @transform_7, window_bounds = array<i64: 128, 128>}, {pipeline_mode = #tpu.pipeline_mode<synchronous>, transform_indices = @transform_8, window_bounds = array<i64: 1, 128>}, {pipeline_mode = #tpu.pipeline_mode<synchronous>, transform_indices = @transform_9, window_bounds = array<i64: 128, 128>}, {pipeline_mode = #tpu.pipeline_mode<synchronous>, transform_indices = @transform_10, window_bounds = array<i64: 1, 128>}, {pipeline_mode = #tpu.pipeline_mode<synchronous>, transform_indices = @transform_11, window_bounds = array<i64: 1, 128>}, {pipeline_mode = #tpu.pipeline_mode<synchronous>, transform_indices = @transform_12, window_bounds = array<i64: 1, 128>}, {pipeline_mode = #tpu.pipeline_mode<synchronous>, transform_indices = @transform_13, window_bounds = array<i64: 3, 128>}, {pipeline_mode = #tpu.pipeline_mode<synchronous>, transform_indices = @transform_14, window_bounds = array<i64: 1, 128>}, {pipeline_mode = #tpu.pipeline_mode<synchronous>, transform_indices = @transform_15, window_bounds = array<i64: 1, 128>}, {pipeline_mode = #tpu.pipeline_mode<synchronous>, transform_indices = @transform_16, window_bounds = array<i64: 1, 128>}, {pipeline_mode = #tpu.pipeline_mode<synchronous>, transform_indices = @transform_17, window_bounds = array<i64: 1, 128>}, {pipeline_mode = #tpu.pipeline_mode<synchronous>, transform_indices = @transform_18, window_bounds = array<i64: 1, 128>}, {pipeline_mode = #tpu.pipeline_mode<synchronous>, transform_indices = @transform_19, window_bounds = array<i64: 128, 512>}, {pipeline_mode = #tpu.pipeline_mode<synchronous>, transform_indices = @transform_20, window_bounds = array<i64: 1, 512>}, {pipeline_mode = #tpu.pipeline_mode<synchronous>, transform_indices = @transform_21, window_bounds = array<i64: 512, 128>}, {pipeline_mode = #tpu.pipeline_mode<synchronous>, transform_indices = @transform_22, window_bounds = array<i64: 1, 128>}, {transform_indices = @transform_23, window_bounds = array<i64: 1, 16, 128>}]} {
    %c0 = arith.constant 0 : index
    %c0_0 = arith.constant 0 : index
    %c0_1 = arith.constant 0 : index
    %0 = vector.load %arg1[%c0, %c0_0, %c0_1] : memref<1x16x128xf32, #tpu.memory_space<vmem>>, vector<1x16x128xf32>
    %1 = vector.shape_cast %0 : vector<1x16x128xf32> to vector<16x128xf32>
    %c0_2 = arith.constant 0 : index
    %c0_3 = arith.constant 0 : index
    %2 = vector.load %arg2[%c0_2, %c0_3] : memref<1x128xf32, #tpu.memory_space<vmem>>, vector<1x128xf32>
    %c0_4 = arith.constant 0 : index
    %c0_5 = arith.constant 0 : index
    %3 = vector.load %arg3[%c0_4, %c0_5] : memref<1x128xf32, #tpu.memory_space<vmem>>, vector<1x128xf32>
    %cst = arith.constant dense<0.000000e+00> : vector<16xf32>
    %4 = vector.multi_reduction <add>, %1, %cst [1] : vector<16x128xf32> to vector<16xf32>
    %5 = vector.shape_cast %4 : vector<16xf32> to vector<16x1xf32>
    %cst_6 = arith.constant 1.280000e+02 : f32
    %6 = vector.broadcast %cst_6 : f32 to vector<16x1xf32>
    %7 = arith.divf %5, %6 : vector<16x1xf32>
    %8 = vector.broadcast %7 : vector<16x1xf32> to vector<16x128xf32>
    %9 = arith.subf %1, %8 : vector<16x128xf32>
    %10 = arith.mulf %9, %9 : vector<16x128xf32>
    %cst_7 = arith.constant dense<0.000000e+00> : vector<16xf32>
    %11 = vector.multi_reduction <add>, %10, %cst_7 [1] : vector<16x128xf32> to vector<16xf32>
    %12 = vector.shape_cast %11 : vector<16xf32> to vector<16x1xf32>
    %cst_8 = arith.constant 1.280000e+02 : f32
    %13 = vector.broadcast %cst_8 : f32 to vector<16x1xf32>
    %14 = arith.divf %12, %13 : vector<16x1xf32>
    %15 = vector.broadcast %7 : vector<16x1xf32> to vector<16x128xf32>
    %16 = arith.subf %1, %15 : vector<16x128xf32>
    %cst_9 = arith.constant 9.99999974E-6 : f32
    %17 = vector.broadcast %cst_9 : f32 to vector<16x1xf32>
    %18 = arith.addf %14, %17 : vector<16x1xf32>
    %19 = math.rsqrt %18 : vector<16x1xf32>
    %20 = vector.broadcast %19 : vector<16x1xf32> to vector<16x128xf32>
    %21 = arith.mulf %16, %20 : vector<16x128xf32>
    %22 = vector.broadcast %2 : vector<1x128xf32> to vector<16x128xf32>
    %23 = arith.mulf %21, %22 : vector<16x128xf32>
    %24 = vector.broadcast %3 : vector<1x128xf32> to vector<16x128xf32>
    %25 = arith.addf %23, %24 : vector<16x128xf32>
    %26 = arith.truncf %25 : vector<16x128xf32> to vector<16x128xbf16>
    %c0_10 = arith.constant 0 : index
    %c0_11 = arith.constant 0 : index
    %27 = vector.load %arg4[%c0_10, %c0_11] : memref<128x128xbf16, #tpu.memory_space<vmem>>, vector<128x128xbf16>
    %cst_12 = arith.constant dense<0.000000e+00> : vector<16x128xf32>
    %28 = tpu.matmul %26, %27, %cst_12 {dimension_numbers = #tpu.dot_dimension_numbers<[1], [0], [0], [1], [0, 0, 1, 1], [], []>} : vector<16x128xbf16>, vector<128x128xbf16>, vector<16x128xf32> -> vector<16x128xf32>
    %c0_13 = arith.constant 0 : index
    %c0_14 = arith.constant 0 : index
    %29 = vector.load %arg5[%c0_13, %c0_14] : memref<1x128xf32, #tpu.memory_space<vmem>>, vector<1x128xf32>
    %30 = vector.broadcast %29 : vector<1x128xf32> to vector<16x128xf32>
    %31 = arith.addf %28, %30 : vector<16x128xf32>
    %c0_15 = arith.constant 0 : index
    %c0_16 = arith.constant 0 : index
    %32 = vector.load %arg6[%c0_15, %c0_16] : memref<128x128xbf16, #tpu.memory_space<vmem>>, vector<128x128xbf16>
    %cst_17 = arith.constant dense<0.000000e+00> : vector<16x128xf32>
    %33 = tpu.matmul %26, %32, %cst_17 {dimension_numbers = #tpu.dot_dimension_numbers<[1], [0], [0], [1], [0, 0, 1, 1], [], []>} : vector<16x128xbf16>, vector<128x128xbf16>, vector<16x128xf32> -> vector<16x128xf32>
    %c0_18 = arith.constant 0 : index
    %c0_19 = arith.constant 0 : index
    %34 = vector.load %arg7[%c0_18, %c0_19] : memref<1x128xf32, #tpu.memory_space<vmem>>, vector<1x128xf32>
    %35 = vector.broadcast %34 : vector<1x128xf32> to vector<16x128xf32>
    %36 = arith.addf %33, %35 : vector<16x128xf32>
    %c0_20 = arith.constant 0 : index
    %c0_21 = arith.constant 0 : index
    %37 = vector.load %arg8[%c0_20, %c0_21] : memref<128x128xbf16, #tpu.memory_space<vmem>>, vector<128x128xbf16>
    %cst_22 = arith.constant dense<0.000000e+00> : vector<16x128xf32>
    %38 = tpu.matmul %26, %37, %cst_22 {dimension_numbers = #tpu.dot_dimension_numbers<[1], [0], [0], [1], [0, 0, 1, 1], [], []>} : vector<16x128xbf16>, vector<128x128xbf16>, vector<16x128xf32> -> vector<16x128xf32>
    %c0_23 = arith.constant 0 : index
    %c0_24 = arith.constant 0 : index
    %39 = vector.load %arg9[%c0_23, %c0_24] : memref<1x128xf32, #tpu.memory_space<vmem>>, vector<1x128xf32>
    %40 = vector.broadcast %39 : vector<1x128xf32> to vector<16x128xf32>
    %41 = arith.addf %38, %40 : vector<16x128xf32>
    %42 = arith.truncf %31 : vector<16x128xf32> to vector<16x128xbf16>
    %43 = arith.truncf %36 : vector<16x128xf32> to vector<16x128xbf16>
    %44 = arith.truncf %41 : vector<16x128xf32> to vector<16x128xbf16>
    %45 = vector.extract_strided_slice %42 {offsets = [0, 0], sizes = [16, 32], strides = [1, 1]} : vector<16x128xbf16> to vector<16x32xbf16>
    %46 = vector.extract_strided_slice %43 {offsets = [0, 0], sizes = [16, 32], strides = [1, 1]} : vector<16x128xbf16> to vector<16x32xbf16>
    %cst_25 = arith.constant dense<0.000000e+00> : vector<16x16xf32>
    %47 = tpu.matmul %45, %46, %cst_25 {dimension_numbers = #tpu.dot_dimension_numbers<[1], [1], [0], [0], [0, 0, 1, 0], [], []>} : vector<16x32xbf16>, vector<16x32xbf16>, vector<16x16xf32> -> vector<16x16xf32>
    %cst_26 = arith.constant 0.176776692 : f32
    %48 = vector.broadcast %cst_26 : f32 to vector<16x16xf32>
    %49 = arith.mulf %47, %48 : vector<16x16xf32>
    %cst_27 = arith.constant dense<0xFF800000> : vector<16xf32>
    %50 = vector.multi_reduction <maximumf>, %49, %cst_27 [1] : vector<16x16xf32> to vector<16xf32>
    %51 = vector.shape_cast %50 : vector<16xf32> to vector<16x1xf32>
    %52 = vector.broadcast %51 : vector<16x1xf32> to vector<16x16xf32>
    %53 = arith.subf %49, %52 : vector<16x16xf32>
    %54 = math.exp %53 : vector<16x16xf32>
    %cst_28 = arith.constant dense<0.000000e+00> : vector<16xf32>
    %55 = vector.multi_reduction <add>, %54, %cst_28 [1] : vector<16x16xf32> to vector<16xf32>
    %56 = vector.shape_cast %55 : vector<16xf32> to vector<16x1xf32>
    %57 = tpu.reciprocal %56 {approx = true} : vector<16x1xf32> -> vector<16x1xf32>
    %58 = vector.broadcast %57 : vector<16x1xf32> to vector<16x16xf32>
    %59 = arith.mulf %54, %58 : vector<16x16xf32>
    %60 = arith.truncf %59 : vector<16x16xf32> to vector<16x16xbf16>
    %61 = vector.extract_strided_slice %44 {offsets = [0, 0], sizes = [16, 32], strides = [1, 1]} : vector<16x128xbf16> to vector<16x32xbf16>
    %cst_29 = arith.constant dense<0.000000e+00> : vector<16x32xf32>
    %62 = tpu.matmul %60, %61, %cst_29 {dimension_numbers = #tpu.dot_dimension_numbers<[1], [0], [0], [1], [0, 0, 1, 1], [], []>} : vector<16x16xbf16>, vector<16x32xbf16>, vector<16x32xf32> -> vector<16x32xf32>
    %c0_30 = arith.constant 0 : index
    %c0_31 = arith.constant 0 : index
    %63 = vector.load %arg25[%c0_30, %c0_31] : memref<16x128xf32, #tpu.memory_space<vmem>>, vector<16x32xf32>
    tpu.vector_store %arg25[%c0_30, %c0_31], %62 {strides = array<i32>} : memref<16x128xf32, #tpu.memory_space<vmem>>, vector<16x32xf32>,
    %64 = vector.extract_strided_slice %42 {offsets = [0, 32], sizes = [16, 32], strides = [1, 1]} : vector<16x128xbf16> to vector<16x32xbf16>
    %65 = vector.extract_strided_slice %43 {offsets = [0, 32], sizes = [16, 32], strides = [1, 1]} : vector<16x128xbf16> to vector<16x32xbf16>
    %cst_32 = arith.constant dense<0.000000e+00> : vector<16x16xf32>
    %66 = tpu.matmul %64, %65, %cst_32 {dimension_numbers = #tpu.dot_dimension_numbers<[1], [1], [0], [0], [0, 0, 1, 0], [], []>} : vector<16x32xbf16>, vector<16x32xbf16>, vector<16x16xf32> -> vector<16x16xf32>
    %cst_33 = arith.constant 0.176776692 : f32
    %67 = vector.broadcast %cst_33 : f32 to vector<16x16xf32>
    %68 = arith.mulf %66, %67 : vector<16x16xf32>
    %cst_34 = arith.constant dense<0xFF800000> : vector<16xf32>
    %69 = vector.multi_reduction <maximumf>, %68, %cst_34 [1] : vector<16x16xf32> to vector<16xf32>
    %70 = vector.shape_cast %69 : vector<16xf32> to vector<16x1xf32>
    %71 = vector.broadcast %70 : vector<16x1xf32> to vector<16x16xf32>
    %72 = arith.subf %68, %71 : vector<16x16xf32>
    %73 = math.exp %72 : vector<16x16xf32>
    %cst_35 = arith.constant dense<0.000000e+00> : vector<16xf32>
    %74 = vector.multi_reduction <add>, %73, %cst_35 [1] : vector<16x16xf32> to vector<16xf32>
    %75 = vector.shape_cast %74 : vector<16xf32> to vector<16x1xf32>
    %76 = tpu.reciprocal %75 {approx = true} : vector<16x1xf32> -> vector<16x1xf32>
    %77 = vector.broadcast %76 : vector<16x1xf32> to vector<16x16xf32>
    %78 = arith.mulf %73, %77 : vector<16x16xf32>
    %79 = arith.truncf %78 : vector<16x16xf32> to vector<16x16xbf16>
    %80 = vector.extract_strided_slice %44 {offsets = [0, 32], sizes = [16, 32], strides = [1, 1]} : vector<16x128xbf16> to vector<16x32xbf16>
    %cst_36 = arith.constant dense<0.000000e+00> : vector<16x32xf32>
    %81 = tpu.matmul %79, %80, %cst_36 {dimension_numbers = #tpu.dot_dimension_numbers<[1], [0], [0], [1], [0, 0, 1, 1], [], []>} : vector<16x16xbf16>, vector<16x32xbf16>, vector<16x32xf32> -> vector<16x32xf32>
    %c0_37 = arith.constant 0 : index
    %c32 = arith.constant 32 : index
    %82 = vector.load %arg25[%c0_37, %c32] : memref<16x128xf32, #tpu.memory_space<vmem>>, vector<16x32xf32>
    tpu.vector_store %arg25[%c0_37, %c32], %81 {strides = array<i32>} : memref<16x128xf32, #tpu.memory_space<vmem>>, vector<16x32xf32>,
    %83 = vector.extract_strided_slice %42 {offsets = [0, 64], sizes = [16, 32], strides = [1, 1]} : vector<16x128xbf16> to vector<16x32xbf16>
    %84 = vector.extract_strided_slice %43 {offsets = [0, 64], sizes = [16, 32], strides = [1, 1]} : vector<16x128xbf16> to vector<16x32xbf16>
    %cst_38 = arith.constant dense<0.000000e+00> : vector<16x16xf32>
    %85 = tpu.matmul %83, %84, %cst_38 {dimension_numbers = #tpu.dot_dimension_numbers<[1], [1], [0], [0], [0, 0, 1, 0], [], []>} : vector<16x32xbf16>, vector<16x32xbf16>, vector<16x16xf32> -> vector<16x16xf32>
    %cst_39 = arith.constant 0.176776692 : f32
    %86 = vector.broadcast %cst_39 : f32 to vector<16x16xf32>
    %87 = arith.mulf %85, %86 : vector<16x16xf32>
    %cst_40 = arith.constant dense<0xFF800000> : vector<16xf32>
    %88 = vector.multi_reduction <maximumf>, %87, %cst_40 [1] : vector<16x16xf32> to vector<16xf32>
    %89 = vector.shape_cast %88 : vector<16xf32> to vector<16x1xf32>
    %90 = vector.broadcast %89 : vector<16x1xf32> to vector<16x16xf32>
    %91 = arith.subf %87, %90 : vector<16x16xf32>
    %92 = math.exp %91 : vector<16x16xf32>
    %cst_41 = arith.constant dense<0.000000e+00> : vector<16xf32>
    %93 = vector.multi_reduction <add>, %92, %cst_41 [1] : vector<16x16xf32> to vector<16xf32>
    %94 = vector.shape_cast %93 : vector<16xf32> to vector<16x1xf32>
    %95 = tpu.reciprocal %94 {approx = true} : vector<16x1xf32> -> vector<16x1xf32>
    %96 = vector.broadcast %95 : vector<16x1xf32> to vector<16x16xf32>
    %97 = arith.mulf %92, %96 : vector<16x16xf32>
    %98 = arith.truncf %97 : vector<16x16xf32> to vector<16x16xbf16>
    %99 = vector.extract_strided_slice %44 {offsets = [0, 64], sizes = [16, 32], strides = [1, 1]} : vector<16x128xbf16> to vector<16x32xbf16>
    %cst_42 = arith.constant dense<0.000000e+00> : vector<16x32xf32>
    %100 = tpu.matmul %98, %99, %cst_42 {dimension_numbers = #tpu.dot_dimension_numbers<[1], [0], [0], [1], [0, 0, 1, 1], [], []>} : vector<16x16xbf16>, vector<16x32xbf16>, vector<16x32xf32> -> vector<16x32xf32>
    %c0_43 = arith.constant 0 : index
    %c64 = arith.constant 64 : index
    %101 = vector.load %arg25[%c0_43, %c64] : memref<16x128xf32, #tpu.memory_space<vmem>>, vector<16x32xf32>
    tpu.vector_store %arg25[%c0_43, %c64], %100 {strides = array<i32>} : memref<16x128xf32, #tpu.memory_space<vmem>>, vector<16x32xf32>,
    %102 = vector.extract_strided_slice %42 {offsets = [0, 96], sizes = [16, 32], strides = [1, 1]} : vector<16x128xbf16> to vector<16x32xbf16>
    %103 = vector.extract_strided_slice %43 {offsets = [0, 96], sizes = [16, 32], strides = [1, 1]} : vector<16x128xbf16> to vector<16x32xbf16>
    %cst_44 = arith.constant dense<0.000000e+00> : vector<16x16xf32>
    %104 = tpu.matmul %102, %103, %cst_44 {dimension_numbers = #tpu.dot_dimension_numbers<[1], [1], [0], [0], [0, 0, 1, 0], [], []>} : vector<16x32xbf16>, vector<16x32xbf16>, vector<16x16xf32> -> vector<16x16xf32>
    %cst_45 = arith.constant 0.176776692 : f32
    %105 = vector.broadcast %cst_45 : f32 to vector<16x16xf32>
    %106 = arith.mulf %104, %105 : vector<16x16xf32>
    %cst_46 = arith.constant dense<0xFF800000> : vector<16xf32>
    %107 = vector.multi_reduction <maximumf>, %106, %cst_46 [1] : vector<16x16xf32> to vector<16xf32>
    %108 = vector.shape_cast %107 : vector<16xf32> to vector<16x1xf32>
    %109 = vector.broadcast %108 : vector<16x1xf32> to vector<16x16xf32>
    %110 = arith.subf %106, %109 : vector<16x16xf32>
    %111 = math.exp %110 : vector<16x16xf32>
    %cst_47 = arith.constant dense<0.000000e+00> : vector<16xf32>
    %112 = vector.multi_reduction <add>, %111, %cst_47 [1] : vector<16x16xf32> to vector<16xf32>
    %113 = vector.shape_cast %112 : vector<16xf32> to vector<16x1xf32>
    %114 = tpu.reciprocal %113 {approx = true} : vector<16x1xf32> -> vector<16x1xf32>
    %115 = vector.broadcast %114 : vector<16x1xf32> to vector<16x16xf32>
    %116 = arith.mulf %111, %115 : vector<16x16xf32>
    %117 = arith.truncf %116 : vector<16x16xf32> to vector<16x16xbf16>
    %118 = vector.extract_strided_slice %44 {offsets = [0, 96], sizes = [16, 32], strides = [1, 1]} : vector<16x128xbf16> to vector<16x32xbf16>
    %cst_48 = arith.constant dense<0.000000e+00> : vector<16x32xf32>
    %119 = tpu.matmul %117, %118, %cst_48 {dimension_numbers = #tpu.dot_dimension_numbers<[1], [0], [0], [1], [0, 0, 1, 1], [], []>} : vector<16x16xbf16>, vector<16x32xbf16>, vector<16x32xf32> -> vector<16x32xf32>
    %c0_49 = arith.constant 0 : index
    %c96 = arith.constant 96 : index
    %120 = vector.load %arg25[%c0_49, %c96] : memref<16x128xf32, #tpu.memory_space<vmem>>, vector<16x32xf32>
    tpu.vector_store %arg25[%c0_49, %c96], %119 {strides = array<i32>} : memref<16x128xf32, #tpu.memory_space<vmem>>, vector<16x32xf32>,
    %c0_50 = arith.constant 0 : index
    %c0_51 = arith.constant 0 : index
    %121 = vector.load %arg25[%c0_50, %c0_51] : memref<16x128xf32, #tpu.memory_space<vmem>>, vector<16x128xf32>
    %122 = arith.truncf %121 : vector<16x128xf32> to vector<16x128xbf16>
    %c0_52 = arith.constant 0 : index
    %c0_53 = arith.constant 0 : index
    %123 = vector.load %arg10[%c0_52, %c0_53] : memref<128x128xbf16, #tpu.memory_space<vmem>>, vector<128x128xbf16>
    %cst_54 = arith.constant dense<0.000000e+00> : vector<16x128xf32>
    %124 = tpu.matmul %122, %123, %cst_54 {dimension_numbers = #tpu.dot_dimension_numbers<[1], [0], [0], [1], [0, 0, 1, 1], [], []>} : vector<16x128xbf16>, vector<128x128xbf16>, vector<16x128xf32> -> vector<16x128xf32>
    %c0_55 = arith.constant 0 : index
    %c0_56 = arith.constant 0 : index
    %125 = vector.load %arg11[%c0_55, %c0_56] : memref<1x128xf32, #tpu.memory_space<vmem>>, vector<1x128xf32>
    %126 = vector.broadcast %125 : vector<1x128xf32> to vector<16x128xf32>
    %127 = arith.addf %124, %126 : vector<16x128xf32>
    %128 = arith.addf %1, %127 : vector<16x128xf32>
    %c0_57 = arith.constant 0 : index
    %c0_58 = arith.constant 0 : index
    %129 = vector.load %arg12[%c0_57, %c0_58] : memref<1x128xf32, #tpu.memory_space<vmem>>, vector<1x128xf32>
    %c0_59 = arith.constant 0 : index
    %c0_60 = arith.constant 0 : index
    %130 = vector.load %arg13[%c0_59, %c0_60] : memref<1x128xf32, #tpu.memory_space<vmem>>, vector<1x128xf32>
    %cst_61 = arith.constant dense<0.000000e+00> : vector<16xf32>
    %131 = vector.multi_reduction <add>, %128, %cst_61 [1] : vector<16x128xf32> to vector<16xf32>
    %132 = vector.shape_cast %131 : vector<16xf32> to vector<16x1xf32>
    %cst_62 = arith.constant 1.280000e+02 : f32
    %133 = vector.broadcast %cst_62 : f32 to vector<16x1xf32>
    %134 = arith.divf %132, %133 : vector<16x1xf32>
    %135 = vector.broadcast %134 : vector<16x1xf32> to vector<16x128xf32>
    %136 = arith.subf %128, %135 : vector<16x128xf32>
    %137 = arith.mulf %136, %136 : vector<16x128xf32>
    %cst_63 = arith.constant dense<0.000000e+00> : vector<16xf32>
    %138 = vector.multi_reduction <add>, %137, %cst_63 [1] : vector<16x128xf32> to vector<16xf32>
    %139 = vector.shape_cast %138 : vector<16xf32> to vector<16x1xf32>
    %cst_64 = arith.constant 1.280000e+02 : f32
    %140 = vector.broadcast %cst_64 : f32 to vector<16x1xf32>
    %141 = arith.divf %139, %140 : vector<16x1xf32>
    %142 = vector.broadcast %134 : vector<16x1xf32> to vector<16x128xf32>
    %143 = arith.subf %128, %142 : vector<16x128xf32>
    %cst_65 = arith.constant 9.99999974E-6 : f32
    %144 = vector.broadcast %cst_65 : f32 to vector<16x1xf32>
    %145 = arith.addf %141, %144 : vector<16x1xf32>
    %146 = math.rsqrt %145 : vector<16x1xf32>
    %147 = vector.broadcast %146 : vector<16x1xf32> to vector<16x128xf32>
    %148 = arith.mulf %143, %147 : vector<16x128xf32>
    %149 = vector.broadcast %129 : vector<1x128xf32> to vector<16x128xf32>
    %150 = arith.mulf %148, %149 : vector<16x128xf32>
    %151 = vector.broadcast %130 : vector<1x128xf32> to vector<16x128xf32>
    %152 = arith.addf %150, %151 : vector<16x128xf32>
    %c1_i32 = arith.constant 1 : i32
    %153 = tpu.dynamic_rotate %152 by %c1_i32 dim 0 : vector<16x128xf32>, i32 -> vector<16x128xf32>
    %c15_i32 = arith.constant 15 : i32
    %154 = tpu.dynamic_rotate %152 by %c15_i32 dim 0 : vector<16x128xf32>, i32 -> vector<16x128xf32>
    %155 = tpu.iota {dimensions = array<i32: 0>} : vector<16x128xi32>
    %c0_i32 = arith.constant 0 : i32
    %156 = vector.broadcast %c0_i32 : i32 to vector<16x128xi32>
    %157 = arith.cmpi eq, %155, %156 : vector<16x128xi32>
    %cst_66 = arith.constant 0.000000e+00 : f32
    %158 = vector.broadcast %cst_66 : f32 to vector<16x128xf32>
    %159 = arith.select %157, %158, %153 : vector<16x128xi1>, vector<16x128xf32>
    %c15_i32_67 = arith.constant 15 : i32
    %160 = vector.broadcast %c15_i32_67 : i32 to vector<16x128xi32>
    %161 = arith.cmpi eq, %155, %160 : vector<16x128xi32>
    %cst_68 = arith.constant 0.000000e+00 : f32
    %162 = vector.broadcast %cst_68 : f32 to vector<16x128xf32>
    %163 = arith.select %161, %162, %154 : vector<16x128xi1>, vector<16x128xf32>
    %c0_69 = arith.constant 0 : index
    %c0_70 = arith.constant 0 : index
    %164 = vector.load %arg14[%c0_69, %c0_70] : memref<3x128xf32, #tpu.memory_space<vmem>>, vector<1x128xf32>
    %165 = vector.broadcast %164 : vector<1x128xf32> to vector<16x128xf32>
    %166 = arith.mulf %159, %165 : vector<16x128xf32>
    %c1 = arith.constant 1 : index
    %c0_71 = arith.constant 0 : index
    %167 = vector.load %arg14[%c1, %c0_71] : memref<3x128xf32, #tpu.memory_space<vmem>>, vector<1x128xf32>
    %168 = vector.broadcast %167 : vector<1x128xf32> to vector<16x128xf32>
    %169 = arith.mulf %152, %168 : vector<16x128xf32>
    %170 = arith.addf %166, %169 : vector<16x128xf32>
    %c2 = arith.constant 2 : index
    %c0_72 = arith.constant 0 : index
    %171 = vector.load %arg14[%c2, %c0_72] : memref<3x128xf32, #tpu.memory_space<vmem>>, vector<1x128xf32>
    %172 = vector.broadcast %171 : vector<1x128xf32> to vector<16x128xf32>
    %173 = arith.mulf %163, %172 : vector<16x128xf32>
    %174 = arith.addf %170, %173 : vector<16x128xf32>
    %c0_73 = arith.constant 0 : index
    %c0_74 = arith.constant 0 : index
    %175 = vector.load %arg15[%c0_73, %c0_74] : memref<1x128xf32, #tpu.memory_space<vmem>>, vector<1x128xf32>
    %176 = vector.broadcast %175 : vector<1x128xf32> to vector<16x128xf32>
    %177 = arith.addf %174, %176 : vector<16x128xf32>
    %178 = arith.addf %128, %152 : vector<16x128xf32>
    %c0_75 = arith.constant 0 : index
    %c0_76 = arith.constant 0 : index
    %179 = vector.load %arg16[%c0_75, %c0_76] : memref<1x128xf32, #tpu.memory_space<vmem>>, vector<1x128xf32>
    %c0_77 = arith.constant 0 : index
    %c0_78 = arith.constant 0 : index
    %180 = vector.load %arg17[%c0_77, %c0_78] : memref<1x128xf32, #tpu.memory_space<vmem>>, vector<1x128xf32>
    %cst_79 = arith.constant dense<0.000000e+00> : vector<16xf32>
    %181 = vector.multi_reduction <add>, %177, %cst_79 [1] : vector<16x128xf32> to vector<16xf32>
    %182 = vector.shape_cast %181 : vector<16xf32> to vector<16x1xf32>
    %cst_80 = arith.constant 1.280000e+02 : f32
    %183 = vector.broadcast %cst_80 : f32 to vector<16x1xf32>
    %184 = arith.divf %182, %183 : vector<16x1xf32>
    %185 = vector.broadcast %184 : vector<16x1xf32> to vector<16x128xf32>
    %186 = arith.subf %177, %185 : vector<16x128xf32>
    %187 = arith.mulf %186, %186 : vector<16x128xf32>
    %cst_81 = arith.constant dense<0.000000e+00> : vector<16xf32>
    %188 = vector.multi_reduction <add>, %187, %cst_81 [1] : vector<16x128xf32> to vector<16xf32>
    %189 = vector.shape_cast %188 : vector<16xf32> to vector<16x1xf32>
    %cst_82 = arith.constant 1.280000e+02 : f32
    %190 = vector.broadcast %cst_82 : f32 to vector<16x1xf32>
    %191 = arith.divf %189, %190 : vector<16x1xf32>
    %192 = vector.broadcast %184 : vector<16x1xf32> to vector<16x128xf32>
    %193 = arith.subf %177, %192 : vector<16x128xf32>
    %cst_83 = arith.constant 9.99999974E-6 : f32
    %194 = vector.broadcast %cst_83 : f32 to vector<16x1xf32>
    %195 = arith.addf %191, %194 : vector<16x1xf32>
    %196 = math.rsqrt %195 : vector<16x1xf32>
    %197 = vector.broadcast %196 : vector<16x1xf32> to vector<16x128xf32>
    %198 = arith.mulf %193, %197 : vector<16x128xf32>
    %199 = vector.broadcast %179 : vector<1x128xf32> to vector<16x128xf32>
    %200 = arith.mulf %198, %199 : vector<16x128xf32>
    %201 = vector.broadcast %180 : vector<1x128xf32> to vector<16x128xf32>
    %202 = arith.addf %200, %201 : vector<16x128xf32>
    %cst_84 = arith.constant 5.000000e-01 : f32
    %203 = vector.broadcast %cst_84 : f32 to vector<16x128xf32>
    %204 = arith.mulf %203, %202 : vector<16x128xf32>
    %cst_85 = arith.constant 0.707106769 : f32
    %205 = vector.broadcast %cst_85 : f32 to vector<16x128xf32>
    %206 = arith.mulf %202, %205 : vector<16x128xf32>
    %207 = math.erf %206 : vector<16x128xf32>
    %cst_86 = arith.constant 1.000000e+00 : f32
    %208 = vector.broadcast %cst_86 : f32 to vector<16x128xf32>
    %209 = arith.addf %208, %207 : vector<16x128xf32>
    %210 = arith.mulf %204, %209 : vector<16x128xf32>
    %211 = arith.addf %178, %210 : vector<16x128xf32>
    %c0_87 = arith.constant 0 : index
    %c0_88 = arith.constant 0 : index
    %212 = vector.load %arg18[%c0_87, %c0_88] : memref<1x128xf32, #tpu.memory_space<vmem>>, vector<1x128xf32>
    %c0_89 = arith.constant 0 : index
    %c0_90 = arith.constant 0 : index
    %213 = vector.load %arg19[%c0_89, %c0_90] : memref<1x128xf32, #tpu.memory_space<vmem>>, vector<1x128xf32>
    %cst_91 = arith.constant dense<0.000000e+00> : vector<16xf32>
    %214 = vector.multi_reduction <add>, %211, %cst_91 [1] : vector<16x128xf32> to vector<16xf32>
    %215 = vector.shape_cast %214 : vector<16xf32> to vector<16x1xf32>
    %cst_92 = arith.constant 1.280000e+02 : f32
    %216 = vector.broadcast %cst_92 : f32 to vector<16x1xf32>
    %217 = arith.divf %215, %216 : vector<16x1xf32>
    %218 = vector.broadcast %217 : vector<16x1xf32> to vector<16x128xf32>
    %219 = arith.subf %211, %218 : vector<16x128xf32>
    %220 = arith.mulf %219, %219 : vector<16x128xf32>
    %cst_93 = arith.constant dense<0.000000e+00> : vector<16xf32>
    %221 = vector.multi_reduction <add>, %220, %cst_93 [1] : vector<16x128xf32> to vector<16xf32>
    %222 = vector.shape_cast %221 : vector<16xf32> to vector<16x1xf32>
    %cst_94 = arith.constant 1.280000e+02 : f32
    %223 = vector.broadcast %cst_94 : f32 to vector<16x1xf32>
    %224 = arith.divf %222, %223 : vector<16x1xf32>
    %225 = vector.broadcast %217 : vector<16x1xf32> to vector<16x128xf32>
    %226 = arith.subf %211, %225 : vector<16x128xf32>
    %cst_95 = arith.constant 9.99999974E-6 : f32
    %227 = vector.broadcast %cst_95 : f32 to vector<16x1xf32>
    %228 = arith.addf %224, %227 : vector<16x1xf32>
    %229 = math.rsqrt %228 : vector<16x1xf32>
    %230 = vector.broadcast %229 : vector<16x1xf32> to vector<16x128xf32>
    %231 = arith.mulf %226, %230 : vector<16x128xf32>
    %232 = vector.broadcast %212 : vector<1x128xf32> to vector<16x128xf32>
    %233 = arith.mulf %231, %232 : vector<16x128xf32>
    %234 = vector.broadcast %213 : vector<1x128xf32> to vector<16x128xf32>
    %235 = arith.addf %233, %234 : vector<16x128xf32>
    %236 = arith.truncf %235 : vector<16x128xf32> to vector<16x128xbf16>
    %cst_96 = arith.constant 0.000000e+00 : f32
    %237 = vector.broadcast %cst_96 : f32 to vector<16x128xf32>
    %c0_97 = arith.constant 0 : index
    %c0_98 = arith.constant 0 : index
    %238 = vector.load %arg20[%c0_97, %c0_98] : memref<128x512xbf16, #tpu.memory_space<vmem>>, vector<128x512xbf16>
    %cst_99 = arith.constant dense<0.000000e+00> : vector<16x512xf32>
    %239 = tpu.matmul %236, %238, %cst_99 {dimension_numbers = #tpu.dot_dimension_numbers<[1], [0], [0], [1], [0, 0, 1, 1], [], []>} : vector<16x128xbf16>, vector<128x512xbf16>, vector<16x512xf32> -> vector<16x512xf32>
    %c0_100 = arith.constant 0 : index
    %c0_101 = arith.constant 0 : index
    %240 = vector.load %arg21[%c0_100, %c0_101] : memref<1x512xf32, #tpu.memory_space<vmem>>, vector<1x512xf32>
    %241 = vector.broadcast %240 : vector<1x512xf32> to vector<16x512xf32>
    %242 = arith.addf %239, %241 : vector<16x512xf32>
    %cst_102 = arith.constant 5.000000e-01 : f32
    %243 = vector.broadcast %cst_102 : f32 to vector<16x512xf32>
    %244 = arith.mulf %243, %242 : vector<16x512xf32>
    %cst_103 = arith.constant 0.707106769 : f32
    %245 = vector.broadcast %cst_103 : f32 to vector<16x512xf32>
    %246 = arith.mulf %242, %245 : vector<16x512xf32>
    %247 = math.erf %246 : vector<16x512xf32>
    %cst_104 = arith.constant 1.000000e+00 : f32
    %248 = vector.broadcast %cst_104 : f32 to vector<16x512xf32>
    %249 = arith.addf %248, %247 : vector<16x512xf32>
    %250 = arith.mulf %244, %249 : vector<16x512xf32>
    %251 = arith.truncf %250 : vector<16x512xf32> to vector<16x512xbf16>
    %c0_105 = arith.constant 0 : index
    %c0_106 = arith.constant 0 : index
    %252 = vector.load %arg22[%c0_105, %c0_106] : memref<512x128xbf16, #tpu.memory_space<vmem>>, vector<512x128xbf16>
    %cst_107 = arith.constant dense<0.000000e+00> : vector<16x128xf32>
    %253 = tpu.matmul %251, %252, %cst_107 {dimension_numbers = #tpu.dot_dimension_numbers<[1], [0], [0], [1], [0, 0, 1, 1], [], []>} : vector<16x512xbf16>, vector<512x128xbf16>, vector<16x128xf32> -> vector<16x128xf32>
    %254 = arith.addf %237, %253 : vector<16x128xf32>
    %255 = arith.addf %211, %254 : vector<16x128xf32>
    %c0_108 = arith.constant 0 : index
    %c0_109 = arith.constant 0 : index
    %256 = vector.load %arg23[%c0_108, %c0_109] : memref<1x128xf32, #tpu.memory_space<vmem>>, vector<1x128xf32>
    %257 = vector.broadcast %256 : vector<1x128xf32> to vector<16x128xf32>
    %258 = arith.addf %255, %257 : vector<16x128xf32>
    %c0_110 = arith.constant 0 : index
    %c0_111 = arith.constant 0 : index
    %c0_112 = arith.constant 0 : index
    %259 = vector.load %arg24[%c0_110, %c0_111, %c0_112] : memref<1x16x128xf32, #tpu.memory_space<vmem>>, vector<1x16x128xf32>
    %260 = vector.shape_cast %259 : vector<1x16x128xf32> to vector<16x128xf32>
    %261 = vector.shape_cast %258 : vector<16x128xf32> to vector<1x16x128xf32>
    tpu.vector_store %arg24[%c0_110, %c0_111, %c0_112], %261 {strides = array<i32>} : memref<1x16x128xf32, #tpu.memory_space<vmem>>, vector<1x16x128xf32>,
    return
  }
  func.func @transform_0(%arg0: i32) -> (i32, i32, i32) {
    %c0_i32 = arith.constant 0 : i32
    %c0_i32_0 = arith.constant 0 : i32
    %c0_i32_1 = arith.constant 0 : i32
    return %arg0, %c0_i32, %c0_i32_0 : i32, i32, i32
  }
  func.func @transform_1(%arg0: i32) -> (i32, i32) {
    %c0_i32 = arith.constant 0 : i32
    %c0_i32_0 = arith.constant 0 : i32
    %c0_i32_1 = arith.constant 0 : i32
    return %c0_i32, %c0_i32_0 : i32, i32
  }
  func.func @transform_2(%arg0: i32) -> (i32, i32) {
    %c0_i32 = arith.constant 0 : i32
    %c0_i32_0 = arith.constant 0 : i32
    %c0_i32_1 = arith.constant 0 : i32
    return %c0_i32, %c0_i32_0 : i32, i32
  }
  func.func @transform_3(%arg0: i32) -> (i32, i32) {
    %c0_i32 = arith.constant 0 : i32
    %c0_i32_0 = arith.constant 0 : i32
    %c0_i32_1 = arith.constant 0 : i32
    return %c0_i32, %c0_i32_0 : i32, i32
  }
  func.func @transform_4(%arg0: i32) -> (i32, i32) {
    %c0_i32 = arith.constant 0 : i32
    %c0_i32_0 = arith.constant 0 : i32
    %c0_i32_1 = arith.constant 0 : i32
    return %c0_i32, %c0_i32_0 : i32, i32
  }
  func.func @transform_5(%arg0: i32) -> (i32, i32) {
    %c0_i32 = arith.constant 0 : i32
    %c0_i32_0 = arith.constant 0 : i32
    %c0_i32_1 = arith.constant 0 : i32
    return %c0_i32, %c0_i32_0 : i32, i32
  }
  func.func @transform_6(%arg0: i32) -> (i32, i32) {
    %c0_i32 = arith.constant 0 : i32
    %c0_i32_0 = arith.constant 0 : i32
    %c0_i32_1 = arith.constant 0 : i32
    return %c0_i32, %c0_i32_0 : i32, i32
  }
  func.func @transform_7(%arg0: i32) -> (i32, i32) {
    %c0_i32 = arith.constant 0 : i32
    %c0_i32_0 = arith.constant 0 : i32
    %c0_i32_1 = arith.constant 0 : i32
    return %c0_i32, %c0_i32_0 : i32, i32
  }
  func.func @transform_8(%arg0: i32) -> (i32, i32) {
    %c0_i32 = arith.constant 0 : i32
    %c0_i32_0 = arith.constant 0 : i32
    %c0_i32_1 = arith.constant 0 : i32
    return %c0_i32, %c0_i32_0 : i32, i32
  }
  func.func @transform_9(%arg0: i32) -> (i32, i32) {
    %c0_i32 = arith.constant 0 : i32
    %c0_i32_0 = arith.constant 0 : i32
    %c0_i32_1 = arith.constant 0 : i32
    return %c0_i32, %c0_i32_0 : i32, i32
  }
  func.func @transform_10(%arg0: i32) -> (i32, i32) {
    %c0_i32 = arith.constant 0 : i32
    %c0_i32_0 = arith.constant 0 : i32
    %c0_i32_1 = arith.constant 0 : i32
    return %c0_i32, %c0_i32_0 : i32, i32
  }
  func.func @transform_11(%arg0: i32) -> (i32, i32) {
    %c0_i32 = arith.constant 0 : i32
    %c0_i32_0 = arith.constant 0 : i32
    %c0_i32_1 = arith.constant 0 : i32
    return %c0_i32, %c0_i32_0 : i32, i32
  }
  func.func @transform_12(%arg0: i32) -> (i32, i32) {
    %c0_i32 = arith.constant 0 : i32
    %c0_i32_0 = arith.constant 0 : i32
    %c0_i32_1 = arith.constant 0 : i32
    return %c0_i32, %c0_i32_0 : i32, i32
  }
  func.func @transform_13(%arg0: i32) -> (i32, i32) {
    %c0_i32 = arith.constant 0 : i32
    %c0_i32_0 = arith.constant 0 : i32
    %c0_i32_1 = arith.constant 0 : i32
    return %c0_i32, %c0_i32_0 : i32, i32
  }
  func.func @transform_14(%arg0: i32) -> (i32, i32) {
    %c0_i32 = arith.constant 0 : i32
    %c0_i32_0 = arith.constant 0 : i32
    %c0_i32_1 = arith.constant 0 : i32
    return %c0_i32, %c0_i32_0 : i32, i32
  }
  func.func @transform_15(%arg0: i32) -> (i32, i32) {
    %c0_i32 = arith.constant 0 : i32
    %c0_i32_0 = arith.constant 0 : i32
    %c0_i32_1 = arith.constant 0 : i32
    return %c0_i32, %c0_i32_0 : i32, i32
  }
  func.func @transform_16(%arg0: i32) -> (i32, i32) {
    %c0_i32 = arith.constant 0 : i32
    %c0_i32_0 = arith.constant 0 : i32
    %c0_i32_1 = arith.constant 0 : i32
    return %c0_i32, %c0_i32_0 : i32, i32
  }
  func.func @transform_17(%arg0: i32) -> (i32, i32) {
    %c0_i32 = arith.constant 0 : i32
    %c0_i32_0 = arith.constant 0 : i32
    %c0_i32_1 = arith.constant 0 : i32
    return %c0_i32, %c0_i32_0 : i32, i32
  }
  func.func @transform_18(%arg0: i32) -> (i32, i32) {
    %c0_i32 = arith.constant 0 : i32
    %c0_i32_0 = arith.constant 0 : i32
    %c0_i32_1 = arith.constant 0 : i32
    return %c0_i32, %c0_i32_0 : i32, i32
  }
  func.func @transform_19(%arg0: i32) -> (i32, i32) {
    %c0_i32 = arith.constant 0 : i32
    %c0_i32_0 = arith.constant 0 : i32
    %c0_i32_1 = arith.constant 0 : i32
    return %c0_i32, %c0_i32_0 : i32, i32
  }
  func.func @transform_20(%arg0: i32) -> (i32, i32) {
    %c0_i32 = arith.constant 0 : i32
    %c0_i32_0 = arith.constant 0 : i32
    %c0_i32_1 = arith.constant 0 : i32
    return %c0_i32, %c0_i32_0 : i32, i32
  }
  func.func @transform_21(%arg0: i32) -> (i32, i32) {
    %c0_i32 = arith.constant 0 : i32
    %c0_i32_0 = arith.constant 0 : i32
    %c0_i32_1 = arith.constant 0 : i32
    return %c0_i32, %c0_i32_0 : i32, i32
  }
  func.func @transform_22(%arg0: i32) -> (i32, i32) {
    %c0_i32 = arith.constant 0 : i32
    %c0_i32_0 = arith.constant 0 : i32
    %c0_i32_1 = arith.constant 0 : i32
    return %c0_i32, %c0_i32_0 : i32, i32
  }
  func.func @transform_23(%arg0: i32) -> (i32, i32, i32) {
    %c0_i32 = arith.constant 0 : i32
    %c0_i32_0 = arith.constant 0 : i32
    %c0_i32_1 = arith.constant 0 : i32
    return %arg0, %c0_i32, %c0_i32_0 : i32, i32, i32
  }
}

module attributes {stable_mosaic.version = 11 : i64} {
  func.func @block_kernel(%arg0: i32, %arg1: memref<1x16x128xf32, #tpu.memory_space<vmem>>, %arg2: memref<1x128xf32, #tpu.memory_space<vmem>>, %arg3: memref<1x128xf32, #tpu.memory_space<vmem>>, %arg4: memref<128x128xbf16, #tpu.memory_space<vmem>>, %arg5: memref<1x128xf32, #tpu.memory_space<vmem>>, %arg6: memref<128x128xbf16, #tpu.memory_space<vmem>>, %arg7: memref<1x128xf32, #tpu.memory_space<vmem>>, %arg8: memref<128x128xbf16, #tpu.memory_space<vmem>>, %arg9: memref<1x128xf32, #tpu.memory_space<vmem>>, %arg10: memref<128x128xbf16, #tpu.memory_space<vmem>>, %arg11: memref<1x128xf32, #tpu.memory_space<vmem>>, %arg12: memref<1x128xf32, #tpu.memory_space<vmem>>, %arg13: memref<1x128xf32, #tpu.memory_space<vmem>>, %arg14: memref<3x128xf32, #tpu.memory_space<vmem>>, %arg15: memref<1x128xf32, #tpu.memory_space<vmem>>, %arg16: memref<1x128xf32, #tpu.memory_space<vmem>>, %arg17: memref<1x128xf32, #tpu.memory_space<vmem>>, %arg18: memref<1x128xf32, #tpu.memory_space<vmem>>, %arg19: memref<1x128xf32, #tpu.memory_space<vmem>>, %arg20: memref<128x512xbf16, #tpu.memory_space<vmem>>, %arg21: memref<1x512xf32, #tpu.memory_space<vmem>>, %arg22: memref<512x128xbf16, #tpu.memory_space<vmem>>, %arg23: memref<1x128xf32, #tpu.memory_space<vmem>>, %arg24: memref<1x16x128xf32, #tpu.memory_space<vmem>>, %arg25: memref<16x128xf32, #tpu.memory_space<vmem>>) attributes {dimension_semantics = [#tpu.dimension_semantics<parallel>], iteration_bounds = array<i64: 2>, scalar_prefetch = 0 : i64, scratch_operands = 1 : i64, tpu.core_type = #tpu.core_type<tc>, window_params = [{transform_indices = @transform_0, window_bounds = array<i64: 1, 16, 128>}, {pipeline_mode = #tpu.pipeline_mode<synchronous>, transform_indices = @transform_1, window_bounds = array<i64: 1, 128>}, {pipeline_mode = #tpu.pipeline_mode<synchronous>, transform_indices = @transform_2, window_bounds = array<i64: 1, 128>}, {pipeline_mode = #tpu.pipeline_mode<synchronous>, transform_indices = @transform_3, window_bounds = array<i64: 128, 128>}, {pipeline_mode = #tpu.pipeline_mode<synchronous>, transform_indices = @transform_4, window_bounds = array<i64: 1, 128>}, {pipeline_mode = #tpu.pipeline_mode<synchronous>, transform_indices = @transform_5, window_bounds = array<i64: 128, 128>}, {pipeline_mode = #tpu.pipeline_mode<synchronous>, transform_indices = @transform_6, window_bounds = array<i64: 1, 128>}, {pipeline_mode = #tpu.pipeline_mode<synchronous>, transform_indices = @transform_7, window_bounds = array<i64: 128, 128>}, {pipeline_mode = #tpu.pipeline_mode<synchronous>, transform_indices = @transform_8, window_bounds = array<i64: 1, 128>}, {pipeline_mode = #tpu.pipeline_mode<synchronous>, transform_indices = @transform_9, window_bounds = array<i64: 128, 128>}, {pipeline_mode = #tpu.pipeline_mode<synchronous>, transform_indices = @transform_10, window_bounds = array<i64: 1, 128>}, {pipeline_mode = #tpu.pipeline_mode<synchronous>, transform_indices = @transform_11, window_bounds = array<i64: 1, 128>}, {pipeline_mode = #tpu.pipeline_mode<synchronous>, transform_indices = @transform_12, window_bounds = array<i64: 1, 128>}, {pipeline_mode = #tpu.pipeline_mode<synchronous>, transform_indices = @transform_13, window_bounds = array<i64: 3, 128>}, {pipeline_mode = #tpu.pipeline_mode<synchronous>, transform_indices = @transform_14, window_bounds = array<i64: 1, 128>}, {pipeline_mode = #tpu.pipeline_mode<synchronous>, transform_indices = @transform_15, window_bounds = array<i64: 1, 128>}, {pipeline_mode = #tpu.pipeline_mode<synchronous>, transform_indices = @transform_16, window_bounds = array<i64: 1, 128>}, {pipeline_mode = #tpu.pipeline_mode<synchronous>, transform_indices = @transform_17, window_bounds = array<i64: 1, 128>}, {pipeline_mode = #tpu.pipeline_mode<synchronous>, transform_indices = @transform_18, window_bounds = array<i64: 1, 128>}, {pipeline_mode = #tpu.pipeline_mode<synchronous>, transform_indices = @transform_19, window_bounds = array<i64: 128, 512>}, {pipeline_mode = #tpu.pipeline_mode<synchronous>, transform_indices = @transform_20, window_bounds = array<i64: 1, 512>}, {pipeline_mode = #tpu.pipeline_mode<synchronous>, transform_indices = @transform_21, window_bounds = array<i64: 512, 128>}, {pipeline_mode = #tpu.pipeline_mode<synchronous>, transform_indices = @transform_22, window_bounds = array<i64: 1, 128>}, {transform_indices = @transform_23, window_bounds = array<i64: 1, 16, 128>}]} {
    %c0 = arith.constant 0 : index
    %c0_0 = arith.constant 0 : index
    %c0_1 = arith.constant 0 : index
    %0 = vector.load %arg1[%c0, %c0_0, %c0_1] : memref<1x16x128xf32, #tpu.memory_space<vmem>>, vector<1x16x128xf32>
    %1 = vector.shape_cast %0 : vector<1x16x128xf32> to vector<16x128xf32>
    %c0_2 = arith.constant 0 : index
    %c0_3 = arith.constant 0 : index
    %2 = vector.load %arg2[%c0_2, %c0_3] : memref<1x128xf32, #tpu.memory_space<vmem>>, vector<1x128xf32>
    %c0_4 = arith.constant 0 : index
    %c0_5 = arith.constant 0 : index
    %3 = vector.load %arg3[%c0_4, %c0_5] : memref<1x128xf32, #tpu.memory_space<vmem>>, vector<1x128xf32>
    %cst = arith.constant dense<0.000000e+00> : vector<16xf32>
    %4 = vector.multi_reduction <add>, %1, %cst [1] : vector<16x128xf32> to vector<16xf32>
    %5 = vector.shape_cast %4 : vector<16xf32> to vector<16x1xf32>
    %cst_6 = arith.constant 1.280000e+02 : f32
    %6 = vector.broadcast %cst_6 : f32 to vector<16x1xf32>
    %7 = arith.divf %5, %6 : vector<16x1xf32>
    %8 = vector.broadcast %7 : vector<16x1xf32> to vector<16x128xf32>
    %9 = arith.subf %1, %8 : vector<16x128xf32>
    %10 = arith.mulf %9, %9 : vector<16x128xf32>
    %cst_7 = arith.constant dense<0.000000e+00> : vector<16xf32>
    %11 = vector.multi_reduction <add>, %10, %cst_7 [1] : vector<16x128xf32> to vector<16xf32>
    %12 = vector.shape_cast %11 : vector<16xf32> to vector<16x1xf32>
    %cst_8 = arith.constant 1.280000e+02 : f32
    %13 = vector.broadcast %cst_8 : f32 to vector<16x1xf32>
    %14 = arith.divf %12, %13 : vector<16x1xf32>
    %15 = vector.broadcast %7 : vector<16x1xf32> to vector<16x128xf32>
    %16 = arith.subf %1, %15 : vector<16x128xf32>
    %cst_9 = arith.constant 9.99999974E-6 : f32
    %17 = vector.broadcast %cst_9 : f32 to vector<16x1xf32>
    %18 = arith.addf %14, %17 : vector<16x1xf32>
    %19 = math.rsqrt %18 : vector<16x1xf32>
    %20 = vector.broadcast %19 : vector<16x1xf32> to vector<16x128xf32>
    %21 = arith.mulf %16, %20 : vector<16x128xf32>
    %22 = vector.broadcast %2 : vector<1x128xf32> to vector<16x128xf32>
    %23 = arith.mulf %21, %22 : vector<16x128xf32>
    %24 = vector.broadcast %3 : vector<1x128xf32> to vector<16x128xf32>
    %25 = arith.addf %23, %24 : vector<16x128xf32>
    %26 = arith.truncf %25 : vector<16x128xf32> to vector<16x128xbf16>
    %c0_10 = arith.constant 0 : index
    %c0_11 = arith.constant 0 : index
    %27 = vector.load %arg4[%c0_10, %c0_11] : memref<128x128xbf16, #tpu.memory_space<vmem>>, vector<128x128xbf16>
    %cst_12 = arith.constant dense<0.000000e+00> : vector<16x128xf32>
    %28 = tpu.matmul %26, %27, %cst_12 {dimension_numbers = #tpu.dot_dimension_numbers<[1], [0], [0], [1], [0, 0, 1, 1], [], []>} : vector<16x128xbf16>, vector<128x128xbf16>, vector<16x128xf32> -> vector<16x128xf32>
    %c0_13 = arith.constant 0 : index
    %c0_14 = arith.constant 0 : index
    %29 = vector.load %arg5[%c0_13, %c0_14] : memref<1x128xf32, #tpu.memory_space<vmem>>, vector<1x128xf32>
    %30 = vector.broadcast %29 : vector<1x128xf32> to vector<16x128xf32>
    %31 = arith.addf %28, %30 : vector<16x128xf32>
    %c0_15 = arith.constant 0 : index
    %c0_16 = arith.constant 0 : index
    %32 = vector.load %arg6[%c0_15, %c0_16] : memref<128x128xbf16, #tpu.memory_space<vmem>>, vector<128x128xbf16>
    %cst_17 = arith.constant dense<0.000000e+00> : vector<16x128xf32>
    %33 = tpu.matmul %26, %32, %cst_17 {dimension_numbers = #tpu.dot_dimension_numbers<[1], [0], [0], [1], [0, 0, 1, 1], [], []>} : vector<16x128xbf16>, vector<128x128xbf16>, vector<16x128xf32> -> vector<16x128xf32>
    %c0_18 = arith.constant 0 : index
    %c0_19 = arith.constant 0 : index
    %34 = vector.load %arg7[%c0_18, %c0_19] : memref<1x128xf32, #tpu.memory_space<vmem>>, vector<1x128xf32>
    %35 = vector.broadcast %34 : vector<1x128xf32> to vector<16x128xf32>
    %36 = arith.addf %33, %35 : vector<16x128xf32>
    %c0_20 = arith.constant 0 : index
    %c0_21 = arith.constant 0 : index
    %37 = vector.load %arg8[%c0_20, %c0_21] : memref<128x128xbf16, #tpu.memory_space<vmem>>, vector<128x128xbf16>
    %cst_22 = arith.constant dense<0.000000e+00> : vector<16x128xf32>
    %38 = tpu.matmul %26, %37, %cst_22 {dimension_numbers = #tpu.dot_dimension_numbers<[1], [0], [0], [1], [0, 0, 1, 1], [], []>} : vector<16x128xbf16>, vector<128x128xbf16>, vector<16x128xf32> -> vector<16x128xf32>
    %c0_23 = arith.constant 0 : index
    %c0_24 = arith.constant 0 : index
    %39 = vector.load %arg9[%c0_23, %c0_24] : memref<1x128xf32, #tpu.memory_space<vmem>>, vector<1x128xf32>
    %40 = vector.broadcast %39 : vector<1x128xf32> to vector<16x128xf32>
    %41 = arith.addf %38, %40 : vector<16x128xf32>
    %42 = arith.truncf %31 : vector<16x128xf32> to vector<16x128xbf16>
    %43 = arith.truncf %36 : vector<16x128xf32> to vector<16x128xbf16>
    %44 = arith.truncf %41 : vector<16x128xf32> to vector<16x128xbf16>
    %45 = vector.extract_strided_slice %42 {offsets = [0, 0], sizes = [16, 32], strides = [1, 1]} : vector<16x128xbf16> to vector<16x32xbf16>
    %46 = vector.extract_strided_slice %43 {offsets = [0, 0], sizes = [16, 32], strides = [1, 1]} : vector<16x128xbf16> to vector<16x32xbf16>
    %cst_25 = arith.constant dense<0.000000e+00> : vector<16x16xf32>
    %47 = tpu.matmul %45, %46, %cst_25 {dimension_numbers = #tpu.dot_dimension_numbers<[1], [1], [0], [0], [0, 0, 1, 0], [], []>} : vector<16x32xbf16>, vector<16x32xbf16>, vector<16x16xf32> -> vector<16x16xf32>
    %cst_26 = arith.constant 0.176776692 : f32
    %48 = vector.broadcast %cst_26 : f32 to vector<16x16xf32>
    %49 = arith.mulf %47, %48 : vector<16x16xf32>
    %cst_27 = arith.constant dense<0xFF800000> : vector<16xf32>
    %50 = vector.multi_reduction <maximumf>, %49, %cst_27 [1] : vector<16x16xf32> to vector<16xf32>
    %51 = vector.shape_cast %50 : vector<16xf32> to vector<16x1xf32>
    %52 = vector.broadcast %51 : vector<16x1xf32> to vector<16x16xf32>
    %53 = arith.subf %49, %52 : vector<16x16xf32>
    %54 = math.exp %53 : vector<16x16xf32>
    %cst_28 = arith.constant dense<0.000000e+00> : vector<16xf32>
    %55 = vector.multi_reduction <add>, %54, %cst_28 [1] : vector<16x16xf32> to vector<16xf32>
    %56 = vector.shape_cast %55 : vector<16xf32> to vector<16x1xf32>
    %57 = vector.broadcast %56 : vector<16x1xf32> to vector<16x16xf32>
    %58 = arith.divf %54, %57 : vector<16x16xf32>
    %59 = arith.truncf %58 : vector<16x16xf32> to vector<16x16xbf16>
    %60 = vector.extract_strided_slice %44 {offsets = [0, 0], sizes = [16, 32], strides = [1, 1]} : vector<16x128xbf16> to vector<16x32xbf16>
    %cst_29 = arith.constant dense<0.000000e+00> : vector<16x32xf32>
    %61 = tpu.matmul %59, %60, %cst_29 {dimension_numbers = #tpu.dot_dimension_numbers<[1], [0], [0], [1], [0, 0, 1, 1], [], []>} : vector<16x16xbf16>, vector<16x32xbf16>, vector<16x32xf32> -> vector<16x32xf32>
    %c0_30 = arith.constant 0 : index
    %c0_31 = arith.constant 0 : index
    %62 = vector.load %arg25[%c0_30, %c0_31] : memref<16x128xf32, #tpu.memory_space<vmem>>, vector<16x32xf32>
    tpu.vector_store %arg25[%c0_30, %c0_31], %61 {strides = array<i32>} : memref<16x128xf32, #tpu.memory_space<vmem>>, vector<16x32xf32>,
    %63 = vector.extract_strided_slice %42 {offsets = [0, 32], sizes = [16, 32], strides = [1, 1]} : vector<16x128xbf16> to vector<16x32xbf16>
    %64 = vector.extract_strided_slice %43 {offsets = [0, 32], sizes = [16, 32], strides = [1, 1]} : vector<16x128xbf16> to vector<16x32xbf16>
    %cst_32 = arith.constant dense<0.000000e+00> : vector<16x16xf32>
    %65 = tpu.matmul %63, %64, %cst_32 {dimension_numbers = #tpu.dot_dimension_numbers<[1], [1], [0], [0], [0, 0, 1, 0], [], []>} : vector<16x32xbf16>, vector<16x32xbf16>, vector<16x16xf32> -> vector<16x16xf32>
    %cst_33 = arith.constant 0.176776692 : f32
    %66 = vector.broadcast %cst_33 : f32 to vector<16x16xf32>
    %67 = arith.mulf %65, %66 : vector<16x16xf32>
    %cst_34 = arith.constant dense<0xFF800000> : vector<16xf32>
    %68 = vector.multi_reduction <maximumf>, %67, %cst_34 [1] : vector<16x16xf32> to vector<16xf32>
    %69 = vector.shape_cast %68 : vector<16xf32> to vector<16x1xf32>
    %70 = vector.broadcast %69 : vector<16x1xf32> to vector<16x16xf32>
    %71 = arith.subf %67, %70 : vector<16x16xf32>
    %72 = math.exp %71 : vector<16x16xf32>
    %cst_35 = arith.constant dense<0.000000e+00> : vector<16xf32>
    %73 = vector.multi_reduction <add>, %72, %cst_35 [1] : vector<16x16xf32> to vector<16xf32>
    %74 = vector.shape_cast %73 : vector<16xf32> to vector<16x1xf32>
    %75 = vector.broadcast %74 : vector<16x1xf32> to vector<16x16xf32>
    %76 = arith.divf %72, %75 : vector<16x16xf32>
    %77 = arith.truncf %76 : vector<16x16xf32> to vector<16x16xbf16>
    %78 = vector.extract_strided_slice %44 {offsets = [0, 32], sizes = [16, 32], strides = [1, 1]} : vector<16x128xbf16> to vector<16x32xbf16>
    %cst_36 = arith.constant dense<0.000000e+00> : vector<16x32xf32>
    %79 = tpu.matmul %77, %78, %cst_36 {dimension_numbers = #tpu.dot_dimension_numbers<[1], [0], [0], [1], [0, 0, 1, 1], [], []>} : vector<16x16xbf16>, vector<16x32xbf16>, vector<16x32xf32> -> vector<16x32xf32>
    %c0_37 = arith.constant 0 : index
    %c32 = arith.constant 32 : index
    %80 = vector.load %arg25[%c0_37, %c32] : memref<16x128xf32, #tpu.memory_space<vmem>>, vector<16x32xf32>
    tpu.vector_store %arg25[%c0_37, %c32], %79 {strides = array<i32>} : memref<16x128xf32, #tpu.memory_space<vmem>>, vector<16x32xf32>,
    %81 = vector.extract_strided_slice %42 {offsets = [0, 64], sizes = [16, 32], strides = [1, 1]} : vector<16x128xbf16> to vector<16x32xbf16>
    %82 = vector.extract_strided_slice %43 {offsets = [0, 64], sizes = [16, 32], strides = [1, 1]} : vector<16x128xbf16> to vector<16x32xbf16>
    %cst_38 = arith.constant dense<0.000000e+00> : vector<16x16xf32>
    %83 = tpu.matmul %81, %82, %cst_38 {dimension_numbers = #tpu.dot_dimension_numbers<[1], [1], [0], [0], [0, 0, 1, 0], [], []>} : vector<16x32xbf16>, vector<16x32xbf16>, vector<16x16xf32> -> vector<16x16xf32>
    %cst_39 = arith.constant 0.176776692 : f32
    %84 = vector.broadcast %cst_39 : f32 to vector<16x16xf32>
    %85 = arith.mulf %83, %84 : vector<16x16xf32>
    %cst_40 = arith.constant dense<0xFF800000> : vector<16xf32>
    %86 = vector.multi_reduction <maximumf>, %85, %cst_40 [1] : vector<16x16xf32> to vector<16xf32>
    %87 = vector.shape_cast %86 : vector<16xf32> to vector<16x1xf32>
    %88 = vector.broadcast %87 : vector<16x1xf32> to vector<16x16xf32>
    %89 = arith.subf %85, %88 : vector<16x16xf32>
    %90 = math.exp %89 : vector<16x16xf32>
    %cst_41 = arith.constant dense<0.000000e+00> : vector<16xf32>
    %91 = vector.multi_reduction <add>, %90, %cst_41 [1] : vector<16x16xf32> to vector<16xf32>
    %92 = vector.shape_cast %91 : vector<16xf32> to vector<16x1xf32>
    %93 = vector.broadcast %92 : vector<16x1xf32> to vector<16x16xf32>
    %94 = arith.divf %90, %93 : vector<16x16xf32>
    %95 = arith.truncf %94 : vector<16x16xf32> to vector<16x16xbf16>
    %96 = vector.extract_strided_slice %44 {offsets = [0, 64], sizes = [16, 32], strides = [1, 1]} : vector<16x128xbf16> to vector<16x32xbf16>
    %cst_42 = arith.constant dense<0.000000e+00> : vector<16x32xf32>
    %97 = tpu.matmul %95, %96, %cst_42 {dimension_numbers = #tpu.dot_dimension_numbers<[1], [0], [0], [1], [0, 0, 1, 1], [], []>} : vector<16x16xbf16>, vector<16x32xbf16>, vector<16x32xf32> -> vector<16x32xf32>
    %c0_43 = arith.constant 0 : index
    %c64 = arith.constant 64 : index
    %98 = vector.load %arg25[%c0_43, %c64] : memref<16x128xf32, #tpu.memory_space<vmem>>, vector<16x32xf32>
    tpu.vector_store %arg25[%c0_43, %c64], %97 {strides = array<i32>} : memref<16x128xf32, #tpu.memory_space<vmem>>, vector<16x32xf32>,
    %99 = vector.extract_strided_slice %42 {offsets = [0, 96], sizes = [16, 32], strides = [1, 1]} : vector<16x128xbf16> to vector<16x32xbf16>
    %100 = vector.extract_strided_slice %43 {offsets = [0, 96], sizes = [16, 32], strides = [1, 1]} : vector<16x128xbf16> to vector<16x32xbf16>
    %cst_44 = arith.constant dense<0.000000e+00> : vector<16x16xf32>
    %101 = tpu.matmul %99, %100, %cst_44 {dimension_numbers = #tpu.dot_dimension_numbers<[1], [1], [0], [0], [0, 0, 1, 0], [], []>} : vector<16x32xbf16>, vector<16x32xbf16>, vector<16x16xf32> -> vector<16x16xf32>
    %cst_45 = arith.constant 0.176776692 : f32
    %102 = vector.broadcast %cst_45 : f32 to vector<16x16xf32>
    %103 = arith.mulf %101, %102 : vector<16x16xf32>
    %cst_46 = arith.constant dense<0xFF800000> : vector<16xf32>
    %104 = vector.multi_reduction <maximumf>, %103, %cst_46 [1] : vector<16x16xf32> to vector<16xf32>
    %105 = vector.shape_cast %104 : vector<16xf32> to vector<16x1xf32>
    %106 = vector.broadcast %105 : vector<16x1xf32> to vector<16x16xf32>
    %107 = arith.subf %103, %106 : vector<16x16xf32>
    %108 = math.exp %107 : vector<16x16xf32>
    %cst_47 = arith.constant dense<0.000000e+00> : vector<16xf32>
    %109 = vector.multi_reduction <add>, %108, %cst_47 [1] : vector<16x16xf32> to vector<16xf32>
    %110 = vector.shape_cast %109 : vector<16xf32> to vector<16x1xf32>
    %111 = vector.broadcast %110 : vector<16x1xf32> to vector<16x16xf32>
    %112 = arith.divf %108, %111 : vector<16x16xf32>
    %113 = arith.truncf %112 : vector<16x16xf32> to vector<16x16xbf16>
    %114 = vector.extract_strided_slice %44 {offsets = [0, 96], sizes = [16, 32], strides = [1, 1]} : vector<16x128xbf16> to vector<16x32xbf16>
    %cst_48 = arith.constant dense<0.000000e+00> : vector<16x32xf32>
    %115 = tpu.matmul %113, %114, %cst_48 {dimension_numbers = #tpu.dot_dimension_numbers<[1], [0], [0], [1], [0, 0, 1, 1], [], []>} : vector<16x16xbf16>, vector<16x32xbf16>, vector<16x32xf32> -> vector<16x32xf32>
    %c0_49 = arith.constant 0 : index
    %c96 = arith.constant 96 : index
    %116 = vector.load %arg25[%c0_49, %c96] : memref<16x128xf32, #tpu.memory_space<vmem>>, vector<16x32xf32>
    tpu.vector_store %arg25[%c0_49, %c96], %115 {strides = array<i32>} : memref<16x128xf32, #tpu.memory_space<vmem>>, vector<16x32xf32>,
    %c0_50 = arith.constant 0 : index
    %c0_51 = arith.constant 0 : index
    %117 = vector.load %arg25[%c0_50, %c0_51] : memref<16x128xf32, #tpu.memory_space<vmem>>, vector<16x128xf32>
    %118 = arith.truncf %117 : vector<16x128xf32> to vector<16x128xbf16>
    %c0_52 = arith.constant 0 : index
    %c0_53 = arith.constant 0 : index
    %119 = vector.load %arg10[%c0_52, %c0_53] : memref<128x128xbf16, #tpu.memory_space<vmem>>, vector<128x128xbf16>
    %cst_54 = arith.constant dense<0.000000e+00> : vector<16x128xf32>
    %120 = tpu.matmul %118, %119, %cst_54 {dimension_numbers = #tpu.dot_dimension_numbers<[1], [0], [0], [1], [0, 0, 1, 1], [], []>} : vector<16x128xbf16>, vector<128x128xbf16>, vector<16x128xf32> -> vector<16x128xf32>
    %c0_55 = arith.constant 0 : index
    %c0_56 = arith.constant 0 : index
    %121 = vector.load %arg11[%c0_55, %c0_56] : memref<1x128xf32, #tpu.memory_space<vmem>>, vector<1x128xf32>
    %122 = vector.broadcast %121 : vector<1x128xf32> to vector<16x128xf32>
    %123 = arith.addf %120, %122 : vector<16x128xf32>
    %124 = arith.addf %1, %123 : vector<16x128xf32>
    %c0_57 = arith.constant 0 : index
    %c0_58 = arith.constant 0 : index
    %125 = vector.load %arg12[%c0_57, %c0_58] : memref<1x128xf32, #tpu.memory_space<vmem>>, vector<1x128xf32>
    %c0_59 = arith.constant 0 : index
    %c0_60 = arith.constant 0 : index
    %126 = vector.load %arg13[%c0_59, %c0_60] : memref<1x128xf32, #tpu.memory_space<vmem>>, vector<1x128xf32>
    %cst_61 = arith.constant dense<0.000000e+00> : vector<16xf32>
    %127 = vector.multi_reduction <add>, %124, %cst_61 [1] : vector<16x128xf32> to vector<16xf32>
    %128 = vector.shape_cast %127 : vector<16xf32> to vector<16x1xf32>
    %cst_62 = arith.constant 1.280000e+02 : f32
    %129 = vector.broadcast %cst_62 : f32 to vector<16x1xf32>
    %130 = arith.divf %128, %129 : vector<16x1xf32>
    %131 = vector.broadcast %130 : vector<16x1xf32> to vector<16x128xf32>
    %132 = arith.subf %124, %131 : vector<16x128xf32>
    %133 = arith.mulf %132, %132 : vector<16x128xf32>
    %cst_63 = arith.constant dense<0.000000e+00> : vector<16xf32>
    %134 = vector.multi_reduction <add>, %133, %cst_63 [1] : vector<16x128xf32> to vector<16xf32>
    %135 = vector.shape_cast %134 : vector<16xf32> to vector<16x1xf32>
    %cst_64 = arith.constant 1.280000e+02 : f32
    %136 = vector.broadcast %cst_64 : f32 to vector<16x1xf32>
    %137 = arith.divf %135, %136 : vector<16x1xf32>
    %138 = vector.broadcast %130 : vector<16x1xf32> to vector<16x128xf32>
    %139 = arith.subf %124, %138 : vector<16x128xf32>
    %cst_65 = arith.constant 9.99999974E-6 : f32
    %140 = vector.broadcast %cst_65 : f32 to vector<16x1xf32>
    %141 = arith.addf %137, %140 : vector<16x1xf32>
    %142 = math.rsqrt %141 : vector<16x1xf32>
    %143 = vector.broadcast %142 : vector<16x1xf32> to vector<16x128xf32>
    %144 = arith.mulf %139, %143 : vector<16x128xf32>
    %145 = vector.broadcast %125 : vector<1x128xf32> to vector<16x128xf32>
    %146 = arith.mulf %144, %145 : vector<16x128xf32>
    %147 = vector.broadcast %126 : vector<1x128xf32> to vector<16x128xf32>
    %148 = arith.addf %146, %147 : vector<16x128xf32>
    %149 = tpu.iota {dimensions = array<i32: 0>} : vector<16x16xi32>
    %150 = tpu.iota {dimensions = array<i32: 1>} : vector<16x16xi32>
    %c1_i32 = arith.constant 1 : i32
    %151 = vector.broadcast %c1_i32 : i32 to vector<16x16xi32>
    %152 = arith.addi %150, %151 : vector<16x16xi32>
    %153 = arith.cmpi eq, %149, %152 : vector<16x16xi32>
    %154 = arith.extui %153 : vector<16x16xi1> to vector<16x16xi32>
    %155 = arith.sitofp %154 : vector<16x16xi32> to vector<16x16xf32>
    %cst_66 = arith.constant dense<0.000000e+00> : vector<16x128xf32>
    %156 = tpu.matmul %155, %148, %cst_66 {dimension_numbers = #tpu.dot_dimension_numbers<[1], [0], [0], [1], [0, 0, 1, 1], [], []>} : vector<16x16xf32>, vector<16x128xf32>, vector<16x128xf32> -> vector<16x128xf32>
    %c1_i32_67 = arith.constant 1 : i32
    %157 = vector.broadcast %c1_i32_67 : i32 to vector<16x16xi32>
    %158 = arith.addi %149, %157 : vector<16x16xi32>
    %159 = arith.cmpi eq, %158, %150 : vector<16x16xi32>
    %160 = arith.extui %159 : vector<16x16xi1> to vector<16x16xi32>
    %161 = arith.sitofp %160 : vector<16x16xi32> to vector<16x16xf32>
    %cst_68 = arith.constant dense<0.000000e+00> : vector<16x128xf32>
    %162 = tpu.matmul %161, %148, %cst_68 {dimension_numbers = #tpu.dot_dimension_numbers<[1], [0], [0], [1], [0, 0, 1, 1], [], []>} : vector<16x16xf32>, vector<16x128xf32>, vector<16x128xf32> -> vector<16x128xf32>
    %c0_69 = arith.constant 0 : index
    %c0_70 = arith.constant 0 : index
    %163 = vector.load %arg14[%c0_69, %c0_70] : memref<3x128xf32, #tpu.memory_space<vmem>>, vector<1x128xf32>
    %164 = vector.broadcast %163 : vector<1x128xf32> to vector<16x128xf32>
    %165 = arith.mulf %156, %164 : vector<16x128xf32>
    %c1 = arith.constant 1 : index
    %c0_71 = arith.constant 0 : index
    %166 = vector.load %arg14[%c1, %c0_71] : memref<3x128xf32, #tpu.memory_space<vmem>>, vector<1x128xf32>
    %167 = vector.broadcast %166 : vector<1x128xf32> to vector<16x128xf32>
    %168 = arith.mulf %148, %167 : vector<16x128xf32>
    %169 = arith.addf %165, %168 : vector<16x128xf32>
    %c2 = arith.constant 2 : index
    %c0_72 = arith.constant 0 : index
    %170 = vector.load %arg14[%c2, %c0_72] : memref<3x128xf32, #tpu.memory_space<vmem>>, vector<1x128xf32>
    %171 = vector.broadcast %170 : vector<1x128xf32> to vector<16x128xf32>
    %172 = arith.mulf %162, %171 : vector<16x128xf32>
    %173 = arith.addf %169, %172 : vector<16x128xf32>
    %c0_73 = arith.constant 0 : index
    %c0_74 = arith.constant 0 : index
    %174 = vector.load %arg15[%c0_73, %c0_74] : memref<1x128xf32, #tpu.memory_space<vmem>>, vector<1x128xf32>
    %175 = vector.broadcast %174 : vector<1x128xf32> to vector<16x128xf32>
    %176 = arith.addf %173, %175 : vector<16x128xf32>
    %177 = arith.addf %124, %148 : vector<16x128xf32>
    %c0_75 = arith.constant 0 : index
    %c0_76 = arith.constant 0 : index
    %178 = vector.load %arg16[%c0_75, %c0_76] : memref<1x128xf32, #tpu.memory_space<vmem>>, vector<1x128xf32>
    %c0_77 = arith.constant 0 : index
    %c0_78 = arith.constant 0 : index
    %179 = vector.load %arg17[%c0_77, %c0_78] : memref<1x128xf32, #tpu.memory_space<vmem>>, vector<1x128xf32>
    %cst_79 = arith.constant dense<0.000000e+00> : vector<16xf32>
    %180 = vector.multi_reduction <add>, %176, %cst_79 [1] : vector<16x128xf32> to vector<16xf32>
    %181 = vector.shape_cast %180 : vector<16xf32> to vector<16x1xf32>
    %cst_80 = arith.constant 1.280000e+02 : f32
    %182 = vector.broadcast %cst_80 : f32 to vector<16x1xf32>
    %183 = arith.divf %181, %182 : vector<16x1xf32>
    %184 = vector.broadcast %183 : vector<16x1xf32> to vector<16x128xf32>
    %185 = arith.subf %176, %184 : vector<16x128xf32>
    %186 = arith.mulf %185, %185 : vector<16x128xf32>
    %cst_81 = arith.constant dense<0.000000e+00> : vector<16xf32>
    %187 = vector.multi_reduction <add>, %186, %cst_81 [1] : vector<16x128xf32> to vector<16xf32>
    %188 = vector.shape_cast %187 : vector<16xf32> to vector<16x1xf32>
    %cst_82 = arith.constant 1.280000e+02 : f32
    %189 = vector.broadcast %cst_82 : f32 to vector<16x1xf32>
    %190 = arith.divf %188, %189 : vector<16x1xf32>
    %191 = vector.broadcast %183 : vector<16x1xf32> to vector<16x128xf32>
    %192 = arith.subf %176, %191 : vector<16x128xf32>
    %cst_83 = arith.constant 9.99999974E-6 : f32
    %193 = vector.broadcast %cst_83 : f32 to vector<16x1xf32>
    %194 = arith.addf %190, %193 : vector<16x1xf32>
    %195 = math.rsqrt %194 : vector<16x1xf32>
    %196 = vector.broadcast %195 : vector<16x1xf32> to vector<16x128xf32>
    %197 = arith.mulf %192, %196 : vector<16x128xf32>
    %198 = vector.broadcast %178 : vector<1x128xf32> to vector<16x128xf32>
    %199 = arith.mulf %197, %198 : vector<16x128xf32>
    %200 = vector.broadcast %179 : vector<1x128xf32> to vector<16x128xf32>
    %201 = arith.addf %199, %200 : vector<16x128xf32>
    %cst_84 = arith.constant 5.000000e-01 : f32
    %202 = vector.broadcast %cst_84 : f32 to vector<16x128xf32>
    %203 = arith.mulf %202, %201 : vector<16x128xf32>
    %cst_85 = arith.constant 0.707106769 : f32
    %204 = vector.broadcast %cst_85 : f32 to vector<16x128xf32>
    %205 = arith.mulf %201, %204 : vector<16x128xf32>
    %206 = math.erf %205 : vector<16x128xf32>
    %cst_86 = arith.constant 1.000000e+00 : f32
    %207 = vector.broadcast %cst_86 : f32 to vector<16x128xf32>
    %208 = arith.addf %207, %206 : vector<16x128xf32>
    %209 = arith.mulf %203, %208 : vector<16x128xf32>
    %210 = arith.addf %177, %209 : vector<16x128xf32>
    %c0_87 = arith.constant 0 : index
    %c0_88 = arith.constant 0 : index
    %211 = vector.load %arg18[%c0_87, %c0_88] : memref<1x128xf32, #tpu.memory_space<vmem>>, vector<1x128xf32>
    %c0_89 = arith.constant 0 : index
    %c0_90 = arith.constant 0 : index
    %212 = vector.load %arg19[%c0_89, %c0_90] : memref<1x128xf32, #tpu.memory_space<vmem>>, vector<1x128xf32>
    %cst_91 = arith.constant dense<0.000000e+00> : vector<16xf32>
    %213 = vector.multi_reduction <add>, %210, %cst_91 [1] : vector<16x128xf32> to vector<16xf32>
    %214 = vector.shape_cast %213 : vector<16xf32> to vector<16x1xf32>
    %cst_92 = arith.constant 1.280000e+02 : f32
    %215 = vector.broadcast %cst_92 : f32 to vector<16x1xf32>
    %216 = arith.divf %214, %215 : vector<16x1xf32>
    %217 = vector.broadcast %216 : vector<16x1xf32> to vector<16x128xf32>
    %218 = arith.subf %210, %217 : vector<16x128xf32>
    %219 = arith.mulf %218, %218 : vector<16x128xf32>
    %cst_93 = arith.constant dense<0.000000e+00> : vector<16xf32>
    %220 = vector.multi_reduction <add>, %219, %cst_93 [1] : vector<16x128xf32> to vector<16xf32>
    %221 = vector.shape_cast %220 : vector<16xf32> to vector<16x1xf32>
    %cst_94 = arith.constant 1.280000e+02 : f32
    %222 = vector.broadcast %cst_94 : f32 to vector<16x1xf32>
    %223 = arith.divf %221, %222 : vector<16x1xf32>
    %224 = vector.broadcast %216 : vector<16x1xf32> to vector<16x128xf32>
    %225 = arith.subf %210, %224 : vector<16x128xf32>
    %cst_95 = arith.constant 9.99999974E-6 : f32
    %226 = vector.broadcast %cst_95 : f32 to vector<16x1xf32>
    %227 = arith.addf %223, %226 : vector<16x1xf32>
    %228 = math.rsqrt %227 : vector<16x1xf32>
    %229 = vector.broadcast %228 : vector<16x1xf32> to vector<16x128xf32>
    %230 = arith.mulf %225, %229 : vector<16x128xf32>
    %231 = vector.broadcast %211 : vector<1x128xf32> to vector<16x128xf32>
    %232 = arith.mulf %230, %231 : vector<16x128xf32>
    %233 = vector.broadcast %212 : vector<1x128xf32> to vector<16x128xf32>
    %234 = arith.addf %232, %233 : vector<16x128xf32>
    %235 = arith.truncf %234 : vector<16x128xf32> to vector<16x128xbf16>
    %cst_96 = arith.constant 0.000000e+00 : f32
    %236 = vector.broadcast %cst_96 : f32 to vector<16x128xf32>
    %c0_97 = arith.constant 0 : index
    %c0_98 = arith.constant 0 : index
    %237 = vector.load %arg20[%c0_97, %c0_98] : memref<128x512xbf16, #tpu.memory_space<vmem>>, vector<128x512xbf16>
    %cst_99 = arith.constant dense<0.000000e+00> : vector<16x512xf32>
    %238 = tpu.matmul %235, %237, %cst_99 {dimension_numbers = #tpu.dot_dimension_numbers<[1], [0], [0], [1], [0, 0, 1, 1], [], []>} : vector<16x128xbf16>, vector<128x512xbf16>, vector<16x512xf32> -> vector<16x512xf32>
    %c0_100 = arith.constant 0 : index
    %c0_101 = arith.constant 0 : index
    %239 = vector.load %arg21[%c0_100, %c0_101] : memref<1x512xf32, #tpu.memory_space<vmem>>, vector<1x512xf32>
    %240 = vector.broadcast %239 : vector<1x512xf32> to vector<16x512xf32>
    %241 = arith.addf %238, %240 : vector<16x512xf32>
    %cst_102 = arith.constant 5.000000e-01 : f32
    %242 = vector.broadcast %cst_102 : f32 to vector<16x512xf32>
    %243 = arith.mulf %242, %241 : vector<16x512xf32>
    %cst_103 = arith.constant 0.707106769 : f32
    %244 = vector.broadcast %cst_103 : f32 to vector<16x512xf32>
    %245 = arith.mulf %241, %244 : vector<16x512xf32>
    %246 = math.erf %245 : vector<16x512xf32>
    %cst_104 = arith.constant 1.000000e+00 : f32
    %247 = vector.broadcast %cst_104 : f32 to vector<16x512xf32>
    %248 = arith.addf %247, %246 : vector<16x512xf32>
    %249 = arith.mulf %243, %248 : vector<16x512xf32>
    %250 = arith.truncf %249 : vector<16x512xf32> to vector<16x512xbf16>
    %c0_105 = arith.constant 0 : index
    %c0_106 = arith.constant 0 : index
    %251 = vector.load %arg22[%c0_105, %c0_106] : memref<512x128xbf16, #tpu.memory_space<vmem>>, vector<512x128xbf16>
    %cst_107 = arith.constant dense<0.000000e+00> : vector<16x128xf32>
    %252 = tpu.matmul %250, %251, %cst_107 {dimension_numbers = #tpu.dot_dimension_numbers<[1], [0], [0], [1], [0, 0, 1, 1], [], []>} : vector<16x512xbf16>, vector<512x128xbf16>, vector<16x128xf32> -> vector<16x128xf32>
    %253 = arith.addf %236, %252 : vector<16x128xf32>
    %254 = arith.addf %210, %253 : vector<16x128xf32>
    %c0_108 = arith.constant 0 : index
    %c0_109 = arith.constant 0 : index
    %255 = vector.load %arg23[%c0_108, %c0_109] : memref<1x128xf32, #tpu.memory_space<vmem>>, vector<1x128xf32>
    %256 = vector.broadcast %255 : vector<1x128xf32> to vector<16x128xf32>
    %257 = arith.addf %254, %256 : vector<16x128xf32>
    %c0_110 = arith.constant 0 : index
    %c0_111 = arith.constant 0 : index
    %c0_112 = arith.constant 0 : index
    %258 = vector.load %arg24[%c0_110, %c0_111, %c0_112] : memref<1x16x128xf32, #tpu.memory_space<vmem>>, vector<1x16x128xf32>
    %259 = vector.shape_cast %258 : vector<1x16x128xf32> to vector<16x128xf32>
    %260 = vector.shape_cast %257 : vector<16x128xf32> to vector<1x16x128xf32>
    tpu.vector_store %arg24[%c0_110, %c0_111, %c0_112], %260 {strides = array<i32>} : memref<1x16x128xf32, #tpu.memory_space<vmem>>, vector<1x16x128xf32>,
    return
  }
  func.func @transform_0(%arg0: i32) -> (i32, i32, i32) {
    %c0_i32 = arith.constant 0 : i32
    %c0_i32_0 = arith.constant 0 : i32
    %c0_i32_1 = arith.constant 0 : i32
    return %arg0, %c0_i32, %c0_i32_0 : i32, i32, i32
  }
  func.func @transform_1(%arg0: i32) -> (i32, i32) {
    %c0_i32 = arith.constant 0 : i32
    %c0_i32_0 = arith.constant 0 : i32
    %c0_i32_1 = arith.constant 0 : i32
    return %c0_i32, %c0_i32_0 : i32, i32
  }
  func.func @transform_2(%arg0: i32) -> (i32, i32) {
    %c0_i32 = arith.constant 0 : i32
    %c0_i32_0 = arith.constant 0 : i32
    %c0_i32_1 = arith.constant 0 : i32
    return %c0_i32, %c0_i32_0 : i32, i32
  }
  func.func @transform_3(%arg0: i32) -> (i32, i32) {
    %c0_i32 = arith.constant 0 : i32
    %c0_i32_0 = arith.constant 0 : i32
    %c0_i32_1 = arith.constant 0 : i32
    return %c0_i32, %c0_i32_0 : i32, i32
  }
  func.func @transform_4(%arg0: i32) -> (i32, i32) {
    %c0_i32 = arith.constant 0 : i32
    %c0_i32_0 = arith.constant 0 : i32
    %c0_i32_1 = arith.constant 0 : i32
    return %c0_i32, %c0_i32_0 : i32, i32
  }
  func.func @transform_5(%arg0: i32) -> (i32, i32) {
    %c0_i32 = arith.constant 0 : i32
    %c0_i32_0 = arith.constant 0 : i32
    %c0_i32_1 = arith.constant 0 : i32
    return %c0_i32, %c0_i32_0 : i32, i32
  }
  func.func @transform_6(%arg0: i32) -> (i32, i32) {
    %c0_i32 = arith.constant 0 : i32
    %c0_i32_0 = arith.constant 0 : i32
    %c0_i32_1 = arith.constant 0 : i32
    return %c0_i32, %c0_i32_0 : i32, i32
  }
  func.func @transform_7(%arg0: i32) -> (i32, i32) {
    %c0_i32 = arith.constant 0 : i32
    %c0_i32_0 = arith.constant 0 : i32
    %c0_i32_1 = arith.constant 0 : i32
    return %c0_i32, %c0_i32_0 : i32, i32
  }
  func.func @transform_8(%arg0: i32) -> (i32, i32) {
    %c0_i32 = arith.constant 0 : i32
    %c0_i32_0 = arith.constant 0 : i32
    %c0_i32_1 = arith.constant 0 : i32
    return %c0_i32, %c0_i32_0 : i32, i32
  }
  func.func @transform_9(%arg0: i32) -> (i32, i32) {
    %c0_i32 = arith.constant 0 : i32
    %c0_i32_0 = arith.constant 0 : i32
    %c0_i32_1 = arith.constant 0 : i32
    return %c0_i32, %c0_i32_0 : i32, i32
  }
  func.func @transform_10(%arg0: i32) -> (i32, i32) {
    %c0_i32 = arith.constant 0 : i32
    %c0_i32_0 = arith.constant 0 : i32
    %c0_i32_1 = arith.constant 0 : i32
    return %c0_i32, %c0_i32_0 : i32, i32
  }
  func.func @transform_11(%arg0: i32) -> (i32, i32) {
    %c0_i32 = arith.constant 0 : i32
    %c0_i32_0 = arith.constant 0 : i32
    %c0_i32_1 = arith.constant 0 : i32
    return %c0_i32, %c0_i32_0 : i32, i32
  }
  func.func @transform_12(%arg0: i32) -> (i32, i32) {
    %c0_i32 = arith.constant 0 : i32
    %c0_i32_0 = arith.constant 0 : i32
    %c0_i32_1 = arith.constant 0 : i32
    return %c0_i32, %c0_i32_0 : i32, i32
  }
  func.func @transform_13(%arg0: i32) -> (i32, i32) {
    %c0_i32 = arith.constant 0 : i32
    %c0_i32_0 = arith.constant 0 : i32
    %c0_i32_1 = arith.constant 0 : i32
    return %c0_i32, %c0_i32_0 : i32, i32
  }
  func.func @transform_14(%arg0: i32) -> (i32, i32) {
    %c0_i32 = arith.constant 0 : i32
    %c0_i32_0 = arith.constant 0 : i32
    %c0_i32_1 = arith.constant 0 : i32
    return %c0_i32, %c0_i32_0 : i32, i32
  }
  func.func @transform_15(%arg0: i32) -> (i32, i32) {
    %c0_i32 = arith.constant 0 : i32
    %c0_i32_0 = arith.constant 0 : i32
    %c0_i32_1 = arith.constant 0 : i32
    return %c0_i32, %c0_i32_0 : i32, i32
  }
  func.func @transform_16(%arg0: i32) -> (i32, i32) {
    %c0_i32 = arith.constant 0 : i32
    %c0_i32_0 = arith.constant 0 : i32
    %c0_i32_1 = arith.constant 0 : i32
    return %c0_i32, %c0_i32_0 : i32, i32
  }
  func.func @transform_17(%arg0: i32) -> (i32, i32) {
    %c0_i32 = arith.constant 0 : i32
    %c0_i32_0 = arith.constant 0 : i32
    %c0_i32_1 = arith.constant 0 : i32
    return %c0_i32, %c0_i32_0 : i32, i32
  }
  func.func @transform_18(%arg0: i32) -> (i32, i32) {
    %c0_i32 = arith.constant 0 : i32
    %c0_i32_0 = arith.constant 0 : i32
    %c0_i32_1 = arith.constant 0 : i32
    return %c0_i32, %c0_i32_0 : i32, i32
  }
  func.func @transform_19(%arg0: i32) -> (i32, i32) {
    %c0_i32 = arith.constant 0 : i32
    %c0_i32_0 = arith.constant 0 : i32
    %c0_i32_1 = arith.constant 0 : i32
    return %c0_i32, %c0_i32_0 : i32, i32
  }
  func.func @transform_20(%arg0: i32) -> (i32, i32) {
    %c0_i32 = arith.constant 0 : i32
    %c0_i32_0 = arith.constant 0 : i32
    %c0_i32_1 = arith.constant 0 : i32
    return %c0_i32, %c0_i32_0 : i32, i32
  }
  func.func @transform_21(%arg0: i32) -> (i32, i32) {
    %c0_i32 = arith.constant 0 : i32
    %c0_i32_0 = arith.constant 0 : i32
    %c0_i32_1 = arith.constant 0 : i32
    return %c0_i32, %c0_i32_0 : i32, i32
  }
  func.func @transform_22(%arg0: i32) -> (i32, i32) {
    %c0_i32 = arith.constant 0 : i32
    %c0_i32_0 = arith.constant 0 : i32
    %c0_i32_1 = arith.constant 0 : i32
    return %c0_i32, %c0_i32_0 : i32, i32
  }
  func.func @transform_23(%arg0: i32) -> (i32, i32, i32) {
    %c0_i32 = arith.constant 0 : i32
    %c0_i32_0 = arith.constant 0 : i32
    %c0_i32_1 = arith.constant 0 : i32
    return %arg0, %c0_i32, %c0_i32_0 : i32, i32, i32
  }
}

</mosaic_0001>

<bundles_post_ra>
// kernel: tpu_custom_call.1
= control target key start
LH: loop header
LB: loop body
LE: loop exit
PB: predicated region body
PF: predicated region fallthrough
CT: control target
= control target key end

     0   :  { %s4560_s0 = inlined_call_operand.hbm [shape: f32[2,16,128], index: 0, kind: input, shape index: {}]   ;;  %s4561_s1 = inlined_call_operand.vmem [shape: f32[1,128], index: 1, kind: input, shape index: {}]   ;;  %s4562_s2 = inlined_call_operand.vmem [shape: f32[1,128], index: 2, kind: input, shape index: {}]   ;;  %s4563_s3 = inlined_call_operand.hbm [shape: bf16[128,128], index: 3, kind: input, shape index: {}]   ;;  %s4564_s4 = inlined_call_operand.vmem [shape: f32[1,128], index: 4, kind: input, shape index: {}]   ;;  %s4565_s5 = inlined_call_operand.hbm [shape: bf16[128,128], index: 5, kind: input, shape index: {}]   ;;  %s4566_s6 = inlined_call_operand.vmem [shape: f32[1,128], index: 6, kind: input, shape index: {}]   ;;  %s4567_s7 = inlined_call_operand.hbm [shape: bf16[128,128], index: 7, kind: input, shape index: {}]   ;;  %s4568_s8 = inlined_call_operand.vmem [shape: f32[1,128], index: 8, kind: input, shape index: {}]   ;;  %s4569_s9 = inlined_call_operand.hbm [shape: bf16[128,128], index: 9, kind: input, shape index: {}]   ;;  %s4570_s10 = inlined_call_operand.vmem [shape: f32[1,128], index: 10, kind: input, shape index: {}]   ;;  %s4571_s11 = inlined_call_operand.vmem [shape: f32[1,128], index: 11, kind: input, shape index: {}]   ;;  %s4572_s12 = inlined_call_operand.vmem [shape: f32[1,128], index: 12, kind: input, shape index: {}]   ;;  %s4573_s13 = inlined_call_operand.vmem [shape: f32[3,128], index: 13, kind: input, shape index: {}]   ;;  %s4574_s14 = inlined_call_operand.vmem [shape: f32[1,128], index: 14, kind: input, shape index: {}]   ;;  %s4575_s15 = inlined_call_operand.vmem [shape: f32[1,128], index: 15, kind: input, shape index: {}]   ;;  %s4576_s16 = inlined_call_operand.vmem [shape: f32[1,128], index: 16, kind: input, shape index: {}]   ;;  %s4577_s17 = inlined_call_operand.vmem [shape: f32[1,128], index: 17, kind: input, shape index: {}]   ;;  %s4578_s18 = inlined_call_operand.vmem [shape: f32[1,128], index: 18, kind: input, shape index: {}]   ;;  %s4579_s19 = inlined_call_operand.hbm [shape: bf16[128,512], index: 19, kind: input, shape index: {}]   ;;  %s4580_s20 = inlined_call_operand.vmem [shape: f32[1,512], index: 20, kind: input, shape index: {}]   ;;  %s4581_s21 = inlined_call_operand.hbm [shape: bf16[512,128], index: 21, kind: input, shape index: {}]   ;;  %s4582_s22 = inlined_call_operand.vmem [shape: f32[1,128], index: 22, kind: input, shape index: {}]   ;;  %s4583_s23 = inlined_call_operand.hbm [shape: f32[2,16,128], index: 23, kind: output, shape index: {}]  }
   0x1   :  { %4599 = sst [smem:[#allocation21_spill]] %s4560_s0 }
   0x2   :  { %4600 = sst [smem:[#allocation22_spill]] %s4561_s1 }
   0x3   :  { %4601 = sst [smem:[#allocation23_spill]] %s4562_s2 }
   0x4   :  { %4602 = sst [smem:[#allocation24_spill]] %s4563_s3 }
   0x5   :  { %4603 = sst [smem:[#allocation25_spill]] %s4564_s4 }
   0x6   :  { %4604 = sst [smem:[#allocation26_spill]] %s4565_s5 }
   0x7   :  { %4605 = sst [smem:[#allocation27_spill]] %s4566_s6 }
   0x8   :  { %4606 = sst [smem:[#allocation28_spill]] %s4567_s7 }
   0x9   :  { %4607 = sst [smem:[#allocation29_spill]] %s4572_s12 }
   0xa   :  { %4608 = sst [smem:[#allocation30_spill]] %s4573_s13 }
   0xb   :  { %4609 = sst [smem:[#allocation31_spill]] %s4574_s14 }
   0xc   :  { %4610 = sst [smem:[#allocation32_spill]] %s4575_s15 }
   0xd   :  { %4611 = sst [smem:[#allocation33_spill]] %s4576_s16 }
   0xe   :  { %4612 = sst [smem:[#allocation34_spill]] %s4577_s17 }
   0xf   :  { %4613 = sst [smem:[#allocation35_spill]] %s4578_s18 }
  0x10   :  { %4614 = sst [smem:[#allocation36_spill]] %s4580_s20 }
  0x11   :  { %4615 = sst [smem:[#allocation37_spill]] %s4582_s22 }
  0x12   :  { %4616 = sst [smem:[#allocation38_spill]] %s4583_s23 }
  0x13   :  { %28 = vsyncpa [#allocation4], 0 }
  0x14   :  { %30 = vsyncpa [#allocation4 + $0x1], 0 }
  0x15   :  { %31 = vsyncpa [#allocation7], 0 }
  0x16   :  { %32 = vsyncpa [#allocation10], 0 }
  0x17   :  { %33 = vsyncpa [#allocation13], 0 }
  0x18   :  { %34 = vsyncpa [#allocation5], 0 }
  0x19   :  { %36 = vsyncpa [#allocation5 + $0x1], 0  ;;  %s3967_s4 = smov 0   ;;  %s3969_s30 = smov 0  }
  0x1a   :  { %s3971_s24 = smov 0   ;;  %s3973_s25 = smov 0  }
  0x1b LB: > { %s3825_s5 = smov [#allocation6]   ;;  %s3988_s26 = sadd.s32 4294967295, %s3823_s25   ;;  %s3823_s25 = sphi %s3973_s25, %s4659_s25   ;;  %s3819_s24 = sphi %s3971_s24, %s4658_s24   ;;  %s3815_s30 = sphi %s3969_s30, %s4657_s30   ;;  %s3811_s4 = sphi %s3967_s4, %s4656_s4  }
  0x1c   : > { %s579_s1 = sshll.u32 %s3825_s5, 4  ;;  %p2872_p0 = scmp.ge.s32.totalorder %s3823_s25, 1  ;;  %s3993_s1 = int_to_ptr.vmem [resolvable:$true] %s579_s1 }
  0x1d   : > { %p4596_p1 = scmp.eq.s32.totalorder %s3988_s26, 0  ;;  %p561_p2 = scmp.lt.s32.totalorder %s3823_s25, 3 }
  0x1e   : > { %s3826_s6 = smov [#allocation9]   ;;  %s3827_s28 = smov [#allocation12]  }
  0x1f   : > { %p3995_p3 = pnand %p2872_p0, %p561_p2  ;;  %s611_s27 = sshll.u32 %s3826_s6, 4  ;;  %s4008_s27 = int_to_ptr.vmem [resolvable:$true] %s611_s27 }
  0x20   : > { %s667_s29 = sshll.u32 %s3827_s28, 4  ;;  %s4619_s5 = sld [smem:[#allocation24_spill]]  ;;  %s4010_s29 = int_to_ptr.vmem [resolvable:$true] %s667_s29 }
  0x21   : > { %s4617_s2 = scalar_select %p3995_p3, 1, 0 }
  0x22   : > { %p3272_p5 = pneg %p3995_p3 }
  0x24   : > { %p4004_p6 = pnand %p3272_p5, %p4596_p1 }
  0x26   : > { %s3547_s23 = scalar_lea.hbm %s4619_s5, 1024  ;;  %p4020_p8 = pneg %p4004_p6 }
  0x27   : > { %p3548_p7 = scmp.ne.s32.totalorder %s4619_s5, %s3547_s23  ;;  %p3554_p11 = scmp.lt.u32.totalorder %s3547_s23, %s4619_s5 }
  0x29   : > { %p3550_p9 = pnand %p4020_p8, %p3548_p7 }
  0x2b   : > { %p3551_p10 = pneg %p3550_p9 }
  0x2d   : > { %p3556_p12 = pnand %p3554_p11, %p3551_p10 }
  0x2f   : > { %3559 = shalt.err (!%p3556_p12)
}
  0x30   : > { %s3560_s20 = scalar_lea.vmem %s3993_s1, 1024  ;;  %p3568_p5 = scmp.lt.s32.totalorder %s3993_s1, %s3993_s1 }
  0x31   : > { %p3561_p13 = scmp.ne.s32.totalorder %s3993_s1, %s3560_s20  ;;  %p3569_p4 = scmp.lt.s32.totalorder %s3560_s20, %s3560_s20 }
  0x33   : > { %p3563_p0 = pnand %p3561_p13, %p4020_p8  ;;  %p3570_p7 = por %p3569_p4, %p3568_p5 }
  0x35   : > { %p3564_p2 = pneg %p3563_p0 }
  0x37   : > { %p3571_p9 = pnand %p3570_p7, %p3564_p2 }
  0x39   : > { %3574 = shalt.err (!%p3571_p9)
}
  0x3a   : > { %s4590_s22 = smov 64   ;;  %s4592_s18 = smov 4  }
  0x3b   : > { %3275 = dma.hbm_to_vmem [thread:$0]  (!%p4004_p6), %s4619_s5, 1024, %s3993_s1, [#allocation7], %s4590_s22, %s4590_s22, %s4592_s18  }
  0x3c   : > { %s4621_s17 = sld [smem:[#allocation28_spill]] }
  0x42   : > { %s3575_s20 = scalar_lea.hbm %s4621_s17, 1024 }
  0x43   : > { %p3576_p4 = scmp.ne.s32.totalorder %s4621_s17, %s3575_s20  ;;  %p3582_p12 = scmp.lt.u32.totalorder %s3575_s20, %s4621_s17 }
  0x45   : > { %p3578_p10 = pnand %p3576_p4, %p4020_p8 }
  0x47   : > { %p3579_p11 = pneg %p3578_p10 }
  0x49   : > { %p3584_p13 = pnand %p3582_p12, %p3579_p11 }
  0x4b   : > { %3587 = shalt.err (!%p3584_p13)
}
  0x4c   : > { %s3588_s1 = scalar_lea.vmem %s4008_s27, 1024  ;;  %p3596_p7 = scmp.lt.s32.totalorder %s4008_s27, %s4008_s27 }
  0x4d   : > { %p3589_p0 = scmp.ne.s32.totalorder %s4008_s27, %s3588_s1  ;;  %p3597_p9 = scmp.lt.s32.totalorder %s3588_s1, %s3588_s1 }
  0x4f   : > { %p3591_p2 = pnand %p3589_p0, %p4020_p8  ;;  %p3598_p4 = por %p3597_p9, %p3596_p7 }
  0x51   : > { %p3592_p5 = pneg %p3591_p2 }
  0x53   : > { %p3599_p10 = pnand %p3598_p4, %p3592_p5 }
  0x55   : > { %3602 = shalt.err (!%p3599_p10)
}
  0x56   : > { %3281 = dma.hbm_to_vmem [thread:$0]  (!%p4004_p6), %s4621_s17, 1024, %s4008_s27, [#allocation10], %s4590_s22, %s4590_s22, %s4592_s18  }
  0x57   : > { %s3603_s23 = scalar_lea.hbm %s4579_s19, 4096 }
  0x58   : > { %p3604_p11 = scmp.ne.s32.totalorder %s4579_s19, %s3603_s23  ;;  %p3610_p0 = scmp.lt.u32.totalorder %s3603_s23, %s4579_s19 }
  0x5a   : > { %p3606_p12 = pnand %p3604_p11, %p4020_p8 }
  0x5c   : > { %p3607_p13 = pneg %p3606_p12 }
  0x5e   : > { %p3612_p2 = pnand %p3610_p0, %p3607_p13 }
  0x60   : > { %3615 = shalt.err (!%p3612_p2)
}
  0x61   : > { %s3616_s27 = scalar_lea.vmem %s4010_s29, 4096  ;;  %p3624_p4 = scmp.lt.s32.totalorder %s4010_s29, %s4010_s29 }
  0x62   : > { %p3617_p5 = scmp.ne.s32.totalorder %s4010_s29, %s3616_s27  ;;  %p3625_p10 = scmp.lt.s32.totalorder %s3616_s27, %s3616_s27 }
  0x64   : > { %p3619_p7 = pnand %p3617_p5, %p4020_p8  ;;  %p3626_p11 = por %p3625_p10, %p3624_p4 }
  0x66   : > { %p3620_p9 = pneg %p3619_p7 }
  0x68   : > { %p3627_p12 = pnand %p3626_p11, %p3620_p9 }
  0x6a   : > { %3630 = shalt.err (!%p3627_p12)
}
  0x6b   : > { %s3830_s1 = smov 256   ;;  %s3831_s13 = smov 16  }
  0x6c   : > { %3287 = dma.hbm_to_vmem [thread:$0]  (!%p4004_p6), %s4579_s19, 4096, %s4010_s29, [#allocation13], %s3830_s1, %s3830_s1, %s3831_s13  }
  0x6d   : > { %s3832_s16 = smov [#allocation8]   ;;  %s3833_s3 = smov [#allocation11]  }
  0x6e   : > { %s595_s23 = sshll.u32 %s3832_s16, 4  ;;  %s627_s0 = sshll.u32 %s3833_s3, 4  ;;  %s596_s23 = int_to_ptr.vmem [resolvable:$true] %s595_s23  ;;  %s628_s0 = int_to_ptr.vmem [resolvable:$true] %s627_s0 }
  0x6f   : > { %s4622_s27 = sld [smem:[#allocation26_spill]] }
  0x75   : > { %s3631_s22 = scalar_lea.hbm %s4622_s27, 1024 }
  0x76   : > { %p3632_p13 = scmp.ne.s32.totalorder %s4622_s27, %s3631_s22  ;;  %p3638_p5 = scmp.lt.u32.totalorder %s3631_s22, %s4622_s27 }
  0x78   : > { %p3634_p0 = pnand %p3632_p13, %p4020_p8 }
  0x7a   : > { %p3635_p2 = pneg %p3634_p0 }
  0x7c   : > { %p3640_p7 = pnand %p3638_p5, %p3635_p2 }
  0x7e   : > { %3643 = shalt.err (!%p3640_p7)
}
  0x7f   : > { %s3644_s29 = scalar_lea.vmem %s596_s23, 1024  ;;  %p3652_p11 = scmp.lt.s32.totalorder %s596_s23, %s596_s23 }
  0x80   : > { %p3645_p9 = scmp.ne.s32.totalorder %s596_s23, %s3644_s29  ;;  %p3653_p12 = scmp.lt.s32.totalorder %s3644_s29, %s3644_s29 }
  0x82   : > { %p3647_p4 = pnand %p3645_p9, %p4020_p8  ;;  %p3654_p1 = por %p3653_p12, %p3652_p11 }
  0x84   : > { %p3648_p10 = pneg %p3647_p4 }
  0x86   : > { %p3655_p3 = pnand %p3654_p1, %p3648_p10 }
  0x88   : > { %3658 = shalt.err (!%p3655_p3)
}
  0x89   : > { %s4623_s5 = smov 4   ;;  %s4624_s18 = smov 64  }
  0x8a   : > { %3278 = dma.hbm_to_vmem [thread:$0]  (!%p4004_p6), %s4622_s27, 1024, %s596_s23, [#allocation7], %s4624_s18, %s4624_s18, %s4623_s5  }
  0x8b   : > { %s3659_s13 = scalar_lea.hbm %s4569_s9, 1024 }
  0x8c   : > { %p3660_p1 = scmp.ne.s32.totalorder %s4569_s9, %s3659_s13  ;;  %p3666_p0 = scmp.lt.u32.totalorder %s3659_s13, %s4569_s9 }
  0x8e   : > { %p3662_p3 = pnand %p3660_p1, %p4020_p8 }
  0x90   : > { %p3663_p13 = pneg %p3662_p3 }
  0x92   : > { %p3668_p2 = pnand %p3666_p0, %p3663_p13 }
  0x94   : > { %3671 = shalt.err (!%p3668_p2)
}
  0x95   : > { %s3672_s28 = scalar_lea.vmem %s628_s0, 1024  ;;  %p3680_p4 = scmp.lt.s32.totalorder %s628_s0, %s628_s0 }
  0x96   : > { %p3673_p5 = scmp.ne.s32.totalorder %s628_s0, %s3672_s28  ;;  %p3681_p10 = scmp.lt.s32.totalorder %s3672_s28, %s3672_s28 }
  0x98   : > { %p3675_p7 = pnand %p3673_p5, %p4020_p8  ;;  %p3682_p11 = por %p3681_p10, %p3680_p4 }
  0x9a   : > { %p3676_p9 = pneg %p3675_p7 }
  0x9c   : > { %p3683_p12 = pnand %p3682_p11, %p3676_p9 }
  0x9e   : > { %3686 = shalt.err (!%p3683_p12)
}
  0x9f   : > { %3284 = dma.hbm_to_vmem [thread:$0]  (!%p4004_p6), %s4569_s9, 1024, %s628_s0, [#allocation10], %s4624_s18, %s4624_s18, %s4623_s5  }
  0xa0   : > { %s3834_s29 = smov [#allocation14]   ;;  %s3687_s1 = scalar_lea.hbm %s4581_s21, 4096 }
  0xa1   : > { %s683_s12 = sshll.u32 %s3834_s29, 4  ;;  %p3688_p1 = scmp.ne.s32.totalorder %s4581_s21, %s3687_s1  ;;  %s684_s12 = int_to_ptr.vmem [resolvable:$true] %s683_s12 }
  0xa2   : > { %p3694_p0 = scmp.lt.u32.totalorder %s3687_s1, %s4581_s21 }
  0xa3   : > { %p3690_p3 = pnand %p3688_p1, %p4020_p8 }
  0xa5   : > { %p3691_p13 = pneg %p3690_p3 }
  0xa7   : > { %p3696_p2 = pnand %p3694_p0, %p3691_p13 }
  0xa9   : > { %3699 = shalt.err (!%p3696_p2)
}
  0xaa   : > { %s3700_s0 = scalar_lea.vmem %s684_s12, 4096  ;;  %p3708_p4 = scmp.lt.s32.totalorder %s684_s12, %s684_s12 }
  0xab   : > { %p3701_p5 = scmp.ne.s32.totalorder %s684_s12, %s3700_s0  ;;  %p3709_p10 = scmp.lt.s32.totalorder %s3700_s0, %s3700_s0 }
  0xad   : > { %p3703_p7 = pnand %p3701_p5, %p4020_p8  ;;  %p3710_p11 = por %p3709_p10, %p3708_p4 }
  0xaf   : > { %p3704_p9 = pneg %p3703_p7 }
  0xb1   : > { %p3711_p12 = pnand %p3710_p11, %p3704_p9 }
  0xb3   : > { %3714 = shalt.err (!%p3711_p12)
}
  0xb4   : > { %3290 = dma.hbm_to_vmem [thread:$0]  (!%p4004_p6), %s4581_s21, 4096, %s684_s12, [#allocation13], %s4624_s18, %s4624_s18, %s4623_s5  }
  0xb5   : > { %s2871_s7 = sadd.s32 4294967294, %s3823_s25   ;;  %s4158_s6 = sadd.s32 1, %s3823_s25  }
  0xb6   : > { %s46_s23 = ssub.s32 %s3823_s25, %s4158_s6  ;;  %s49_s20 = sadd.s32 1, %s3819_s24 }
  0xb7   : > { %p47_p8 = scmp.eq.s32.totalorder %s46_s23, 0  ;;  %p56_p1 = scmp.ne.s32.totalorder %s3819_s24, %s3815_s30 }
  0xb8   : > { %p57_p3 = scmp.eq.s32.totalorder %s3823_s25, 0  ;;  %p62_p13 = scmp.ne.s32.totalorder %s3815_s30, %s3811_s4 }
  0xb9   : > { %s4169_s29 = scalar_select %p47_p8, %s3819_s24, %s49_s20  }
  0xba   : > { %p4171_p0 = por %p57_p3, %p56_p1  ;;  %p4626_p2 = scmp.eq.s32.totalorder %s3988_s26, 0 }
  0xbb   : > { %p548_p5 = scmp.eq.s32.totalorder %s3988_s26, 1  ;;  %p554_p7 = scmp.eq.s32.totalorder %s2871_s7, 1 }
  0xbc   : > { %p4177_p6 = por %p4626_p2, %p62_p13  ;;  %p3305_p9 = scmp.lt.s32.totalorder %s3823_s25, 2 }
  0xbd   : > { %s700_s18 = sand.u32 1, %s3819_s24   ;;  %p4184_p4 = por %p548_p5, %p56_p1 }
  0xbe   : > { %p4188_p10 = por %p554_p7, %p62_p13  ;;  %s2880_s1 = sshll.u32 %s700_s18, 4 }
  0xbf   : > { %s4628_s12 = scalar_select %p4184_p4, 1, 0 }
  0xc0   : > { %s4629_s22 = scalar_select %p4188_p10, 1, 0 }
  0xc1   : > { %s3018_s13 = sshll.u32 %s3823_s25, 8  ;;  %s4630_s16 = sld [smem:[#allocation21_spill]] }
  0xc2   : > { %s704_s3 = scalar_lea.vmem [#allocation3], %s2880_s1  ;;  %p4202_p11 = pnand %p3305_p9, %p4171_p0 }
  0xc3   : > { %s711_s28 = sshll.u32 %s704_s3, 4  ;;  %s4206_s23 = scalar_lea.sflag [#allocation4], %s700_s18  ;;  %s4198_s28 = int_to_ptr.vmem [resolvable:$true] %s711_s28 }
  0xc4   : > { %p3717_p8 = pneg %p4202_p11 }
  0xc7   : > { %s4196_s0 = scalar_lea.hbm %s4630_s16, %s3018_s13  ;;  %s3720_s17 = scalar_lea.hbm %s4630_s16, 512 }
  0xc8   : > { %s3715_s20 = scalar_lea.hbm %s4196_s0, 256  ;;  %p3721_p13 = scmp.lt.u32.totalorder %s4196_s0, %s4630_s16 }
  0xc9   : > { %p3716_p12 = scmp.ne.s32.totalorder %s4196_s0, %s3715_s20  ;;  %p3722_p0 = scmp.lt.u32.totalorder %s3720_s17, %s3715_s20 }
  0xca   : > { %p3724_p5 = scmp.lt.u32.totalorder %s3715_s20, %s4196_s0 }
  0xcb   : > { %p3718_p1 = pnand %p3717_p8, %p3716_p12  ;;  %p3723_p2 = por %p3722_p0, %p3721_p13 }
  0xcd   : > { %p3719_p3 = pneg %p3718_p1  ;;  %p3725_p7 = por %p3724_p5, %p3723_p2 }
  0xcf   : > { %p3726_p9 = pnand %p3725_p7, %p3719_p3 }
  0xd1   : > { %3729 = shalt.err (!%p3726_p9)
}
  0xd2   : > { %s3730_s18 = scalar_lea.vmem %s4198_s28, 256  ;;  %s3835_s3 = smov [#allocation3]  }
  0xd3   : > { %p3731_p12 = scmp.ne.s32.totalorder %s4198_s28, %s3730_s18  ;;  %s3735_s1 = sshll.u32 %s3835_s3, 4  ;;  %s3736_s1 = int_to_ptr.vmem [resolvable:$false] %s3735_s1 }
  0xd4   : > { %s3737_s13 = scalar_lea.vmem %s3736_s1, 512  ;;  %p3738_p4 = scmp.lt.s32.totalorder %s4198_s28, %s3736_s1 }
  0xd5   : > { %p3733_p1 = pnand %p3731_p12, %p3717_p8  ;;  %p3739_p13 = scmp.lt.s32.totalorder %s3737_s13, %s3730_s18 }
  0xd7   : > { %p3734_p10 = pneg %p3733_p1  ;;  %p3740_p0 = por %p3739_p13, %p3738_p4 }
  0xd9   : > { %p3741_p2 = pnand %p3740_p0, %p3734_p10 }
  0xdb   : > { %3744 = shalt.err (!%p3741_p2)
}
  0xdc   : > { %s3836_s20 = smov 128   ;;  %s3837_s17 = smov 8  }
  0xdd   : > { %3294 = dma.hbm_to_vmem [thread:$0]  (!%p4202_p11), %s4196_s0, 256, %s4198_s28, %s4206_s23, %s3836_s20, %s3836_s20, %s3837_s17  }
  0xde   : > { %p4632_p8 = scmp.ne.s32.totalorder %s4617_s2, 0 }
  0xdf   : > { %s4237_s14 = sand.u32 (!%p4632_p8), 1, %s3815_s30  }
  0xe0   : > { %723 = sbr.rel (%p4632_p8) target bundleno = 4944 (0x1350), region = 112  ;;  %s2884_s15 = sshll.u32 (!%p4632_p8), %s4237_s14, 4 }
  0xe1   : > { %s726_s18 = scalar_lea.sflag (!%p4632_p8), [#allocation4], %s4237_s14  ;;  %s4243_s3 = scalar_lea.vmem (!%p4632_p8), [#allocation3], %s2884_s15 }
  0xe7   : > { %3790 = dma.done.wait (%p4177_p6), %s726_s18, 256  }
  0xe8   : > { %3792 = vsyncadd (%p4177_p6), %s726_s18, 4294967040  ;;  %p4633_p4 = scmp.eq.s32.totalorder %s3988_s26, 0 }
  0xea   : > { %3794 = dma.done.wait (%p4633_p4), [#allocation7], 2048   ;;  %p4634_p10 = pmov %p4633_p4 }
  0xeb   : > { %p4635_p11 = pmov %p4633_p4 }
  0xec   : > { %3796 = vsyncadd (%p4634_p10), [#allocation7], 4294965248 }
  0xed   : > { %3798 = dma.done.wait (%p4635_p11), [#allocation10], 2048   ;;  %p4636_p3 = pmov %p4633_p4 }
  0xef   : > { %3800 = vsyncadd (%p4636_p3), [#allocation10], 4294965248  ;;  %p4637_p5 = pmov %p4636_p3 }
  0xf0   : > { %p4638_p7 = pmov %p4636_p3 }
  0xf1   : > { %3802 = dma.done.wait (%p4637_p5), [#allocation13], 8192  }
  0xf2   : > { %3804 = vsyncadd (%p4638_p7), [#allocation13], 4294959104  ;;  %v817_v0 = vld [vmem:[%s4243_s3] sm:$0xff]  ;;  %v818_v1 = vld [vmem:[%s4243_s3 + $0x8] sm:$0xff]  ;;  %v3838_v5 = vmov 0.0   ;;  %vm3839_vm0 = vmmov 0  }
  0xf3   : > { %821 = vadd.xlane.f32.xlu0 %v817_v0  ;;  %v3365_v2 = vld [vmem:[#allocation6] sm:$0xff]   ;;  %v3367_v4 = vld [vmem:[#allocation6 + $0x8] sm:$0xff]   ;;  %3116 = vmatprep.subr.bf16.mxu0 %v3838_v5  ;;  %v3369_v15 = vld [vmem:[#allocation6 + $0x10] sm:$0xff]   ;;  %s4639_s0 = sld [smem:[#allocation22_spill]]  ;;  %s4640_s23 = sld [smem:[#allocation23_spill]]  ;;  %vm1200_vm1 = vcmask 261120  }
  0xf4   : > { %v3366_v3 = vld [vmem:[#allocation8] sm:$0xff]   ;;  %3136 = vmatprep.subr.bf16.mxu1 %v3838_v5  ;;  %3117 = vmatpush3.bf16.msra.mxu0 %v3365_v2  ;;  %v3368_v14 = vld [vmem:[#allocation8 + $0x8] sm:$0xff]   ;;  %v3370_v16 = vld [vmem:[#allocation8 + $0x10] sm:$0xff]   ;;  %s4641_s20 = sld [smem:[#allocation25_spill]]  ;;  %s4642_s2 = sld [smem:[#allocation27_spill]]  ;;  %vm1250_vm2 = vcmask 130048  }
  0xf5   : > { %3137 = vmatpush3.bf16.msra.mxu1 %v3366_v3  ;;  %3118 = vmatprep.subr.bf16.mxu0 %v3838_v5  ;;  %v3371_v17 = vld [vmem:[#allocation6 + $0x18] sm:$0xff]   ;;  %v3373_v19 = vld [vmem:[#allocation6 + $0x20] sm:$0xff]   ;;  %v3375_v21 = vld [vmem:[#allocation6 + $0x28] sm:$0xff]   ;;  %s3840_s28 = smov 96   ;;  %s3841_s7 = smov 64   ;;  %vm1454_vm3 = vcmask 523520  }
  0xf6   : > { %3138 = vmatprep.subr.bf16.mxu1 %v3838_v5  ;;  %v3372_v18 = vld [vmem:[#allocation8 + $0x18] sm:$0xff]   ;;  %v3374_v20 = vld [vmem:[#allocation8 + $0x20] sm:$0xff]   ;;  %3132 = vmatprep.mubr.msk.bf16.mxu0 %vm3839_vm0, %v3838_v5  ;;  %v3376_v22 = vld [vmem:[#allocation8 + $0x28] sm:$0xff]   ;;  %vm1588_vm4 = vcmask 785920   ;;  %vm1722_vm5 = vcmask 1048320   ;;  %s4645_s17 = sld [smem:[#allocation31_spill]] }
  0xf7   : > { %823 = vadd.xlane.f32.xlu0 %v818_v1  ;;  %3152 = vmatprep.mubr.msk.bf16.mxu1 %vm3839_vm0, %v3838_v5  ;;  %v3377_v23 = vld [vmem:[#allocation6 + $0x30] sm:$0xff]   ;;  %v3379_v25 = vld [vmem:[#allocation6 + $0x38] sm:$0xff]   ;;  %v3381_v43 = vld [vmem:[#allocation9] sm:$0xff]   ;;  %s4646_s5 = sld [smem:[#allocation32_spill]]  ;;  %s4649_s18 = sld [smem:[#allocation35_spill]] }
  0xf8   : > { %3119 = vmatpush3.bf16.msra.mxu0 %v3367_v4  ;;  %v3378_v24 = vld [vmem:[#allocation8 + $0x30] sm:$0xff]   ;;  %v3380_v26 = vld [vmem:[#allocation8 + $0x38] sm:$0xff]   ;;  %v3382_v45 = vld [vmem:[#allocation9 + $0x8] sm:$0xff]   ;;  %s4651_s1 = sld [smem:[#allocation37_spill]]  ;;  %s815_s13 = scalar_lea.vmem [#allocation15], %s2884_s15 }
  0xf9   : > { %3120 = vmatprep.subr.bf16.mxu0 %v3838_v5  ;;  %3139 = vmatpush3.bf16.msra.mxu1 %v3368_v14  ;;  %v2892_v35 = vld [vmem:[%s4639_s0] ss:$0 sm:$0xff]  ;;  %v3384_v47 = vld [vmem:[#allocation9 + $0x18] sm:$0xff]   ;;  %v3385_v48 = vld [vmem:[#allocation9 + $0x20] sm:$0xff]   ;;  %s4650_s0 = sld [smem:[#allocation36_spill]]  ;;  %s2728_s15 = scalar_lea.sflag [#allocation5], %s4237_s14 }
  0xfa   : > { %3140 = vmatprep.subr.bf16.mxu1 %v3838_v5  ;;  %v2893_v39 = vld [vmem:[%s4640_s23] ss:$0 sm:$0xff]  ;;  %v3386_v49 = vld [vmem:[#allocation9 + $0x28] sm:$0xff]   ;;  %v3388_v51 = vld [vmem:[#allocation9 + $0x38] sm:$0xff]   ;;  %s3842_s23 = smov 32   ;;  %p4653_p9 = scmp.ne.s32.totalorder %s4628_s12, 0 }
  0xfb   : > { %v3383_v46 = vld [vmem:[#allocation9 + $0x10] sm:$0xff]  }
  0xfc   : > { %3121 = vmatpush3.bf16.msra.mxu0 %v3369_v15  ;;  %v3387_v50 = vld [vmem:[#allocation9 + $0x30] sm:$0xff]  }
  0xfd   : > { %3141 = vmatpush3.bf16.msra.mxu1 %v3370_v16  ;;  %3122 = vmatprep.subr.bf16.mxu0 %v3838_v5  ;;  %v2894_v52 = vld [vmem:[%s4641_s20] ss:$0 sm:$0xff]  ;;  %s3019_s20 = sshll.u32 %s3988_s26, 8  ;;  %s3844_s26 = smov [#allocation15]  }
  0xfe   : > { %3142 = vmatprep.subr.bf16.mxu1 %v3838_v5  ;;  %v2903_v54 = vld [vmem:[%s4642_s2] ss:$0 sm:$0xff]  ;;  %s4643_s2 = sld [smem:[#allocation29_spill]] }
 0x100   : > { %3123 = vmatpush3.bf16.msra.mxu0 %v3371_v17 }
 0x101   : > { %3143 = vmatpush3.bf16.msra.mxu1 %v3372_v18  ;;  %3124 = vmatprep.subr.bf16.mxu0 %v3838_v5 }
 0x102   : > { %3144 = vmatprep.subr.bf16.mxu1 %v3838_v5 }
 0x104   : > { %3125 = vmatpush3.bf16.msra.mxu0 %v3373_v19 }
 0x105   : > { %3145 = vmatpush3.bf16.msra.mxu1 %v3374_v20  ;;  %3126 = vmatprep.subr.bf16.mxu0 %v3838_v5 }
 0x106   : > { %3146 = vmatprep.subr.bf16.mxu1 %v3838_v5 }
 0x108   : > { %3127 = vmatpush3.bf16.msra.mxu0 %v3375_v21 }
 0x109   : > { %3147 = vmatpush3.bf16.msra.mxu1 %v3376_v22  ;;  %3128 = vmatprep.subr.bf16.mxu0 %v3838_v5 }
 0x10a   : > { %3148 = vmatprep.subr.bf16.mxu1 %v3838_v5 }
 0x10c   : > { %3129 = vmatpush3.bf16.msra.mxu0 %v3377_v23 }
 0x10d   : > { %3149 = vmatpush3.bf16.msra.mxu1 %v3378_v24  ;;  %3130 = vmatprep.subr.bf16.mxu0 %v3838_v5 }
 0x10e   : > { %3150 = vmatprep.subr.bf16.mxu1 %v3838_v5 }
 0x110   : > { %3131 = vmatpush3.bf16.msra.mxu0 %v3379_v25 }
 0x111   : > { %3151 = vmatpush3.bf16.msra.mxu1 %v3380_v26  ;;  %3156 = vmatprep.subr.bf16.mxu0 %v3838_v5 }
 0x112   : > { %3176 = vmatprep.subr.bf16.mxu1 %v3838_v5 }
 0x180   : > { %v822_v6 = vpop.xlane.xlu0 %821 }
 0x181   : > { %v826_v7 = vmul.f32 0.0078125, %v822_v6  ;;  %v2912_v6 = vld [vmem:[%s4568_s8] ss:$0 sm:$0xff] }
 0x183   : > { %v828_v8 = vsub.f32 %v817_v0, %v826_v7 }
 0x184   : > { %v824_v9 = vpop.xlane.xlu0 %823 }
 0x185   : > { %v827_v10 = vmul.f32 0.0078125, %v824_v9  ;;  %v830_v11 = vmul.f32 %v828_v8, %v828_v8 }
 0x187   : > { %v829_v12 = vsub.f32 %v818_v1, %v827_v10  ;;  %832 = vadd.xlane.f32.xlu1 %v830_v11 }
 0x189   : > { %v831_v13 = vmul.f32 %v829_v12, %v829_v12 }
 0x18b   : > { %834 = vadd.xlane.f32.xlu1 %v831_v13 }
 0x214   : > { %v833_v27 = vpop.xlane.xlu1 %832 }
 0x215   : > { %v836_v28 = vmul.f32 0.0078125, %v833_v27 }
 0x217   : > { %v838_v29 = vadd.f32 1e-05, %v836_v28 }
 0x218   : > { %v835_v30 = vpop.xlane.xlu1 %834 }
 0x219   : > { %3477 = vrsqrt.f32 %v838_v29  ;;  %v837_v31 = vmul.f32 0.0078125, %v835_v30 }
 0x21b   : > { %v839_v32 = vadd.f32 1e-05, %v837_v31 }
 0x21d   : > { %3479 = vrsqrt.f32 %v839_v32 }
 0x223   : > { %v3478_v33 = vpop.eup %3477 }
 0x224   : > { %v842_v34 = vmul.f32 %v3478_v33, %v828_v8 }
 0x226   : > { %v850_v38 = vmul.f32 %v2892_v35, %v842_v34 }
 0x227   : > { %v3480_v36 = vpop.eup %3479 }
 0x228   : > { %v843_v37 = vmul.f32 %v3480_v36, %v829_v12  ;;  %v858_v41 = vadd.f32 %v2893_v39, %v850_v38 }
 0x22a   : > { %v851_v40 = vmul.f32 %v2892_v35, %v843_v37 }
 0x22c   : > { %v859_v42 = vadd.f32 %v2893_v39, %v851_v40 }
 0x22e   : > { %v860_v44 = vpack.c.bf16 %v859_v42, %v858_v41 }
 0x230   : > { %3133 = vmatmul.mubr.bf16.vlgmr.msra.gmra.mrb[0].mxu0 %v860_v44  ;;  %3153 = vmatmul.mubr.bf16.vlgmr.msra.gmra.mrb[0].mxu1 %v860_v44 }
 0x231   : > { %3157 = vmatpush3.bf16.msra.mxu0 %v3381_v43  ;;  %3172 = vmatprep.mubr.msk.bf16.mxu0 %vm3839_vm0, %v3838_v5 }
 0x232   : > { %3158 = vmatprep.subr.bf16.mxu0 %v3838_v5  ;;  %3178 = vmatprep.mubr.msk.bf16.mxu1 %vm3839_vm0, %v3838_v5 }
 0x235   : > { %3159 = vmatpush3.bf16.msra.mxu0 %v3382_v45 }
 0x236   : > { %3160 = vmatprep.subr.bf16.mxu0 %v3838_v5 }
 0x239   : > { %3161 = vmatpush3.bf16.msra.mxu0 %v3383_v46 }
 0x23a   : > { %3162 = vmatprep.subr.bf16.mxu0 %v3838_v5 }
 0x23d   : > { %3163 = vmatpush3.bf16.msra.mxu0 %v3384_v47 }
 0x23e   : > { %3164 = vmatprep.subr.bf16.mxu0 %v3838_v5 }
 0x241   : > { %3165 = vmatpush3.bf16.msra.mxu0 %v3385_v48 }
 0x242   : > { %3166 = vmatprep.subr.bf16.mxu0 %v3838_v5 }
 0x245   : > { %3167 = vmatpush3.bf16.msra.mxu0 %v3386_v49 }
 0x246   : > { %3168 = vmatprep.subr.bf16.mxu0 %v3838_v5 }
 0x249   : > { %3169 = vmatpush3.bf16.msra.mxu0 %v3387_v50 }
 0x24a   : > { %3170 = vmatprep.subr.bf16.mxu0 %v3838_v5 }
 0x24d   : > { %3171 = vmatpush3.bf16.msra.mxu0 %v3388_v51 }
 0x24e   : > { %3224 = vmatprep.subr.bf16.mxu0 %v3838_v5 }
 0x250   : > { %3173 = vmatmul.mubr.bf16.vlgmr.msra.gmra.mrb[4].mxu0 %v860_v44 }
 0x251   : > { %3240 = vmatprep.mubr.msk.bf16.mxu0 %vm3839_vm0, %v3838_v5 }
 0x303   : > { %v966_v53 = vpop.f32.mrb[0].mxu0  ;;  %v1078_v55 = vpop.f32.mrb[0].mxu1 }
 0x304   : > { %v3134_v56 = vpop.f32.mrb[1].mxu0  ;;  %v3154_v57 = vpop.f32.mrb[1].mxu1  ;;  %v967_v60 = vadd.f32 %v2894_v52, %v966_v53  ;;  %v1079_v61 = vadd.f32 %v2903_v54, %v1078_v55 }
 0x305   : > { %v969_v58 = vpop.f32.mrb[2].mxu0  ;;  %v1081_v59 = vpop.f32.mrb[2].mxu1 }
 0x306   : > { %v970_v62 = vadd.f32 %v2894_v52, %v969_v58  ;;  %v1082_v63 = vadd.f32 %v2903_v54, %v1081_v59  ;;  %v3135_v0 = vpop.f32.mrb[3].mxu0  ;;  %v3155_v1 = vpop.f32.mrb[3].mxu1 }
 0x308   : > { %v4311_v2 = vpack.c.bf16 %v970_v62, %v967_v60  ;;  %v4313_v3 = vpack.c.bf16 %v1082_v63, %v1079_v61 }
 0x30a   : > { %v1205_v4 = vsel %vm1200_vm1, %v4313_v3, 0 }
 0x30b   : > { %3177 = vmatpush3.bf16.xpose.msra.mxu1 %v1205_v4 }
 0x30c   : > { %3182 = vmatprep.subr.bf16.mxu1 %v3838_v5 }
 0x312   : > { %3179 = vmatmul.mubr.msk.bf16.vlgmr.msra.gmra.mrb[4].mxu1 %vm1200_vm1, %v4311_v2 }
 0x313   : > { %3184 = vmatprep.mubr.msk.bf16.mxu1 %vm3839_vm0, %v3838_v5 }
 0x323   : > { %v1190_v7 = vpop.f32.mrb[4].mxu0 }
 0x324   : > { %v3174_v8 = vpop.f32.mrb[5].mxu0  ;;  %v1191_v10 = vadd.f32 %v2912_v6, %v1190_v7 }
 0x325   : > { %v1193_v9 = vpop.f32.mrb[6].mxu0 }
 0x326   : > { %v1194_v11 = vadd.f32 %v2912_v6, %v1193_v9  ;;  %v3175_v12 = vpop.f32.mrb[7].mxu0 }
 0x328   : > { %v4325_v13 = vpack.c.bf16 %v1194_v11, %v1191_v10 }
 0x32a   : > { %3183 = vmatpush3.bf16.msra.mxu1 %v4325_v13 }
 0x32b   : > { %3188 = vmatprep.subr.bf16.mxu1 %v3838_v5 }
 0x3e5   : > { %v1241_v14 = vpop.f32.mrb[4].mxu1 }
 0x3e6   : > { %v1248_v15 = vmul.f32 0.17677669, %v1241_v14  ;;  %v3180_v16 = vpop.f32.mrb[5].mxu1 }
 0x3e7   : > { %v1244_v17 = vpop.f32.mrb[6].mxu1 }
 0x3e8   : > { %v1249_v18 = vmul.f32 0.17677669, %v1244_v17  ;;  %v3181_v19 = vpop.f32.mrb[7].mxu1  ;;  %v1251_v20 = vsel %vm1250_vm2, %v1248_v15, -inf }
 0x3e9   : > { %1252 = vmax.xlane.f32.xlu0 %v1251_v20 }
 0x3ea   : > { %v1254_v21 = vsel %vm1250_vm2, %v1249_v18, -inf }
 0x3eb   : > { %1255 = vmax.xlane.f32.xlu1 %v1254_v21 }
 0x476   : > { %v1253_v22 = vpop.xlane.xlu0 %1252 }
 0x477   : > { %v1257_v23 = vsub.f32 %v1248_v15, %v1253_v22 }
 0x478   : > { %v1256_v24 = vpop.xlane.xlu1 %1255 }
 0x479   : > { %v1259_v25 = vmul.f32 1.442695, %v1257_v23  ;;  %v1258_v26 = vsub.f32 %v1249_v18, %v1256_v24 }
 0x47b   : > { %3481 = vpow2.f32 %v1259_v25  ;;  %v1261_v27 = vmul.f32 1.442695, %v1258_v26 }
 0x47d   : > { %3483 = vpow2.f32 %v1261_v27 }
 0x485   : > { %v3482_v28 = vpop.eup %3481 }
 0x486   : > { %v1263_v29 = vsel %vm1250_vm2, %v3482_v28, 0.0 }
 0x487   : > { %v3484_v30 = vpop.eup %3483  ;;  %1264 = vadd.xlane.f32.xlu0 %v1263_v29 }
 0x488   : > { %v1266_v31 = vsel %vm1250_vm2, %v3484_v30, 0.0 }
 0x489   : > { %1267 = vadd.xlane.f32.xlu1 %v1266_v31 }
 0x49a   : > { %1321 = vrot.lane.b32.xlu1 %v4311_v2, %s3840_s28 }
 0x49d   : > { %1324 = vrot.lane.b32.xlu0 %v4313_v3, %s3840_s28 }
 0x514   : > { %v1265_v32 = vpop.xlane.xlu0 %1264 }
 0x515   : > { %3485 = vrcp.f32 %v1265_v32 }
 0x516   : > { %v1268_v33 = vpop.xlane.xlu1 %1267 }
 0x517   : > { %3487 = vrcp.f32 %v1268_v33 }
 0x518   : > { %v1325_v38 = vpop.permute.xlu0 %1324 }
 0x519   : > { %v1330_v40 = vsel %vm1200_vm1, %v1325_v38, 0 }
 0x51a   : > { %v1322_v41 = vpop.permute.xlu1 %1321 }
 0x51f   : > { %v3486_v34 = vpop.eup %3485 }
 0x520   : > { %v1271_v36 = vmul.f32 %v3486_v34, %v3482_v28 }
 0x521   : > { %v3488_v35 = vpop.eup %3487 }
 0x522   : > { %v1272_v37 = vmul.f32 %v3488_v35, %v3484_v30 }
 0x524   : > { %v1273_v39 = vpack.c.bf16 %v1272_v37, %v1271_v36 }
 0x526   : > { %3185 = vmatmul.mubr.msk.bf16.vlgmr.msra.gmra.mrb[8].mxu1 %vm1250_vm2, %v1273_v39 }
 0x527   : > { %3189 = vmatpush3.bf16.xpose.msra.mxu1 %v1330_v40  ;;  %3190 = vmatprep.mubr.msk.bf16.mxu1 %vm3839_vm0, %v3838_v5 }
 0x528   : > { %3194 = vmatprep.subr.bf16.mxu1 %v3838_v5 }
 0x52e   : > { %3191 = vmatmul.mubr.msk.bf16.vlgmr.msra.gmra.mrb[12].mxu1 %vm1200_vm1, %v1322_v41 }
 0x52f   : > { %3196 = vmatprep.mubr.msk.bf16.mxu1 %vm3839_vm0, %v3838_v5 }
 0x5f9   : > { %v1311_v42 = vpop.f32.mrb[8].mxu1 }
 0x5fa   : > { %1318 = vst.msk [vmem:[#allocation2] sm:$0xff] %vm1200_vm1, %v1311_v42  ;;  %v3186_v43 = vpop.f32.mrb[9].mxu1 }
 0x5fb   : > { %v1314_v44 = vpop.f32.mrb[10].mxu1 }
 0x5fc   : > { %1319 = vst.msk [vmem:[#allocation2 + $0x8] sm:$0xff] %vm1200_vm1, %v1314_v44  ;;  %v3187_v45 = vpop.f32.mrb[11].mxu1 }
 0x601   : > { %v1366_v46 = vpop.f32.mrb[12].mxu1 }
 0x602   : > { %v1373_v47 = vmul.f32 0.17677669, %v1366_v46  ;;  %v3192_v48 = vpop.f32.mrb[13].mxu1 }
 0x603   : > { %v1369_v49 = vpop.f32.mrb[14].mxu1 }
 0x604   : > { %v1374_v50 = vmul.f32 0.17677669, %v1369_v49  ;;  %v3193_v51 = vpop.f32.mrb[15].mxu1  ;;  %v1375_v52 = vsel %vm1250_vm2, %v1373_v47, -inf }
 0x605   : > { %1376 = vmax.xlane.f32.xlu1 %v1375_v52 }
 0x606   : > { %v1378_v53 = vsel %vm1250_vm2, %v1374_v50, -inf }
 0x607   : > { %1379 = vmax.xlane.f32.xlu0 %v1378_v53 }
 0x692   : > { %v1377_v54 = vpop.xlane.xlu1 %1376 }
 0x693   : > { %v1381_v55 = vsub.f32 %v1373_v47, %v1377_v54 }
 0x694   : > { %v1380_v56 = vpop.xlane.xlu0 %1379 }
 0x695   : > { %v1383_v57 = vmul.f32 1.442695, %v1381_v55  ;;  %v1382_v58 = vsub.f32 %v1374_v50, %v1380_v56 }
 0x697   : > { %3489 = vpow2.f32 %v1383_v57  ;;  %v1385_v59 = vmul.f32 1.442695, %v1382_v58 }
 0x699   : > { %3491 = vpow2.f32 %v1385_v59 }
 0x6a1   : > { %v3490_v60 = vpop.eup %3489 }
 0x6a2   : > { %v1387_v61 = vsel %vm1250_vm2, %v3490_v60, 0.0 }
 0x6a3   : > { %v3492_v62 = vpop.eup %3491  ;;  %1388 = vadd.xlane.f32.xlu0 %v1387_v61 }
 0x6a4   : > { %v1390_v63 = vsel %vm1250_vm2, %v3492_v62, 0.0 }
 0x6a5   : > { %1391 = vadd.xlane.f32.xlu1 %v1390_v63 }
 0x6b6   : > { %1459 = vrot.lane.b32.xlu1 %v4313_v3, %s3841_s7 }
 0x6b9   : > { %1399 = vrot.lane.b32.xlu0 %v4325_v13, %s3840_s28 }
 0x6ba   : > { %1457 = vrot.lane.b32.xlu1 %v4311_v2, %s3841_s7 }
 0x730   : > { %v1389_v0 = vpop.xlane.xlu0 %1388 }
 0x731   : > { %3493 = vrcp.f32 %v1389_v0 }
 0x732   : > { %v1392_v1 = vpop.xlane.xlu1 %1391 }
 0x733   : > { %3495 = vrcp.f32 %v1392_v1 }
 0x734   : > { %v1400_v4 = vpop.permute.xlu0 %1399 }
 0x735   : > { %3195 = vmatpush3.bf16.msra.mxu1 %v1400_v4 }
 0x736   : > { %3200 = vmatprep.subr.bf16.mxu1 %v3838_v5  ;;  %v1460_v10 = vpop.permute.xlu1 %1459 }
 0x737   : > { %v1465_v12 = vsel %vm1200_vm1, %v1460_v10, 0 }
 0x73a   : > { %v1458_v14 = vpop.permute.xlu1 %1457 }
 0x73b   : > { %v3494_v6 = vpop.eup %3493 }
 0x73c   : > { %v1395_v8 = vmul.f32 %v3494_v6, %v3490_v60 }
 0x73d   : > { %v3496_v7 = vpop.eup %3495 }
 0x73e   : > { %v1396_v9 = vmul.f32 %v3496_v7, %v3492_v62 }
 0x740   : > { %v1397_v11 = vpack.c.bf16 %v1396_v9, %v1395_v8 }
 0x742   : > { %3197 = vmatmul.mubr.msk.bf16.vlgmr.msra.gmra.mrb[16].mxu1 %vm1250_vm2, %v1397_v11 }
 0x743   : > { %3201 = vmatpush3.bf16.xpose.msra.mxu1 %v1465_v12  ;;  %3202 = vmatprep.mubr.msk.bf16.mxu1 %vm3839_vm0, %v3838_v5 }
 0x744   : > { %3206 = vmatprep.subr.bf16.mxu1 %v3838_v5 }
 0x74a   : > { %3203 = vmatmul.mubr.msk.bf16.vlgmr.msra.gmra.mrb[20].mxu1 %vm1200_vm1, %v1458_v14 }
 0x74b   : > { %3208 = vmatprep.mubr.msk.bf16.mxu1 %vm3839_vm0, %v3838_v5 }
 0x815   : > { %v4366_v15 = vpop.f32.mrb[16].mxu1 }
 0x816   : > { %v3198_v16 = vpop.f32.mrb[17].mxu1 }
 0x817   : > { %v4368_v17 = vpop.f32.mrb[18].mxu1 }
 0x818   : > { %v3199_v18 = vpop.f32.mrb[19].mxu1 }
 0x81d   : > { %v1501_v19 = vpop.f32.mrb[20].mxu1 }
 0x81e   : > { %v1508_v20 = vmul.f32 0.17677669, %v1501_v19  ;;  %v3204_v21 = vpop.f32.mrb[21].mxu1  ;;  %v3389_v19 = vld [vmem:[#allocation11] sm:$0xff]  }
 0x81f   : > { %v1504_v22 = vpop.f32.mrb[22].mxu1  ;;  %3225 = vmatpush3.bf16.msra.mxu0 %v3389_v19  ;;  %v3391_v21 = vld [vmem:[#allocation11 + $0x10] sm:$0xff]  }
 0x820   : > { %v1509_v23 = vmul.f32 0.17677669, %v1504_v22  ;;  %v3205_v24 = vpop.f32.mrb[23].mxu1  ;;  %v1510_v25 = vsel %vm1250_vm2, %v1508_v20, -inf  ;;  %3226 = vmatprep.subr.bf16.mxu0 %v3838_v5  ;;  %v3392_v22 = vld [vmem:[#allocation11 + $0x18] sm:$0xff]  }
 0x821   : > { %1511 = vmax.xlane.f32.xlu1 %v1510_v25  ;;  %v3394_v24 = vld [vmem:[#allocation11 + $0x28] sm:$0xff]   ;;  %v3395_v25 = vld [vmem:[#allocation11 + $0x30] sm:$0xff]  }
 0x822   : > { %v1513_v26 = vsel %vm1250_vm2, %v1509_v23, -inf }
 0x823   : > { %1514 = vmax.xlane.f32.xlu0 %v1513_v26  ;;  %v3396_v26 = vld [vmem:[#allocation11 + $0x38] sm:$0xff]  }
 0x832   : > { %1533 = vrot.lane.b32.xlu1 %v4325_v13, %s3841_s7 }
 0x836   : > { %1591 = vrot.lane.b32.xlu1 %v4311_v2, %s3842_s23 }
 0x8ae   : > { %v1512_v27 = vpop.xlane.xlu1 %1511 }
 0x8af   : > { %v1516_v28 = vsub.f32 %v1508_v20, %v1512_v27  ;;  %v3390_v20 = vld [vmem:[#allocation11 + $0x8] sm:$0xff]  }
 0x8b0   : > { %v1515_v29 = vpop.xlane.xlu0 %1514  ;;  %3227 = vmatpush3.bf16.msra.mxu0 %v3390_v20 }
 0x8b1   : > { %v1518_v30 = vmul.f32 1.442695, %v1516_v28  ;;  %v1517_v31 = vsub.f32 %v1509_v23, %v1515_v29  ;;  %3228 = vmatprep.subr.bf16.mxu0 %v3838_v5  ;;  %v3393_v23 = vld [vmem:[#allocation11 + $0x20] sm:$0xff]  }
 0x8b2   : > { %v1534_v32 = vpop.permute.xlu1 %1533 }
 0x8b3   : > { %3497 = vpow2.f32 %v1518_v30  ;;  %v1520_v33 = vmul.f32 1.442695, %v1517_v31  ;;  %3207 = vmatpush3.bf16.msra.mxu1 %v1534_v32 }
 0x8b4   : > { %3212 = vmatprep.subr.bf16.mxu1 %v3838_v5  ;;  %3229 = vmatpush3.bf16.msra.mxu0 %v3391_v21 }
 0x8b5   : > { %3499 = vpow2.f32 %v1520_v33  ;;  %3230 = vmatprep.subr.bf16.mxu0 %v3838_v5 }
 0x8b8   : > { %3231 = vmatpush3.bf16.msra.mxu0 %v3392_v22 }
 0x8b9   : > { %3232 = vmatprep.subr.bf16.mxu0 %v3838_v5 }
 0x8bc   : > { %3233 = vmatpush3.bf16.msra.mxu0 %v3393_v23 }
 0x8bd   : > { %v3498_v34 = vpop.eup %3497  ;;  %3234 = vmatprep.subr.bf16.mxu0 %v3838_v5 }
 0x8be   : > { %v1522_v35 = vsel %vm1250_vm2, %v3498_v34, 0.0 }
 0x8bf   : > { %v3500_v36 = vpop.eup %3499  ;;  %1523 = vadd.xlane.f32.xlu0 %v1522_v35 }
 0x8c0   : > { %v1525_v37 = vsel %vm1250_vm2, %v3500_v36, 0.0  ;;  %3235 = vmatpush3.bf16.msra.mxu0 %v3394_v24 }
 0x8c1   : > { %3236 = vmatprep.subr.bf16.mxu0 %v3838_v5 }
 0x8c3   : > { %1526 = vadd.xlane.f32.xlu0 %v1525_v37 }
 0x8c4   : > { %3237 = vmatpush3.bf16.msra.mxu0 %v3395_v25 }
 0x8c5   : > { %3238 = vmatprep.subr.bf16.mxu0 %v3838_v5 }
 0x8c8   : > { %3239 = vmatpush3.bf16.msra.mxu0 %v3396_v26 }
 0x8d9   : > { %1593 = vrot.lane.b32.xlu0 %v4313_v3, %s3842_s23  ;;  %v1592_v3 = vpop.permute.xlu1 %1591 }
 0x94c   : > { %v1524_v2 = vpop.xlane.xlu0 %1523 }
 0x94d   : > { %3501 = vrcp.f32 %v1524_v2 }
 0x950   : > { %v1527_v38 = vpop.xlane.xlu0 %1526 }
 0x951   : > { %3503 = vrcp.f32 %v1527_v38 }
 0x954   : > { %v1594_v43 = vpop.permute.xlu0 %1593 }
 0x955   : > { %v1599_v45 = vsel %vm1200_vm1, %v1594_v43, 0  ;;  %v3546_v43 = vld [vmem:[%s4243_s3 + $0x8] sm:$0xff] }
 0x957   : > { %v3502_v39 = vpop.eup %3501 }
 0x958   : > { %v1530_v41 = vmul.f32 %v3502_v39, %v3498_v34  ;;  %v3545_v39 = vld [vmem:[%s4243_s3] sm:$0xff]  ;;  %s4648_s3 = sld [smem:[#allocation34_spill]] }
 0x95b   : > { %v3504_v40 = vpop.eup %3503 }
 0x95c   : > { %v1531_v42 = vmul.f32 %v3504_v40, %v3500_v36 }
 0x95e   : > { %v1532_v44 = vpack.c.bf16 %v1531_v42, %v1530_v41 }
 0x960   : > { %3209 = vmatmul.mubr.msk.bf16.vlgmr.msra.gmra.mrb[24].mxu1 %vm1250_vm2, %v1532_v44 }
 0x961   : > { %3213 = vmatpush3.bf16.xpose.msra.mxu1 %v1599_v45  ;;  %3214 = vmatprep.mubr.msk.bf16.mxu1 %vm3839_vm0, %v3838_v5 }
 0x962   : > { %3218 = vmatprep.subr.bf16.mxu1 %v3838_v5 }
 0x968   : > { %3215 = vmatmul.mubr.msk.bf16.vlgmr.msra.gmra.mrb[28].mxu1 %vm1200_vm1, %v1592_v3 }
 0x969   : > { %3220 = vmatprep.mubr.msk.bf16.mxu1 %vm3839_vm0, %v3838_v5  ;;  %v2929_v5 = vld [vmem:[%s4570_s10] ss:$0 sm:$0xff] }
 0xa33   : > { %v1573_v46 = vpop.f32.mrb[24].mxu1 }
 0xa34   : > { %v3210_v47 = vpop.f32.mrb[25].mxu1 }
 0xa35   : > { %v1576_v48 = vpop.f32.mrb[26].mxu1 }
 0xa36   : > { %v3211_v49 = vpop.f32.mrb[27].mxu1 }
 0xa3b   : > { %v1635_v50 = vpop.f32.mrb[28].mxu1 }
 0xa3c   : > { %v1642_v51 = vmul.f32 0.17677669, %v1635_v50  ;;  %v3216_v52 = vpop.f32.mrb[29].mxu1 }
 0xa3d   : > { %v1638_v53 = vpop.f32.mrb[30].mxu1 }
 0xa3e   : > { %v1643_v54 = vmul.f32 0.17677669, %v1638_v53  ;;  %v3217_v55 = vpop.f32.mrb[31].mxu1  ;;  %v1644_v56 = vsel %vm1250_vm2, %v1642_v51, -inf }
 0xa3f   : > { %1645 = vmax.xlane.f32.xlu1 %v1644_v56 }
 0xa40   : > { %v1647_v57 = vsel %vm1250_vm2, %v1643_v54, -inf }
 0xa41   : > { %1648 = vmax.xlane.f32.xlu0 %v1647_v57 }
 0xacc   : > { %v1646_v58 = vpop.xlane.xlu1 %1645 }
 0xacd   : > { %v1650_v59 = vsub.f32 %v1642_v51, %v1646_v58  ;;  %v1884_v58 = vlaneseq }
 0xace   : > { %v1649_v60 = vpop.xlane.xlu0 %1648 }
 0xacf   : > { %v1652_v61 = vmul.f32 1.442695, %v1650_v59  ;;  %v1651_v62 = vsub.f32 %v1643_v54, %v1649_v60  ;;  %v2938_v60 = vld [vmem:[%s4571_s11] ss:$0 sm:$0xff] }
 0xad1   : > { %3505 = vpow2.f32 %v1652_v61  ;;  %v1654_v63 = vmul.f32 1.442695, %v1651_v62  ;;  %v4427_v62 = vshrl.u32 %v1884_v58, 7 }
 0xad3   : > { %3507 = vpow2.f32 %v1654_v63  ;;  %vm1886_vm6 = vcmp.lt.s32.totalorder %v4427_v62, 1  ;;  %vm1891_vm7 = vcmp.lt.s32.totalorder %v4427_v62, 7  ;;  %vm1895_vm9 = vcmp.eq.s32.totalorder %v4427_v62, 0 }
 0xadb   : > { %v3506_v0 = vpop.eup %3505 }
 0xadc   : > { %v1656_v1 = vsel %vm1250_vm2, %v3506_v0, 0.0 }
 0xadd   : > { %v3508_v4 = vpop.eup %3507  ;;  %1657 = vadd.xlane.f32.xlu0 %v1656_v1  ;;  %v2939_v1 = vld [vmem:[%s4643_s2] ss:$0 sm:$0xff]  ;;  %s4652_s2 = sld [smem:[#allocation38_spill]] }
 0xade   : > { %v1659_v6 = vsel %vm1250_vm2, %v3508_v4, 0.0 }
 0xadf   : > { %1660 = vadd.xlane.f32.xlu1 %v1659_v6  ;;  %v1894_v6 = vadd.s32 8, %v4427_v62 }
 0xae1   : > { %vm1900_vm8 = vcmp.eq.s32.totalorder %v1894_v6, 15 }
 0xaf0   : > { %1448 = vrot.lane.b32.xlu1 %v4366_v15, %s3842_s23 }
 0xaf3   : > { %1667 = vrot.lane.b32.xlu0 %v4325_v13, %s3842_s23 }
 0xaf4   : > { %1450 = vrot.lane.b32.xlu1 %v4368_v17, %s3842_s23  ;;  %s4647_s23 = sld [smem:[#allocation33_spill]] }
 0xaf7   : > { %1584 = vrot.lane.b32.xlu0 %v1576_v48, %s3841_s7 }
 0xaf8   : > { %1582 = vrot.lane.b32.xlu1 %v1573_v46, %s3841_s7  ;;  %s3749_s7 = sshll.u32 %s3844_s26, 4  ;;  %s3750_s7 = int_to_ptr.vmem [resolvable:$false] %s3749_s7 }
 0xb6a   : > { %v1658_v7 = vpop.xlane.xlu0 %1657 }
 0xb6b   : > { %3509 = vrcp.f32 %v1658_v7 }
 0xb6c   : > { %v1661_v8 = vpop.xlane.xlu1 %1660 }
 0xb6d   : > { %3511 = vrcp.f32 %v1661_v8 }
 0xb6e   : > { %v1668_v9 = vpop.permute.xlu0 %1667 }
 0xb6f   : > { %3219 = vmatpush3.bf16.msra.mxu1 %v1668_v9 }
 0xb70   : > { %v1449_v10 = vpop.permute.xlu1 %1448 }
 0xb71   : > { %1455 = vst.msk [vmem:[#allocation2] sm:$0xff] %vm1454_vm3, %v1449_v10 }
 0xb72   : > { %v1585_v13 = vpop.permute.xlu0 %1584 }
 0xb74   : > { %v1451_v11 = vpop.permute.xlu1 %1450 }
 0xb75   : > { %v3510_v12 = vpop.eup %3509  ;;  %1456 = vst.msk [vmem:[#allocation2 + $0x8] sm:$0xff] %vm1454_vm3, %v1451_v11 }
 0xb76   : > { %1590 = vst.msk [vmem:[#allocation2 + $0x8] sm:$0xff] %vm1588_vm4, %v1585_v13  ;;  %v1664_v15 = vmul.f32 %v3510_v12, %v3506_v0 }
 0xb77   : > { %v3512_v14 = vpop.eup %3511 }
 0xb78   : > { %v1665_v16 = vmul.f32 %v3512_v14, %v3508_v4  ;;  %v1583_v17 = vpop.permute.xlu1 %1582 }
 0xb79   : > { %1589 = vst.msk [vmem:[#allocation2] sm:$0xff] %vm1588_vm4, %v1583_v17 }
 0xb7a   : > { %v1666_v18 = vpack.c.bf16 %v1665_v16, %v1664_v15 }
 0xb7c   : > { %3221 = vmatmul.mubr.msk.bf16.vlgmr.msra.gmra.mrb[32].mxu1 %vm1250_vm2, %v1666_v18 }
 0xc4f   : > { %v1707_v27 = vpop.f32.mrb[32].mxu1 }
 0xc50   : > { %1716 = vrot.lane.b32.xlu1 %v1707_v27, %s3840_s28  ;;  %v3222_v28 = vpop.f32.mrb[33].mxu1 }
 0xc51   : > { %v1710_v29 = vpop.f32.mrb[34].mxu1 }
 0xc52   : > { %1718 = vrot.lane.b32.xlu0 %v1710_v29, %s3840_s28  ;;  %v3223_v30 = vpop.f32.mrb[35].mxu1  ;;  %s4644_s28 = sld [smem:[#allocation30_spill]]  ;;  %v2943_v29 = vld [vmem:[%s4645_s17] ss:$0 sm:$0xff] }
 0xc58   : > { %v2940_v14 = vld [vmem:[%s4644_s28] ss:$0 sm:$0xff]  ;;  %v2941_v15 = vld [vmem:[%s4644_s28 + $0x1] ss:$0 sm:$0xff]  ;;  %v2942_v16 = vld [vmem:[%s4644_s28 + $0x2] ss:$0 sm:$0xff] }
 0xcc2   : > { %v1717_v31 = vpop.permute.xlu1 %1716 }
 0xcc3   : > { %1723 = vst.msk [vmem:[#allocation2] sm:$0xff] %vm1722_vm5, %v1717_v31 }
 0xcc4   : > { %v1719_v32 = vpop.permute.xlu0 %1718 }
 0xcc5   : > { %1724 = vst.msk [vmem:[#allocation2 + $0x8] sm:$0xff] %vm1722_vm5, %v1719_v32 }
 0xcca   : > { %v1725_v33 = vld [vmem:[#allocation2] sm:$0xff] }
 0xccc   : > { %v1726_v34 = vld [vmem:[#allocation2 + $0x8] sm:$0xff] }
 0xccd   : > { %v1727_v35 = vpack.c.bf16 %v1726_v34, %v1725_v33 }
 0xccf   : > { %3241 = vmatmul.mubr.bf16.vlgmr.msra.gmra.mrb[8].mxu0 %v1727_v35 }
 0xda2   : > { %v1833_v36 = vpop.f32.mrb[8].mxu0 }
 0xda3   : > { %v1834_v37 = vadd.f32 %v2929_v5, %v1833_v36  ;;  %v3242_v2 = vpop.f32.mrb[9].mxu0 }
 0xda4   : > { %v1836_v38 = vpop.f32.mrb[10].mxu0 }
 0xda5   : > { %v4415_v40 = vadd.f32 %v3545_v39, %v1834_v37  ;;  %v1837_v41 = vadd.f32 %v2929_v5, %v1836_v38  ;;  %v3243_v42 = vpop.f32.mrb[11].mxu0 }
 0xda7   : > { %v4418_v44 = vadd.f32 %v3546_v43, %v1837_v41  ;;  %1844 = vadd.xlane.f32.xlu1 %v4415_v40 }
 0xda9   : > { %1846 = vadd.xlane.f32.xlu0 %v4418_v44 }
 0xe34   : > { %v1845_v45 = vpop.xlane.xlu1 %1844 }
 0xe35   : > { %v1848_v3 = vmul.f32 0.0078125, %v1845_v45 }
 0xe36   : > { %v1847_v46 = vpop.xlane.xlu0 %1846 }
 0xe37   : > { %v1850_v47 = vsub.f32 %v4415_v40, %v1848_v3  ;;  %v1849_v48 = vmul.f32 0.0078125, %v1847_v46 }
 0xe39   : > { %v1851_v49 = vsub.f32 %v4418_v44, %v1849_v48  ;;  %v1852_v50 = vmul.f32 %v1850_v47, %v1850_v47 }
 0xe3b   : > { %1854 = vadd.xlane.f32.xlu0 %v1852_v50  ;;  %v1853_v51 = vmul.f32 %v1851_v49, %v1851_v49  ;;  %v2944_v50 = vld [vmem:[%s4646_s5] ss:$0 sm:$0xff]  ;;  %s4514_s5 = scalar_lea.hbm %s4652_s2, %s3019_s20 }
 0xe3f   : > { %1856 = vadd.xlane.f32.xlu0 %v1853_v51 }
 0xec8   : > { %v1855_v52 = vpop.xlane.xlu0 %1854 }
 0xec9   : > { %v1858_v53 = vmul.f32 0.0078125, %v1855_v52 }
 0xecb   : > { %v1860_v54 = vadd.f32 1e-05, %v1858_v53 }
 0xecc   : > { %v1857_v55 = vpop.xlane.xlu0 %1856 }
 0xecd   : > { %3513 = vrsqrt.f32 %v1860_v54  ;;  %v1859_v56 = vmul.f32 0.0078125, %v1857_v55  ;;  %v2945_v54 = vld [vmem:[%s4647_s23] ss:$0 sm:$0xff]  ;;  %s3751_s23 = scalar_lea.vmem %s3750_s7, 512 }
 0xecf   : > { %v1861_v57 = vadd.f32 1e-05, %v1859_v56 }
 0xed1   : > { %3515 = vrsqrt.f32 %v1861_v57 }
 0xed7   : > { %v3514_v59 = vpop.eup %3513 }
 0xed8   : > { %v1864_v61 = vmul.f32 %v3514_v59, %v1850_v47 }
 0xeda   : > { %v1872_v63 = vmul.f32 %v2938_v60, %v1864_v61 }
 0xedb   : > { %v3516_v0 = vpop.eup %3515 }
 0xedc   : > { %v1865_v4 = vmul.f32 %v3516_v0, %v1851_v49  ;;  %v4433_v7 = vadd.f32 %v2939_v1, %v1872_v63 }
 0xede   : > { %v1873_v8 = vmul.f32 %v2938_v60, %v1865_v4  ;;  %v1882_v10 = vrot.slane %v4433_v7, 7  ;;  %v1889_v12 = vrot.slane %v4433_v7, 1  ;;  %v1915_v27 = vmul.f32 %v2941_v15, %v4433_v7 }
 0xee0   : > { %v4435_v9 = vadd.f32 %v2939_v1, %v1873_v8 }
 0xee2   : > { %v1883_v11 = vrot.slane %v4435_v9, 7  ;;  %v1890_v13 = vrot.slane %v4435_v9, 1  ;;  %v1916_v19 = vmul.f32 %v2941_v15, %v4435_v9  ;;  %v1938_v8 = vadd.f32 %v4435_v9, %v4418_v44  ;;  %v3397_v15 = vld [vmem:[#allocation12] ss:$16 sps:$4 sm:$0xff]   ;;  %v3408_v44 = vld [vmem:[#allocation12 + $0x2c] ss:$16 sps:$4 sm:$0xff]  }
 0xee3   : > { %v3403_v9 = vld [vmem:[#allocation12 + $0x20] ss:$16 sps:$4 sm:$0xff]  }
 0xee4   : > { %v1887_v17 = vsel %vm1886_vm6, %v1882_v10, %v1883_v11  ;;  %v1893_v18 = vsel %vm1891_vm7, %v1890_v13, %v1889_v12  ;;  %v1888_v20 = vsel %vm1886_vm6, %v1883_v11, %v1882_v10  ;;  %v1892_v23 = vsel %vm1891_vm7, %v1889_v12, %v1890_v13 }
 0xee5   : > { %v1902_v21 = vsel %vm1900_vm8, 0.0, %v1893_v18  ;;  %v1909_v22 = vmul.f32 %v2940_v14, %v1887_v17  ;;  %v1897_v24 = vsel %vm1895_vm9, 0.0, %v1888_v20  ;;  %v1924_v31 = vmul.f32 %v2942_v16, %v1892_v23  ;;  %v3400_v17 = vld [vmem:[#allocation12 + $0x8] ss:$16 sps:$4 sm:$0xff]   ;;  %v3402_v18 = vld [vmem:[#allocation12 + $0xc] ss:$16 sps:$4 sm:$0xff]  }
 0xee6   : > { %v1925_v25 = vmul.f32 %v2942_v16, %v1902_v21  ;;  %v1908_v26 = vmul.f32 %v2940_v14, %v1897_v24  ;;  %v1937_v11 = vadd.f32 %v4433_v7, %v4415_v40  ;;  %v3399_v16 = vld [vmem:[#allocation12 + $0x4] ss:$16 sps:$4 sm:$0xff]   ;;  %2289 = vmatprep.subr.bf16.mxu0 %v3402_v18  ;;  %v3406_v40 = vld [vmem:[#allocation12 + $0x28] ss:$16 sps:$4 sm:$0xff]  }
 0xee7   : > { %v1918_v28 = vadd.f32 %v1916_v19, %v1909_v22  ;;  %v3405_v19 = vld [vmem:[#allocation12 + $0x24] ss:$16 sps:$4 sm:$0xff]   ;;  %2246 = vmatprep.subr.bf16.mxu1 %v3399_v16  ;;  %2290 = vmatpush1.bf16.msra.mxu0 %v3400_v17  ;;  %v3449_v16 = vld [vmem:[#allocation14 + $0x48] sm:$0xff]  }
 0xee8   : > { %v1917_v30 = vadd.f32 %v1915_v27, %v1908_v26  ;;  %2247 = vmatpush1.bf16.msra.mxu1 %v3397_v15  ;;  %2291 = vmatprep.subr.bf16.mxu0 %v3408_v44  ;;  %v3411_v27 = vld [vmem:[#allocation12 + $0x44] ss:$16 sps:$4 sm:$0xff]   ;;  %v3450_v17 = vld [vmem:[#allocation14 + $0xc8] sm:$0xff]  }
 0xee9   : > { %v1927_v32 = vadd.f32 %v1925_v25, %v1918_v28  ;;  %2248 = vmatprep.subr.bf16.mxu1 %v3405_v19  ;;  %v3414_v28 = vld [vmem:[#allocation12 + $0x4c] ss:$16 sps:$4 sm:$0xff]   ;;  %v3453_v44 = vld [vmem:[#allocation14 + $0x50] sm:$0xff]  }
 0xeea   : > { %v1926_v33 = vadd.f32 %v1924_v31, %v1917_v30  ;;  %v3412_v30 = vld [vmem:[#allocation12 + $0x48] ss:$16 sps:$4 sm:$0xff]   ;;  %v3417_v31 = vld [vmem:[#allocation12 + $0x64] ss:$16 sps:$4 sm:$0xff]  }
 0xeeb   : > { %v1936_v34 = vadd.f32 %v2943_v29, %v1927_v32  ;;  %2292 = vmatpush1.bf16.msra.mxu0 %v3406_v40  ;;  %v3420_v32 = vld [vmem:[#allocation12 + $0x6c] ss:$16 sps:$4 sm:$0xff]   ;;  %v3455_v40 = vld [vmem:[#allocation14 + $0x10] sm:$0xff]  }
 0xeec   : > { %v1935_v35 = vadd.f32 %v2943_v29, %v1926_v33  ;;  %2249 = vmatpush1.bf16.msra.mxu1 %v3403_v9  ;;  %v3409_v29 = vld [vmem:[#allocation12 + $0x40] ss:$16 sps:$4 sm:$0xff]   ;;  %2293 = vmatprep.subr.bf16.mxu0 %v3414_v28  ;;  %v3451_v18 = vld [vmem:[#allocation14 + $0x8] sm:$0xff]  }
 0xeed   : > { %1943 = vadd.xlane.f32.xlu0 %v1936_v34  ;;  %2250 = vmatprep.subr.bf16.mxu1 %v3411_v27  ;;  %v3415_v33 = vld [vmem:[#allocation12 + $0x60] ss:$16 sps:$4 sm:$0xff]   ;;  %v3452_v19 = vld [vmem:[#allocation14 + $0x88] sm:$0xff]  }
 0xeee   : > { %1941 = vadd.xlane.f32.xlu1 %v1935_v35  ;;  %v3454_v9 = vld [vmem:[#allocation14 + $0xd0] sm:$0xff]   ;;  %v3464_v27 = vld [vmem:[#allocation14 + $0xa0] sm:$0xff]   ;;  %v3465_v28 = vld [vmem:[#allocation14 + $0x68] sm:$0xff]  }
 0xeef   : > { %2294 = vmatpush1.bf16.msra.mxu0 %v3412_v30  ;;  %v3467_v30 = vld [vmem:[#allocation14 + $0x28] sm:$0xff]  }
 0xef0   : > { %2251 = vmatpush1.bf16.msra.mxu1 %v3409_v29  ;;  %2295 = vmatprep.subr.bf16.mxu0 %v3420_v32  ;;  %v3466_v29 = vld [vmem:[#allocation14 + $0xe8] sm:$0xff]   ;;  %v3469_v32 = vld [vmem:[#allocation14 + $0x70] sm:$0xff]  }
 0xef1   : > { %2252 = vmatprep.subr.bf16.mxu1 %v3417_v31  ;;  %v3468_v31 = vld [vmem:[#allocation14 + $0xa8] sm:$0xff]  }
 0xef4   : > { %2253 = vmatpush1.bf16.msra.mxu1 %v3415_v33  ;;  %v3470_v33 = vld [vmem:[#allocation14 + $0xf0] sm:$0xff]  }
 0xf7a   : > { %v1944_v5 = vpop.xlane.xlu0 %1943 }
 0xf7b   : > { %v1946_v36 = vmul.f32 0.0078125, %v1944_v5  ;;  %v1942_v37 = vpop.xlane.xlu1 %1941  ;;  %v3426_v5 = vld [vmem:[#allocation12 + $0x8c] ss:$16 sps:$4 sm:$0xff]  }
 0xf7c   : > { %v1945_v2 = vmul.f32 0.0078125, %v1942_v37  ;;  %v3424_v37 = vld [vmem:[#allocation12 + $0x88] ss:$16 sps:$4 sm:$0xff]  }
 0xf7d   : > { %v1948_v38 = vsub.f32 %v1936_v34, %v1946_v36  ;;  %v3418_v34 = vld [vmem:[#allocation12 + $0x68] ss:$16 sps:$4 sm:$0xff]   ;;  %v3421_v36 = vld [vmem:[#allocation12 + $0x80] ss:$16 sps:$4 sm:$0xff]  }
 0xf7e   : > { %v1947_v39 = vsub.f32 %v1935_v35, %v1945_v2  ;;  %2296 = vmatpush1.bf16.msra.mxu0 %v3418_v34  ;;  %v3423_v35 = vld [vmem:[#allocation12 + $0x84] ss:$16 sps:$4 sm:$0xff]  }
 0xf7f   : > { %v1950_v41 = vmul.f32 %v1948_v38, %v1948_v38  ;;  %2254 = vmatprep.subr.bf16.mxu1 %v3423_v35  ;;  %2297 = vmatprep.subr.bf16.mxu0 %v3426_v5  ;;  %v3429_v2 = vld [vmem:[#allocation12 + $0xa4] ss:$16 sps:$4 sm:$0xff]   ;;  %v3473_v5 = vld [vmem:[#allocation14 + $0x78] sm:$0xff]  }
 0xf80   : > { %v1949_v42 = vmul.f32 %v1947_v39, %v1947_v39  ;;  %2255 = vmatpush1.bf16.msra.mxu1 %v3421_v36  ;;  %v3471_v34 = vld [vmem:[#allocation14 + $0x30] sm:$0xff]   ;;  %v3474_v36 = vld [vmem:[#allocation14 + $0xf8] sm:$0xff]  }
 0xf81   : > { %1953 = vadd.xlane.f32.xlu0 %v1950_v41  ;;  %v3430_v41 = vld [vmem:[#allocation12 + $0xa8] ss:$16 sps:$4 sm:$0xff]   ;;  %2256 = vmatprep.subr.bf16.mxu1 %v3429_v2  ;;  %v3472_v35 = vld [vmem:[#allocation14 + $0xb0] sm:$0xff]  }
 0xf82   : > { %1951 = vadd.xlane.f32.xlu1 %v1949_v42  ;;  %2298 = vmatpush1.bf16.msra.mxu0 %v3424_v37  ;;  %v3435_v42 = vld [vmem:[#allocation12 + $0xc4] ss:$16 sps:$4 sm:$0xff]   ;;  %v3475_v37 = vld [vmem:[#allocation14 + $0x38] sm:$0xff]  }
 0xf83   : > { %v3476_v2 = vld [vmem:[#allocation14 + $0xb8] sm:$0xff]  }
0x100e   : > { %v1954_v43 = vpop.xlane.xlu0 %1953 }
0x100f   : > { %v1956_v45 = vmul.f32 0.0078125, %v1954_v43  ;;  %v1952_v3 = vpop.xlane.xlu1 %1951  ;;  %v3438_v43 = vld [vmem:[#allocation12 + $0xcc] ss:$16 sps:$4 sm:$0xff]  }
0x1010   : > { %v1955_v46 = vmul.f32 0.0078125, %v1952_v3  ;;  %v3436_v3 = vld [vmem:[#allocation12 + $0xc8] ss:$16 sps:$4 sm:$0xff]  }
0x1011   : > { %v1958_v47 = vadd.f32 1e-05, %v1956_v45  ;;  %v3433_v45 = vld [vmem:[#allocation12 + $0xc0] ss:$16 sps:$4 sm:$0xff]  }
0x1012   : > { %v1957_v48 = vadd.f32 1e-05, %v1955_v46  ;;  %v3441_v46 = vld [vmem:[#allocation12 + $0xe4] ss:$16 sps:$4 sm:$0xff]  }
0x1013   : > { %3517 = vrsqrt.f32 %v1958_v47  ;;  %v3444_v47 = vld [vmem:[#allocation12 + $0xec] ss:$16 sps:$4 sm:$0xff]  }
0x1014   : > { %3519 = vrsqrt.f32 %v1957_v48  ;;  %v3439_v48 = vld [vmem:[#allocation12 + $0xe0] ss:$16 sps:$4 sm:$0xff]  }
0x101d   : > { %v3518_v49 = vpop.eup %3517 }
0x101e   : > { %v3520_v51 = vpop.eup %3519  ;;  %v1962_v52 = vmul.f32 %v3518_v49, %v1948_v38  ;;  %v3432_v38 = vld [vmem:[#allocation12 + $0xac] ss:$16 sps:$4 sm:$0xff]   ;;  %v3442_v49 = vld [vmem:[#allocation12 + $0xe8] ss:$16 sps:$4 sm:$0xff]  }
0x101f   : > { %v1961_v53 = vmul.f32 %v3520_v51, %v1947_v39  ;;  %v3427_v39 = vld [vmem:[#allocation12 + $0xa0] ss:$16 sps:$4 sm:$0xff]   ;;  %2299 = vmatprep.subr.bf16.mxu0 %v3432_v38  ;;  %v2068_v38 = vsub.s32 0, %v4427_v62 }
0x1020   : > { %v1970_v55 = vmul.f32 %v2944_v50, %v1962_v52  ;;  %2257 = vmatpush1.bf16.msra.mxu1 %v3427_v39  ;;  %2300 = vmatpush1.bf16.msra.mxu0 %v3430_v41  ;;  %v3445_v51 = vld [vmem:[#allocation14 + $0x40] sm:$0xff]   ;;  %v2076_v39 = vsub.s32 2, %v4427_v62  ;;  %v2064_v41 = vld [vmem:[%s4650_s0] sm:$0xf] }
0x1021   : > { %v1969_v56 = vmul.f32 %v2944_v50, %v1961_v53  ;;  %2258 = vmatprep.subr.bf16.mxu1 %v3435_v42  ;;  %2301 = vmatprep.subr.bf16.mxu0 %v3438_v43  ;;  %v3843_v50 = vmov 0   ;;  %v3446_v52 = vld [vmem:[#allocation14 + $0xc0] sm:$0xff]   ;;  %v2072_v42 = vsub.s32 1, %v4427_v62  ;;  %v2080_v43 = vsub.s32 3, %v4427_v62 }
0x1022   : > { %v1978_v57 = vadd.f32 %v2945_v54, %v1970_v55  ;;  %2278 = vmatprep.mubr.bf16.mxu1 %v3843_v50  ;;  %2321 = vmatprep.mubr.bf16.mxu0 %v3843_v50 }
0x1023   : > { %v1977_v58 = vadd.f32 %v2945_v54, %v1969_v56 }
0x1024   : > { %v1982_v59 = vmul.f32 0.70710677, %v1978_v57  ;;  %v1980_v0 = vmul.f32 0.5, %v1978_v57  ;;  %2259 = vmatpush1.bf16.msra.mxu1 %v3433_v45  ;;  %2302 = vmatpush1.bf16.msra.mxu0 %v3436_v3  ;;  %v2069_v45 = vrot.slane %v2064_v41, %v2068_v38  ;;  %v2077_v3 = vrot.slane %v2064_v41, %v2076_v39 }
0x1025   : > { %v1981_v60 = vmul.f32 0.70710677, %v1977_v58  ;;  %v1979_v4 = vmul.f32 0.5, %v1977_v58  ;;  %2260 = vmatprep.subr.bf16.mxu1 %v3441_v46  ;;  %2303 = vmatprep.subr.bf16.mxu0 %v3444_v47  ;;  %v2073_v46 = vrot.slane %v2064_v41, %v2072_v42  ;;  %v2081_v47 = vrot.slane %v2064_v41, %v2080_v43 }
0x1026   : > { %3521 = verf.f32 %v1982_v59 }
0x1027   : > { %3523 = verf.f32 %v1981_v60  ;;  %v2946_v60 = vld [vmem:[%s4648_s3] ss:$0 sm:$0xff]  ;;  %s2741_s3 = sshll.u32 %s815_s13, 4  ;;  %s4516_s3 = int_to_ptr.vmem [resolvable:$true] %s2741_s3 }
0x1028   : > { %2261 = vmatpush1.bf16.msra.mxu1 %v3439_v48  ;;  %2304 = vmatpush1.bf16.msra.mxu0 %v3442_v49  ;;  %s3745_s0 = scalar_lea.vmem %s4516_s3, 256  ;;  %p3752_p13 = scmp.lt.s32.totalorder %s4516_s3, %s3750_s7 }
0x1029   : > { %3072 = vmatprep.subr.bf16.mxu1 %v3445_v51  ;;  %3094 = vmatprep.subr.bf16.mxu0 %v3446_v52  ;;  %p3746_p6 = scmp.ne.s32.totalorder %s4516_s3, %s3745_s0  ;;  %p3753_p0 = scmp.lt.s32.totalorder %s3751_s23, %s3745_s0 }
0x102b   : > { %p3747_p12 = pnand %p3746_p6, %p4653_p9  ;;  %p3754_p2 = por %p3753_p0, %p3752_p13 }
0x102d   : > { %p3748_p1 = pneg %p3747_p12 }
0x102f   : > { %p3755_p8 = pnand %p3754_p2, %p3748_p1 }
0x1030   : > { %v3522_v61 = vpop.eup %3521 }
0x1031   : > { %v3524_v63 = vpop.eup %3523  ;;  %v1986_v1 = vadd.f32 1.0, %v3522_v61 }
0x1032   : > { %v1985_v6 = vadd.f32 1.0, %v3524_v63 }
0x1033   : > { %v1988_v10 = vmul.f32 %v1986_v1, %v1980_v0  ;;  %v2947_v1 = vld [vmem:[%s4649_s18] ss:$0 sm:$0xff] }
0x1034   : > { %v1987_v12 = vmul.f32 %v1985_v6, %v1979_v4 }
0x1035   : > { %v4472_v13 = vadd.f32 %v1988_v10, %v1938_v8 }
0x1036   : > { %v4474_v14 = vadd.f32 %v1987_v12, %v1937_v11  ;;  %v3447_v11 = vld [vmem:[#allocation14] sm:$0xff]  }
0x1037   : > { %1995 = vadd.xlane.f32.xlu0 %v4472_v13  ;;  %v3448_v12 = vld [vmem:[#allocation14 + $0x80] sm:$0xff]  }
0x1038   : > { %1993 = vadd.xlane.f32.xlu1 %v4474_v14 }
0x10c4   : > { %v1996_v7 = vpop.xlane.xlu0 %1995 }
0x10c5   : > { %v1998_v20 = vmul.f32 0.0078125, %v1996_v7  ;;  %v1994_v21 = vpop.xlane.xlu1 %1993  ;;  %v3456_v7 = vld [vmem:[#allocation14 + $0x90] sm:$0xff]  }
0x10c6   : > { %v1997_v22 = vmul.f32 0.0078125, %v1994_v21  ;;  %v3458_v21 = vld [vmem:[#allocation14 + $0xd8] sm:$0xff]  }
0x10c7   : > { %v4479_v23 = vsub.f32 %v4472_v13, %v1998_v20  ;;  %v3457_v20 = vld [vmem:[#allocation14 + $0x58] sm:$0xff]  }
0x10c8   : > { %v4482_v24 = vsub.f32 %v4474_v14, %v1997_v22  ;;  %v3459_v22 = vld [vmem:[#allocation14 + $0x18] sm:$0xff]  }
0x10c9   : > { %v2002_v25 = vmul.f32 %v4479_v23, %v4479_v23 }
0x10ca   : > { %v2001_v26 = vmul.f32 %v4482_v24, %v4482_v24 }
0x10cb   : > { %2005 = vadd.xlane.f32.xlu0 %v2002_v25  ;;  %v3462_v25 = vld [vmem:[#allocation14 + $0xe0] sm:$0xff]  }
0x10cc   : > { %2003 = vadd.xlane.f32.xlu1 %v2001_v26  ;;  %v3463_v26 = vld [vmem:[#allocation14 + $0x20] sm:$0xff]  }
0x1158   : > { %v2006_v53 = vpop.xlane.xlu0 %2005 }
0x1159   : > { %v2008_v54 = vmul.f32 0.0078125, %v2006_v53  ;;  %v2004_v55 = vpop.xlane.xlu1 %2003 }
0x115a   : > { %v2007_v56 = vmul.f32 0.0078125, %v2004_v55 }
0x115b   : > { %v2010_v57 = vadd.f32 1e-05, %v2008_v54 }
0x115c   : > { %v2009_v58 = vadd.f32 1e-05, %v2007_v56 }
0x115d   : > { %3525 = vrsqrt.f32 %v2010_v57 }
0x115e   : > { %3527 = vrsqrt.f32 %v2009_v58 }
0x1167   : > { %v3526_v59 = vpop.eup %3525 }
0x1168   : > { %v3528_v61 = vpop.eup %3527  ;;  %v2014_v63 = vmul.f32 %v3526_v59, %v4479_v23  ;;  %v3460_v23 = vld [vmem:[#allocation14 + $0x98] sm:$0xff]  }
0x1169   : > { %v2013_v0 = vmul.f32 %v3528_v61, %v4482_v24  ;;  %v3461_v24 = vld [vmem:[#allocation14 + $0x60] sm:$0xff]  }
0x116a   : > { %v2022_v4 = vmul.f32 %v2946_v60, %v2014_v63 }
0x116b   : > { %v2021_v6 = vmul.f32 %v2946_v60, %v2013_v0 }
0x116c   : > { %v2030_v8 = vadd.f32 %v2947_v1, %v2022_v4 }
0x116d   : > { %v2029_v10 = vadd.f32 %v2947_v1, %v2021_v6 }
0x116f   : > { %v2031_v15 = vpack.c.bf16 %v2030_v8, %v2029_v10 }
0x1171   : > { %2279 = vmatmul.mubr.bf16.vlgmr.msra.gmra.mrb[36].mxu1 %v2031_v15  ;;  %2322 = vmatmul.mubr.bf16.vlgmr.msra.gmra.mrb[12].mxu0 %v2031_v15 }
0x1172   : > { %3073 = vmatpush3.bf16.msra.mxu1 %v3447_v11  ;;  %3095 = vmatpush3.bf16.msra.mxu0 %v3448_v12 }
0x1173   : > { %3074 = vmatprep.subr.bf16.mxu1 %v3449_v16  ;;  %3096 = vmatprep.subr.bf16.mxu0 %v3450_v17 }
0x1176   : > { %3075 = vmatpush3.bf16.msra.mxu1 %v3451_v18  ;;  %3097 = vmatpush3.bf16.msra.mxu0 %v3452_v19 }
0x1177   : > { %3076 = vmatprep.subr.bf16.mxu1 %v3453_v44  ;;  %3098 = vmatprep.subr.bf16.mxu0 %v3454_v9 }
0x117a   : > { %3077 = vmatpush3.bf16.msra.mxu1 %v3455_v40  ;;  %3099 = vmatpush3.bf16.msra.mxu0 %v3456_v7 }
0x117b   : > { %3078 = vmatprep.subr.bf16.mxu1 %v3457_v20  ;;  %3100 = vmatprep.subr.bf16.mxu0 %v3458_v21 }
0x117e   : > { %3079 = vmatpush3.bf16.msra.mxu1 %v3459_v22  ;;  %3101 = vmatpush3.bf16.msra.mxu0 %v3460_v23 }
0x117f   : > { %3080 = vmatprep.subr.bf16.mxu1 %v3461_v24  ;;  %3102 = vmatprep.subr.bf16.mxu0 %v3462_v25 }
0x1182   : > { %3081 = vmatpush3.bf16.msra.mxu1 %v3463_v26  ;;  %3103 = vmatpush3.bf16.msra.mxu0 %v3464_v27 }
0x1183   : > { %3082 = vmatprep.subr.bf16.mxu1 %v3465_v28  ;;  %3104 = vmatprep.subr.bf16.mxu0 %v3466_v29 }
0x1186   : > { %3083 = vmatpush3.bf16.msra.mxu1 %v3467_v30  ;;  %3105 = vmatpush3.bf16.msra.mxu0 %v3468_v31 }
0x1187   : > { %3084 = vmatprep.subr.bf16.mxu1 %v3469_v32  ;;  %3106 = vmatprep.subr.bf16.mxu0 %v3470_v33 }
0x118a   : > { %3085 = vmatpush3.bf16.msra.mxu1 %v3471_v34  ;;  %3107 = vmatpush3.bf16.msra.mxu0 %v3472_v35 }
0x118b   : > { %3086 = vmatprep.subr.bf16.mxu1 %v3473_v5  ;;  %3108 = vmatprep.subr.bf16.mxu0 %v3474_v36 }
0x118e   : > { %3087 = vmatpush3.bf16.msra.mxu1 %v3475_v37  ;;  %3109 = vmatpush3.bf16.msra.mxu0 %v3476_v2 }
0x1244   : > { %v2280_v48 = vpop.f32.mrb[36].mxu1  ;;  %v2323_v49 = vpop.f32.mrb[12].mxu0 }
0x1245   : > { %v2281_v50 = vadd.f32 %v2280_v48, %v2069_v45  ;;  %v2324_v51 = vadd.f32 %v2323_v49, %v2077_v3  ;;  %v2282_v52 = vpop.f32.mrb[37].mxu1  ;;  %v2325_v53 = vpop.f32.mrb[13].mxu0 }
0x1246   : > { %v2283_v54 = vadd.f32 %v2282_v52, %v2073_v46  ;;  %v2326_v55 = vadd.f32 %v2325_v53, %v2081_v47  ;;  %v2284_v56 = vpop.f32.mrb[38].mxu1  ;;  %v2327_v57 = vpop.f32.mrb[14].mxu0 }
0x1247   : > { %v2340_v58 = vmul.f32 0.70710677, %v2281_v50  ;;  %v2342_v59 = vmul.f32 0.70710677, %v2324_v51  ;;  %v2285_v62 = vadd.f32 %v2284_v56, %v2069_v45  ;;  %v2328_v63 = vadd.f32 %v2327_v57, %v2077_v3  ;;  %v2286_v0 = vpop.f32.mrb[39].mxu1  ;;  %v2329_v1 = vpop.f32.mrb[15].mxu0 }
0x1248   : > { %v2341_v60 = vmul.f32 0.70710677, %v2283_v54  ;;  %v2343_v61 = vmul.f32 0.70710677, %v2326_v55  ;;  %v2287_v4 = vadd.f32 %v2286_v0, %v2073_v46  ;;  %v2330_v6 = vadd.f32 %v2329_v1, %v2081_v47 }
0x1249   : > { %3529 = verf.f32 %v2340_v58  ;;  %v2344_v8 = vmul.f32 0.70710677, %v2285_v62  ;;  %v2346_v10 = vmul.f32 0.70710677, %v2328_v63  ;;  %v2332_v9 = vmul.f32 0.5, %v2281_v50 }
0x124a   : > { %3531 = verf.f32 %v2342_v59  ;;  %v2345_v11 = vmul.f32 0.70710677, %v2287_v4  ;;  %v2347_v12 = vmul.f32 0.70710677, %v2330_v6  ;;  %v2334_v40 = vmul.f32 0.5, %v2324_v51 }
0x124b   : > { %3533 = verf.f32 %v2341_v60  ;;  %v2333_v21 = vmul.f32 0.5, %v2283_v54  ;;  %v2336_v23 = vmul.f32 0.5, %v2285_v62  ;;  %v2335_v26 = vmul.f32 0.5, %v2326_v55  ;;  %v3012_v59 = vld [vmem:[%s4651_s1] ss:$0 sm:$0xff] }
0x124c   : > { %3535 = verf.f32 %v2343_v61  ;;  %v2338_v28 = vmul.f32 0.5, %v2328_v63  ;;  %v2337_v33 = vmul.f32 0.5, %v2287_v4  ;;  %v2339_v36 = vmul.f32 0.5, %v2330_v6 }
0x124d   : > { %3537 = verf.f32 %v2344_v8 }
0x124e   : > { %3539 = verf.f32 %v2346_v10 }
0x124f   : > { %3541 = verf.f32 %v2345_v11 }
0x1250   : > { %3543 = verf.f32 %v2347_v12 }
0x1253   : > { %v3530_v15 = vpop.eup %3529 }
0x1254   : > { %v3532_v16 = vpop.eup %3531  ;;  %v2356_v19 = vadd.f32 1.0, %v3530_v15 }
0x1255   : > { %v3534_v17 = vpop.eup %3533  ;;  %v2358_v7 = vadd.f32 1.0, %v3532_v16 }
0x1256   : > { %v3536_v18 = vpop.eup %3535  ;;  %v2357_v22 = vadd.f32 1.0, %v3534_v17  ;;  %v2364_v31 = vmul.f32 %v2356_v19, %v2332_v9 }
0x1257   : > { %v3538_v44 = vpop.eup %3537  ;;  %v2359_v27 = vadd.f32 1.0, %v3536_v18  ;;  %v2366_v35 = vmul.f32 %v2358_v7, %v2334_v40 }
0x1258   : > { %v3540_v20 = vpop.eup %3539  ;;  %v2360_v24 = vadd.f32 1.0, %v3538_v44  ;;  %v2365_v2 = vmul.f32 %v2357_v22, %v2333_v21 }
0x1259   : > { %v3542_v25 = vpop.eup %3541  ;;  %v2362_v29 = vadd.f32 1.0, %v3540_v20  ;;  %v2367_v41 = vmul.f32 %v2359_v27, %v2335_v26 }
0x125a   : > { %v3544_v30 = vpop.eup %3543  ;;  %v2368_v32 = vmul.f32 %v2360_v24, %v2336_v23  ;;  %v2361_v34 = vadd.f32 1.0, %v3542_v25 }
0x125b   : > { %v2370_v5 = vmul.f32 %v2362_v29, %v2338_v28  ;;  %v2363_v37 = vadd.f32 1.0, %v3544_v30 }
0x125c   : > { %v2372_v38 = vpack.c.bf16 %v2368_v32, %v2364_v31  ;;  %v2369_v39 = vmul.f32 %v2361_v34, %v2337_v33 }
0x125d   : > { %v2374_v42 = vpack.c.bf16 %v2370_v5, %v2366_v35  ;;  %v2371_v43 = vmul.f32 %v2363_v37, %v2339_v36 }
0x125e   : > { %v2373_v45 = vpack.c.bf16 %v2369_v39, %v2365_v2 }
0x125f   : > { %v2375_v3 = vpack.c.bf16 %v2371_v43, %v2367_v41 }
0x1260   : > { %2664 = vmatprep.mubr.bf16.mxu1 %v2373_v45 }
0x1261   : > { %2705 = vmatprep.mubr.bf16.mxu0 %v2375_v3  ;;  %2665 = vmatmul.mubr.bf16.vlgmr.msra.gmra.mrb[40].mxu1 %v2372_v38 }
0x1262   : > { %2706 = vmatmul.mubr.bf16.vlgmr.msra.gmra.mrb[16].mxu0 %v2374_v42 }
0x1334   : > { %v3088_v46 = vpop.f32.mrb[40].mxu1 }
0x1335   : > { %v3110_v47 = vpop.f32.mrb[16].mxu0  ;;  %v3089_v48 = vpop.f32.mrb[41].mxu1 }
0x1336   : > { %v3090_v49 = vadd.f32 %v3089_v48, %v3088_v46  ;;  %v3111_v50 = vpop.f32.mrb[17].mxu0  ;;  %v3091_v51 = vpop.f32.mrb[42].mxu1 }
0x1337   : > { %v3112_v52 = vadd.f32 %v3111_v50, %v3110_v47  ;;  %v3113_v53 = vpop.f32.mrb[18].mxu0  ;;  %v3092_v54 = vpop.f32.mrb[43].mxu1 }
0x1338   : > { %v3093_v55 = vadd.f32 %v3092_v54, %v3091_v51  ;;  %v3114_v56 = vpop.f32.mrb[19].mxu0 }
0x1339   : > { %v2708_v57 = vadd.f32 %v3112_v52, %v3090_v49  ;;  %v3115_v58 = vadd.f32 %v3114_v56, %v3113_v53 }
0x133b   : > { %v2714_v60 = vadd.f32 %v2708_v57, %v4474_v14  ;;  %v2711_v61 = vadd.f32 %v3115_v58, %v3093_v55 }
0x133d   : > { %v2723_v62 = vadd.f32 %v3012_v59, %v2714_v60  ;;  %v2715_v63 = vadd.f32 %v2711_v61, %v4472_v13 }
0x133f   : > { %2725 = vst [vmem:[%s815_s13] sm:$0xff] %v2723_v62  ;;  %v2724_v14 = vadd.f32 %v3012_v59, %v2715_v63 }
0x1341   : > { %2726 = vst [vmem:[%s815_s13 + $0x8] sm:$0xff] %v2724_v14 }
0x1342   : > { %3758 = shalt.err (!%p3755_p8)
}
0x1343   : > { %s3759_s1 = scalar_lea.hbm %s4514_s5, 256  ;;  %s3763_s17 = scalar_lea.hbm %s4652_s2, 512 }
0x1344   : > { %p3760_p4 = scmp.ne.s32.totalorder %s4514_s5, %s3759_s1  ;;  %p3764_p3 = scmp.lt.u32.totalorder %s4514_s5, %s4652_s2 }
0x1345   : > { %p3765_p5 = scmp.lt.u32.totalorder %s3763_s17, %s3759_s1  ;;  %p3767_p6 = scmp.lt.u32.totalorder %s3759_s1, %s4514_s5 }
0x1346   : > { %p3761_p10 = pnand %p3760_p4, %p4653_p9 }
0x1347   : > { %p3766_p7 = por %p3765_p5, %p3764_p3 }
0x1348   : > { %p3762_p11 = pneg %p3761_p10 }
0x1349   : > { %p3768_p12 = por %p3767_p6, %p3766_p7 }
0x134b   : > { %p3769_p1 = pnand %p3768_p12, %p3762_p11 }
0x134d   : > { %3772 = shalt.err (!%p3769_p1)
}
0x134e   : > { %s3845_s0 = smov 128   ;;  %s3846_s7 = smov 8  }
0x134f   : > { %3270 = dma.vmem_to_hbm [thread:$0]  (%p4653_p9), %s4516_s3, 256, %s4514_s5, %s2728_s15, %s3845_s0, %s3845_s0, %s3846_s7  }
0x1350 PF: > { %s2756_s23 = sand.u32 1, %s3811_s4   ;;  %p4654_p13 = scmp.ne.s32.totalorder %s4629_s22, 0 }
0x1351   : > { %p4655_p0 = scmp.ge.s32.totalorder %s3823_s25, 2  ;;  %s2757_s1 = scalar_lea.sflag [#allocation5], %s2756_s23 }
0x1353   : > { %p3296_p2 = pnand %p4655_p0, %p4654_p13 }
0x1355   : > { %3806 = dma.done.wait (!%p3296_p2), %s2757_s1, 256  }
0x1356   : > { %3808 = vsyncadd (!%p3296_p2), %s2757_s1, 4294967040  ;;  %p39_p8 = scmp.ge.s32.totalorder %s4158_s6, 4   ;;  %s4656_s4 = smov %s3815_s30 }
0x1357   : > { %s4657_s30 = smov %s3819_s24  ;;  %s4658_s24 = smov %s4169_s29 }
0x1358   : > { %s4659_s25 = smov %s4158_s6  ;;  %41 = sbr.rel (!%p39_p8) target bundleno = 27 (0x1b), region = 181 }
0x135f   :  { %2762 = vsyncpa [#allocation4], 1 }
0x1360   :  { %2764 = vsyncpa [#allocation4 + $0x1], 1 }
0x1361   :  { %2765 = vsyncpa [#allocation7], 1 }
0x1362   :  { %2766 = vsyncpa [#allocation10], 1 }
0x1363   :  { %2767 = vsyncpa [#allocation13], 1 }
0x1364   :  { %2768 = vsyncpa [#allocation5], 1 }
0x1365   :  { %2770 = vsyncpa [#allocation5 + $0x1], 1 }

// kernel: tpu_custom_call.1
= control target key start
LH: loop header
LB: loop body
LE: loop exit
PB: predicated region body
PF: predicated region fallthrough
CT: control target
= control target key end

     0   :  { %s4754_s0 = inlined_call_operand.hbm [shape: f32[2,16,128], index: 0, kind: input, shape index: {}]   ;;  %s4755_s1 = inlined_call_operand.vmem [shape: f32[1,128], index: 1, kind: input, shape index: {}]   ;;  %s4756_s2 = inlined_call_operand.vmem [shape: f32[1,128], index: 2, kind: input, shape index: {}]   ;;  %s4757_s3 = inlined_call_operand.hbm [shape: bf16[128,128], index: 3, kind: input, shape index: {}]   ;;  %s4758_s4 = inlined_call_operand.vmem [shape: f32[1,128], index: 4, kind: input, shape index: {}]   ;;  %s4759_s5 = inlined_call_operand.hbm [shape: bf16[128,128], index: 5, kind: input, shape index: {}]   ;;  %s4760_s6 = inlined_call_operand.vmem [shape: f32[1,128], index: 6, kind: input, shape index: {}]   ;;  %s4761_s7 = inlined_call_operand.hbm [shape: bf16[128,128], index: 7, kind: input, shape index: {}]   ;;  %s4762_s8 = inlined_call_operand.vmem [shape: f32[1,128], index: 8, kind: input, shape index: {}]   ;;  %s4763_s9 = inlined_call_operand.hbm [shape: bf16[128,128], index: 9, kind: input, shape index: {}]   ;;  %s4764_s10 = inlined_call_operand.vmem [shape: f32[1,128], index: 10, kind: input, shape index: {}]   ;;  %s4765_s11 = inlined_call_operand.vmem [shape: f32[1,128], index: 11, kind: input, shape index: {}]   ;;  %s4766_s12 = inlined_call_operand.vmem [shape: f32[1,128], index: 12, kind: input, shape index: {}]   ;;  %s4767_s13 = inlined_call_operand.vmem [shape: f32[3,128], index: 13, kind: input, shape index: {}]   ;;  %s4768_s14 = inlined_call_operand.vmem [shape: f32[1,128], index: 14, kind: input, shape index: {}]   ;;  %s4769_s15 = inlined_call_operand.vmem [shape: f32[1,128], index: 15, kind: input, shape index: {}]   ;;  %s4770_s16 = inlined_call_operand.vmem [shape: f32[1,128], index: 16, kind: input, shape index: {}]   ;;  %s4771_s17 = inlined_call_operand.vmem [shape: f32[1,128], index: 17, kind: input, shape index: {}]   ;;  %s4772_s18 = inlined_call_operand.vmem [shape: f32[1,128], index: 18, kind: input, shape index: {}]   ;;  %s4773_s19 = inlined_call_operand.hbm [shape: bf16[128,512], index: 19, kind: input, shape index: {}]   ;;  %s4774_s20 = inlined_call_operand.vmem [shape: f32[1,512], index: 20, kind: input, shape index: {}]   ;;  %s4775_s21 = inlined_call_operand.hbm [shape: bf16[512,128], index: 21, kind: input, shape index: {}]   ;;  %s4776_s22 = inlined_call_operand.vmem [shape: f32[1,128], index: 22, kind: input, shape index: {}]   ;;  %s4777_s23 = inlined_call_operand.hbm [shape: f32[2,16,128], index: 23, kind: output, shape index: {}]  }
   0x1   :  { %4793 = sst [smem:[#allocation21_spill]] %s4754_s0 }
   0x2   :  { %4794 = sst [smem:[#allocation22_spill]] %s4755_s1 }
   0x3   :  { %4795 = sst [smem:[#allocation23_spill]] %s4756_s2 }
   0x4   :  { %4796 = sst [smem:[#allocation24_spill]] %s4757_s3 }
   0x5   :  { %4797 = sst [smem:[#allocation25_spill]] %s4758_s4 }
   0x6   :  { %4798 = sst [smem:[#allocation26_spill]] %s4759_s5 }
   0x7   :  { %4799 = sst [smem:[#allocation27_spill]] %s4760_s6 }
   0x8   :  { %4800 = sst [smem:[#allocation28_spill]] %s4761_s7 }
   0x9   :  { %4801 = sst [smem:[#allocation29_spill]] %s4766_s12 }
   0xa   :  { %4802 = sst [smem:[#allocation30_spill]] %s4767_s13 }
   0xb   :  { %4803 = sst [smem:[#allocation31_spill]] %s4768_s14 }
   0xc   :  { %4804 = sst [smem:[#allocation32_spill]] %s4769_s15 }
   0xd   :  { %4805 = sst [smem:[#allocation33_spill]] %s4770_s16 }
   0xe   :  { %4806 = sst [smem:[#allocation34_spill]] %s4771_s17 }
   0xf   :  { %4807 = sst [smem:[#allocation35_spill]] %s4772_s18 }
  0x10   :  { %4808 = sst [smem:[#allocation36_spill]] %s4774_s20 }
  0x11   :  { %4809 = sst [smem:[#allocation37_spill]] %s4776_s22 }
  0x12   :  { %4810 = sst [smem:[#allocation38_spill]] %s4777_s23 }
  0x13   :  { %28 = vsyncpa [#allocation4], 0 }
  0x14   :  { %30 = vsyncpa [#allocation4 + $0x1], 0 }
  0x15   :  { %31 = vsyncpa [#allocation7], 0 }
  0x16   :  { %32 = vsyncpa [#allocation10], 0 }
  0x17   :  { %33 = vsyncpa [#allocation13], 0 }
  0x18   :  { %34 = vsyncpa [#allocation5], 0 }
  0x19   :  { %36 = vsyncpa [#allocation5 + $0x1], 0  ;;  %s4166_s4 = smov 0   ;;  %s4168_s30 = smov 0  }
  0x1a   :  { %s4170_s24 = smov 0   ;;  %s4172_s25 = smov 0  }
  0x1b LB: > { %s4024_s5 = smov [#allocation6]   ;;  %s4187_s26 = sadd.s32 4294967295, %s4022_s25   ;;  %s4022_s25 = sphi %s4172_s25, %s4853_s25   ;;  %s4018_s24 = sphi %s4170_s24, %s4852_s24   ;;  %s4014_s30 = sphi %s4168_s30, %s4851_s30   ;;  %s4010_s4 = sphi %s4166_s4, %s4850_s4  }
  0x1c   : > { %s579_s1 = sshll.u32 %s4024_s5, 4  ;;  %p3033_p0 = scmp.ge.s32.totalorder %s4022_s25, 1  ;;  %s4192_s1 = int_to_ptr.vmem [resolvable:$true] %s579_s1 }
  0x1d   : > { %p4790_p1 = scmp.eq.s32.totalorder %s4187_s26, 0  ;;  %p561_p2 = scmp.lt.s32.totalorder %s4022_s25, 3 }
  0x1e   : > { %s4025_s6 = smov [#allocation9]   ;;  %s4026_s28 = smov [#allocation12]  }
  0x1f   : > { %p4194_p3 = pnand %p3033_p0, %p561_p2  ;;  %s611_s27 = sshll.u32 %s4025_s6, 4  ;;  %s4207_s27 = int_to_ptr.vmem [resolvable:$true] %s611_s27 }
  0x20   : > { %s667_s29 = sshll.u32 %s4026_s28, 4  ;;  %s4813_s5 = sld [smem:[#allocation24_spill]]  ;;  %s4209_s29 = int_to_ptr.vmem [resolvable:$true] %s667_s29 }
  0x21   : > { %s4811_s2 = scalar_select %p4194_p3, 1, 0 }
  0x22   : > { %p3471_p5 = pneg %p4194_p3 }
  0x24   : > { %p4203_p6 = pnand %p3471_p5, %p4790_p1 }
  0x26   : > { %s3746_s23 = scalar_lea.hbm %s4813_s5, 1024  ;;  %p4219_p8 = pneg %p4203_p6 }
  0x27   : > { %p3747_p7 = scmp.ne.s32.totalorder %s4813_s5, %s3746_s23  ;;  %p3753_p11 = scmp.lt.u32.totalorder %s3746_s23, %s4813_s5 }
  0x29   : > { %p3749_p9 = pnand %p4219_p8, %p3747_p7 }
  0x2b   : > { %p3750_p10 = pneg %p3749_p9 }
  0x2d   : > { %p3755_p12 = pnand %p3753_p11, %p3750_p10 }
  0x2f   : > { %3758 = shalt.err (!%p3755_p12)
}
  0x30   : > { %s3759_s20 = scalar_lea.vmem %s4192_s1, 1024  ;;  %p3767_p5 = scmp.lt.s32.totalorder %s4192_s1, %s4192_s1 }
  0x31   : > { %p3760_p13 = scmp.ne.s32.totalorder %s4192_s1, %s3759_s20  ;;  %p3768_p4 = scmp.lt.s32.totalorder %s3759_s20, %s3759_s20 }
  0x33   : > { %p3762_p0 = pnand %p3760_p13, %p4219_p8  ;;  %p3769_p7 = por %p3768_p4, %p3767_p5 }
  0x35   : > { %p3763_p2 = pneg %p3762_p0 }
  0x37   : > { %p3770_p9 = pnand %p3769_p7, %p3763_p2 }
  0x39   : > { %3773 = shalt.err (!%p3770_p9)
}
  0x3a   : > { %s4784_s22 = smov 64   ;;  %s4786_s18 = smov 4  }
  0x3b   : > { %3474 = dma.hbm_to_vmem [thread:$0]  (!%p4203_p6), %s4813_s5, 1024, %s4192_s1, [#allocation7], %s4784_s22, %s4784_s22, %s4786_s18  }
  0x3c   : > { %s4815_s17 = sld [smem:[#allocation28_spill]] }
  0x42   : > { %s3774_s20 = scalar_lea.hbm %s4815_s17, 1024 }
  0x43   : > { %p3775_p4 = scmp.ne.s32.totalorder %s4815_s17, %s3774_s20  ;;  %p3781_p12 = scmp.lt.u32.totalorder %s3774_s20, %s4815_s17 }
  0x45   : > { %p3777_p10 = pnand %p3775_p4, %p4219_p8 }
  0x47   : > { %p3778_p11 = pneg %p3777_p10 }
  0x49   : > { %p3783_p13 = pnand %p3781_p12, %p3778_p11 }
  0x4b   : > { %3786 = shalt.err (!%p3783_p13)
}
  0x4c   : > { %s3787_s1 = scalar_lea.vmem %s4207_s27, 1024  ;;  %p3795_p7 = scmp.lt.s32.totalorder %s4207_s27, %s4207_s27 }
  0x4d   : > { %p3788_p0 = scmp.ne.s32.totalorder %s4207_s27, %s3787_s1  ;;  %p3796_p9 = scmp.lt.s32.totalorder %s3787_s1, %s3787_s1 }
  0x4f   : > { %p3790_p2 = pnand %p3788_p0, %p4219_p8  ;;  %p3797_p4 = por %p3796_p9, %p3795_p7 }
  0x51   : > { %p3791_p5 = pneg %p3790_p2 }
  0x53   : > { %p3798_p10 = pnand %p3797_p4, %p3791_p5 }
  0x55   : > { %3801 = shalt.err (!%p3798_p10)
}
  0x56   : > { %3480 = dma.hbm_to_vmem [thread:$0]  (!%p4203_p6), %s4815_s17, 1024, %s4207_s27, [#allocation10], %s4784_s22, %s4784_s22, %s4786_s18  }
  0x57   : > { %s3802_s23 = scalar_lea.hbm %s4773_s19, 4096 }
  0x58   : > { %p3803_p11 = scmp.ne.s32.totalorder %s4773_s19, %s3802_s23  ;;  %p3809_p0 = scmp.lt.u32.totalorder %s3802_s23, %s4773_s19 }
  0x5a   : > { %p3805_p12 = pnand %p3803_p11, %p4219_p8 }
  0x5c   : > { %p3806_p13 = pneg %p3805_p12 }
  0x5e   : > { %p3811_p2 = pnand %p3809_p0, %p3806_p13 }
  0x60   : > { %3814 = shalt.err (!%p3811_p2)
}
  0x61   : > { %s3815_s27 = scalar_lea.vmem %s4209_s29, 4096  ;;  %p3823_p4 = scmp.lt.s32.totalorder %s4209_s29, %s4209_s29 }
  0x62   : > { %p3816_p5 = scmp.ne.s32.totalorder %s4209_s29, %s3815_s27  ;;  %p3824_p10 = scmp.lt.s32.totalorder %s3815_s27, %s3815_s27 }
  0x64   : > { %p3818_p7 = pnand %p3816_p5, %p4219_p8  ;;  %p3825_p11 = por %p3824_p10, %p3823_p4 }
  0x66   : > { %p3819_p9 = pneg %p3818_p7 }
  0x68   : > { %p3826_p12 = pnand %p3825_p11, %p3819_p9 }
  0x6a   : > { %3829 = shalt.err (!%p3826_p12)
}
  0x6b   : > { %s4029_s1 = smov 256   ;;  %s4030_s13 = smov 16  }
  0x6c   : > { %3486 = dma.hbm_to_vmem [thread:$0]  (!%p4203_p6), %s4773_s19, 4096, %s4209_s29, [#allocation13], %s4029_s1, %s4029_s1, %s4030_s13  }
  0x6d   : > { %s4031_s16 = smov [#allocation8]   ;;  %s4032_s3 = smov [#allocation11]  }
  0x6e   : > { %s595_s23 = sshll.u32 %s4031_s16, 4  ;;  %s627_s0 = sshll.u32 %s4032_s3, 4  ;;  %s596_s23 = int_to_ptr.vmem [resolvable:$true] %s595_s23  ;;  %s628_s0 = int_to_ptr.vmem [resolvable:$true] %s627_s0 }
  0x6f   : > { %s4816_s27 = sld [smem:[#allocation26_spill]] }
  0x75   : > { %s3830_s22 = scalar_lea.hbm %s4816_s27, 1024 }
  0x76   : > { %p3831_p13 = scmp.ne.s32.totalorder %s4816_s27, %s3830_s22  ;;  %p3837_p5 = scmp.lt.u32.totalorder %s3830_s22, %s4816_s27 }
  0x78   : > { %p3833_p0 = pnand %p3831_p13, %p4219_p8 }
  0x7a   : > { %p3834_p2 = pneg %p3833_p0 }
  0x7c   : > { %p3839_p7 = pnand %p3837_p5, %p3834_p2 }
  0x7e   : > { %3842 = shalt.err (!%p3839_p7)
}
  0x7f   : > { %s3843_s29 = scalar_lea.vmem %s596_s23, 1024  ;;  %p3851_p11 = scmp.lt.s32.totalorder %s596_s23, %s596_s23 }
  0x80   : > { %p3844_p9 = scmp.ne.s32.totalorder %s596_s23, %s3843_s29  ;;  %p3852_p12 = scmp.lt.s32.totalorder %s3843_s29, %s3843_s29 }
  0x82   : > { %p3846_p4 = pnand %p3844_p9, %p4219_p8  ;;  %p3853_p1 = por %p3852_p12, %p3851_p11 }
  0x84   : > { %p3847_p10 = pneg %p3846_p4 }
  0x86   : > { %p3854_p3 = pnand %p3853_p1, %p3847_p10 }
  0x88   : > { %3857 = shalt.err (!%p3854_p3)
}
  0x89   : > { %s4817_s5 = smov 4   ;;  %s4818_s18 = smov 64  }
  0x8a   : > { %3477 = dma.hbm_to_vmem [thread:$0]  (!%p4203_p6), %s4816_s27, 1024, %s596_s23, [#allocation7], %s4818_s18, %s4818_s18, %s4817_s5  }
  0x8b   : > { %s3858_s13 = scalar_lea.hbm %s4763_s9, 1024 }
  0x8c   : > { %p3859_p1 = scmp.ne.s32.totalorder %s4763_s9, %s3858_s13  ;;  %p3865_p0 = scmp.lt.u32.totalorder %s3858_s13, %s4763_s9 }
  0x8e   : > { %p3861_p3 = pnand %p3859_p1, %p4219_p8 }
  0x90   : > { %p3862_p13 = pneg %p3861_p3 }
  0x92   : > { %p3867_p2 = pnand %p3865_p0, %p3862_p13 }
  0x94   : > { %3870 = shalt.err (!%p3867_p2)
}
  0x95   : > { %s3871_s28 = scalar_lea.vmem %s628_s0, 1024  ;;  %p3879_p4 = scmp.lt.s32.totalorder %s628_s0, %s628_s0 }
  0x96   : > { %p3872_p5 = scmp.ne.s32.totalorder %s628_s0, %s3871_s28  ;;  %p3880_p10 = scmp.lt.s32.totalorder %s3871_s28, %s3871_s28 }
  0x98   : > { %p3874_p7 = pnand %p3872_p5, %p4219_p8  ;;  %p3881_p11 = por %p3880_p10, %p3879_p4 }
  0x9a   : > { %p3875_p9 = pneg %p3874_p7 }
  0x9c   : > { %p3882_p12 = pnand %p3881_p11, %p3875_p9 }
  0x9e   : > { %3885 = shalt.err (!%p3882_p12)
}
  0x9f   : > { %3483 = dma.hbm_to_vmem [thread:$0]  (!%p4203_p6), %s4763_s9, 1024, %s628_s0, [#allocation10], %s4818_s18, %s4818_s18, %s4817_s5  }
  0xa0   : > { %s4033_s29 = smov [#allocation14]   ;;  %s3886_s1 = scalar_lea.hbm %s4775_s21, 4096 }
  0xa1   : > { %s683_s12 = sshll.u32 %s4033_s29, 4  ;;  %p3887_p1 = scmp.ne.s32.totalorder %s4775_s21, %s3886_s1  ;;  %s684_s12 = int_to_ptr.vmem [resolvable:$true] %s683_s12 }
  0xa2   : > { %p3893_p0 = scmp.lt.u32.totalorder %s3886_s1, %s4775_s21 }
  0xa3   : > { %p3889_p3 = pnand %p3887_p1, %p4219_p8 }
  0xa5   : > { %p3890_p13 = pneg %p3889_p3 }
  0xa7   : > { %p3895_p2 = pnand %p3893_p0, %p3890_p13 }
  0xa9   : > { %3898 = shalt.err (!%p3895_p2)
}
  0xaa   : > { %s3899_s0 = scalar_lea.vmem %s684_s12, 4096  ;;  %p3907_p4 = scmp.lt.s32.totalorder %s684_s12, %s684_s12 }
  0xab   : > { %p3900_p5 = scmp.ne.s32.totalorder %s684_s12, %s3899_s0  ;;  %p3908_p10 = scmp.lt.s32.totalorder %s3899_s0, %s3899_s0 }
  0xad   : > { %p3902_p7 = pnand %p3900_p5, %p4219_p8  ;;  %p3909_p11 = por %p3908_p10, %p3907_p4 }
  0xaf   : > { %p3903_p9 = pneg %p3902_p7 }
  0xb1   : > { %p3910_p12 = pnand %p3909_p11, %p3903_p9 }
  0xb3   : > { %3913 = shalt.err (!%p3910_p12)
}
  0xb4   : > { %3489 = dma.hbm_to_vmem [thread:$0]  (!%p4203_p6), %s4775_s21, 4096, %s684_s12, [#allocation13], %s4818_s18, %s4818_s18, %s4817_s5  }
  0xb5   : > { %s3032_s7 = sadd.s32 4294967294, %s4022_s25   ;;  %s4357_s6 = sadd.s32 1, %s4022_s25  }
  0xb6   : > { %s46_s23 = ssub.s32 %s4022_s25, %s4357_s6  ;;  %s49_s20 = sadd.s32 1, %s4018_s24 }
  0xb7   : > { %p47_p8 = scmp.eq.s32.totalorder %s46_s23, 0  ;;  %p56_p1 = scmp.ne.s32.totalorder %s4018_s24, %s4014_s30 }
  0xb8   : > { %p57_p3 = scmp.eq.s32.totalorder %s4022_s25, 0  ;;  %p62_p13 = scmp.ne.s32.totalorder %s4014_s30, %s4010_s4 }
  0xb9   : > { %s4368_s29 = scalar_select %p47_p8, %s4018_s24, %s49_s20  }
  0xba   : > { %p4370_p0 = por %p57_p3, %p56_p1  ;;  %p4820_p2 = scmp.eq.s32.totalorder %s4187_s26, 0 }
  0xbb   : > { %p548_p5 = scmp.eq.s32.totalorder %s4187_s26, 1  ;;  %p554_p7 = scmp.eq.s32.totalorder %s3032_s7, 1 }
  0xbc   : > { %p4376_p6 = por %p4820_p2, %p62_p13  ;;  %p3504_p9 = scmp.lt.s32.totalorder %s4022_s25, 2 }
  0xbd   : > { %s700_s18 = sand.u32 1, %s4018_s24   ;;  %p4383_p4 = por %p548_p5, %p56_p1 }
  0xbe   : > { %p4387_p10 = por %p554_p7, %p62_p13  ;;  %s3041_s1 = sshll.u32 %s700_s18, 4 }
  0xbf   : > { %s4822_s12 = scalar_select %p4383_p4, 1, 0 }
  0xc0   : > { %s4823_s22 = scalar_select %p4387_p10, 1, 0 }
  0xc1   : > { %s3187_s13 = sshll.u32 %s4022_s25, 8  ;;  %s4824_s16 = sld [smem:[#allocation21_spill]] }
  0xc2   : > { %s704_s3 = scalar_lea.vmem [#allocation3], %s3041_s1  ;;  %p4401_p11 = pnand %p3504_p9, %p4370_p0 }
  0xc3   : > { %s711_s28 = sshll.u32 %s704_s3, 4  ;;  %s4405_s23 = scalar_lea.sflag [#allocation4], %s700_s18  ;;  %s4397_s28 = int_to_ptr.vmem [resolvable:$true] %s711_s28 }
  0xc4   : > { %p3916_p8 = pneg %p4401_p11 }
  0xc7   : > { %s4395_s0 = scalar_lea.hbm %s4824_s16, %s3187_s13  ;;  %s3919_s17 = scalar_lea.hbm %s4824_s16, 512 }
  0xc8   : > { %s3914_s20 = scalar_lea.hbm %s4395_s0, 256  ;;  %p3920_p13 = scmp.lt.u32.totalorder %s4395_s0, %s4824_s16 }
  0xc9   : > { %p3915_p12 = scmp.ne.s32.totalorder %s4395_s0, %s3914_s20  ;;  %p3921_p0 = scmp.lt.u32.totalorder %s3919_s17, %s3914_s20 }
  0xca   : > { %p3923_p5 = scmp.lt.u32.totalorder %s3914_s20, %s4395_s0 }
  0xcb   : > { %p3917_p1 = pnand %p3916_p8, %p3915_p12  ;;  %p3922_p2 = por %p3921_p0, %p3920_p13 }
  0xcd   : > { %p3918_p3 = pneg %p3917_p1  ;;  %p3924_p7 = por %p3923_p5, %p3922_p2 }
  0xcf   : > { %p3925_p9 = pnand %p3924_p7, %p3918_p3 }
  0xd1   : > { %3928 = shalt.err (!%p3925_p9)
}
  0xd2   : > { %s3929_s18 = scalar_lea.vmem %s4397_s28, 256  ;;  %s4034_s3 = smov [#allocation3]  }
  0xd3   : > { %p3930_p12 = scmp.ne.s32.totalorder %s4397_s28, %s3929_s18  ;;  %s3934_s1 = sshll.u32 %s4034_s3, 4  ;;  %s3935_s1 = int_to_ptr.vmem [resolvable:$false] %s3934_s1 }
  0xd4   : > { %s3936_s13 = scalar_lea.vmem %s3935_s1, 512  ;;  %p3937_p4 = scmp.lt.s32.totalorder %s4397_s28, %s3935_s1 }
  0xd5   : > { %p3932_p1 = pnand %p3930_p12, %p3916_p8  ;;  %p3938_p13 = scmp.lt.s32.totalorder %s3936_s13, %s3929_s18 }
  0xd7   : > { %p3933_p10 = pneg %p3932_p1  ;;  %p3939_p0 = por %p3938_p13, %p3937_p4 }
  0xd9   : > { %p3940_p2 = pnand %p3939_p0, %p3933_p10 }
  0xdb   : > { %3943 = shalt.err (!%p3940_p2)
}
  0xdc   : > { %s4035_s20 = smov 128   ;;  %s4036_s17 = smov 8  }
  0xdd   : > { %3493 = dma.hbm_to_vmem [thread:$0]  (!%p4401_p11), %s4395_s0, 256, %s4397_s28, %s4405_s23, %s4035_s20, %s4035_s20, %s4036_s17  }
  0xde   : > { %p4826_p8 = scmp.ne.s32.totalorder %s4811_s2, 0 }
  0xdf   : > { %s4436_s14 = sand.u32 (!%p4826_p8), 1, %s4014_s30  }
  0xe0   : > { %723 = sbr.rel (%p4826_p8) target bundleno = 4635 (0x121b), region = 112  ;;  %s3045_s15 = sshll.u32 (!%p4826_p8), %s4436_s14, 4 }
  0xe1   : > { %s726_s18 = scalar_lea.sflag (!%p4826_p8), [#allocation4], %s4436_s14  ;;  %s4442_s3 = scalar_lea.vmem (!%p4826_p8), [#allocation3], %s3045_s15 }
  0xe7   : > { %3989 = dma.done.wait (%p4376_p6), %s726_s18, 256  }
  0xe8   : > { %3991 = vsyncadd (%p4376_p6), %s726_s18, 4294967040  ;;  %p4827_p4 = scmp.eq.s32.totalorder %s4187_s26, 0 }
  0xea   : > { %3993 = dma.done.wait (%p4827_p4), [#allocation7], 2048   ;;  %p4828_p10 = pmov %p4827_p4 }
  0xeb   : > { %p4829_p11 = pmov %p4827_p4 }
  0xec   : > { %3995 = vsyncadd (%p4828_p10), [#allocation7], 4294965248 }
  0xed   : > { %3997 = dma.done.wait (%p4829_p11), [#allocation10], 2048   ;;  %p4830_p3 = pmov %p4827_p4 }
  0xef   : > { %3999 = vsyncadd (%p4830_p3), [#allocation10], 4294965248  ;;  %p4831_p5 = pmov %p4830_p3 }
  0xf0   : > { %p4832_p7 = pmov %p4830_p3 }
  0xf1   : > { %4001 = dma.done.wait (%p4831_p5), [#allocation13], 8192  }
  0xf2   : > { %4003 = vsyncadd (%p4832_p7), [#allocation13], 4294959104  ;;  %v817_v0 = vld [vmem:[%s4442_s3] sm:$0xff]  ;;  %v818_v1 = vld [vmem:[%s4442_s3 + $0x8] sm:$0xff]  ;;  %v4037_v5 = vmov 0.0   ;;  %vm4038_vm0 = vmmov 0  }
  0xf3   : > { %821 = vadd.xlane.f32.xlu0 %v817_v0  ;;  %v3564_v2 = vld [vmem:[#allocation6] sm:$0xff]   ;;  %v3566_v4 = vld [vmem:[#allocation6 + $0x8] sm:$0xff]   ;;  %3293 = vmatprep.subr.bf16.mxu0 %v4037_v5  ;;  %v3568_v15 = vld [vmem:[#allocation6 + $0x10] sm:$0xff]   ;;  %s4833_s0 = sld [smem:[#allocation22_spill]]  ;;  %s4834_s23 = sld [smem:[#allocation23_spill]]  ;;  %vm1200_vm1 = vcmask 261120  }
  0xf4   : > { %v3565_v3 = vld [vmem:[#allocation8] sm:$0xff]   ;;  %3313 = vmatprep.subr.bf16.mxu1 %v4037_v5  ;;  %3294 = vmatpush3.bf16.msra.mxu0 %v3564_v2  ;;  %v3567_v14 = vld [vmem:[#allocation8 + $0x8] sm:$0xff]   ;;  %v3569_v16 = vld [vmem:[#allocation8 + $0x10] sm:$0xff]   ;;  %s4835_s20 = sld [smem:[#allocation25_spill]]  ;;  %s4836_s2 = sld [smem:[#allocation27_spill]]  ;;  %vm1250_vm2 = vcmask 130048  }
  0xf5   : > { %3314 = vmatpush3.bf16.msra.mxu1 %v3565_v3  ;;  %3295 = vmatprep.subr.bf16.mxu0 %v4037_v5  ;;  %v3570_v17 = vld [vmem:[#allocation6 + $0x18] sm:$0xff]   ;;  %v3572_v19 = vld [vmem:[#allocation6 + $0x20] sm:$0xff]   ;;  %v3574_v21 = vld [vmem:[#allocation6 + $0x28] sm:$0xff]   ;;  %s4039_s28 = smov 96   ;;  %s4040_s7 = smov 64   ;;  %vm1454_vm3 = vcmask 523520  }
  0xf6   : > { %3315 = vmatprep.subr.bf16.mxu1 %v4037_v5  ;;  %v3571_v18 = vld [vmem:[#allocation8 + $0x18] sm:$0xff]   ;;  %v3573_v20 = vld [vmem:[#allocation8 + $0x20] sm:$0xff]   ;;  %3309 = vmatprep.mubr.msk.bf16.mxu0 %vm4038_vm0, %v4037_v5  ;;  %v3575_v22 = vld [vmem:[#allocation8 + $0x28] sm:$0xff]   ;;  %vm1588_vm4 = vcmask 785920   ;;  %vm1722_vm5 = vcmask 1048320   ;;  %s4839_s17 = sld [smem:[#allocation31_spill]] }
  0xf7   : > { %823 = vadd.xlane.f32.xlu0 %v818_v1  ;;  %3329 = vmatprep.mubr.msk.bf16.mxu1 %vm4038_vm0, %v4037_v5  ;;  %v3576_v23 = vld [vmem:[#allocation6 + $0x30] sm:$0xff]   ;;  %v3578_v25 = vld [vmem:[#allocation6 + $0x38] sm:$0xff]   ;;  %v3580_v43 = vld [vmem:[#allocation9] sm:$0xff]   ;;  %s4840_s5 = sld [smem:[#allocation32_spill]]  ;;  %s4843_s18 = sld [smem:[#allocation35_spill]] }
  0xf8   : > { %3296 = vmatpush3.bf16.msra.mxu0 %v3566_v4  ;;  %v3577_v24 = vld [vmem:[#allocation8 + $0x30] sm:$0xff]   ;;  %v3579_v26 = vld [vmem:[#allocation8 + $0x38] sm:$0xff]   ;;  %v3581_v45 = vld [vmem:[#allocation9 + $0x8] sm:$0xff]   ;;  %s4845_s1 = sld [smem:[#allocation37_spill]]  ;;  %s815_s13 = scalar_lea.vmem [#allocation15], %s3045_s15 }
  0xf9   : > { %3297 = vmatprep.subr.bf16.mxu0 %v4037_v5  ;;  %3316 = vmatpush3.bf16.msra.mxu1 %v3567_v14  ;;  %v3053_v35 = vld [vmem:[%s4833_s0] ss:$0 sm:$0xff]  ;;  %v3583_v47 = vld [vmem:[#allocation9 + $0x18] sm:$0xff]   ;;  %v3584_v48 = vld [vmem:[#allocation9 + $0x20] sm:$0xff]   ;;  %s4844_s0 = sld [smem:[#allocation36_spill]]  ;;  %s2889_s15 = scalar_lea.sflag [#allocation5], %s4436_s14 }
  0xfa   : > { %3317 = vmatprep.subr.bf16.mxu1 %v4037_v5  ;;  %v3054_v39 = vld [vmem:[%s4834_s23] ss:$0 sm:$0xff]  ;;  %v3585_v49 = vld [vmem:[#allocation9 + $0x28] sm:$0xff]   ;;  %v3587_v51 = vld [vmem:[#allocation9 + $0x38] sm:$0xff]   ;;  %s4041_s23 = smov 32   ;;  %p4847_p9 = scmp.ne.s32.totalorder %s4822_s12, 0 }
  0xfb   : > { %v3582_v46 = vld [vmem:[#allocation9 + $0x10] sm:$0xff]  }
  0xfc   : > { %3298 = vmatpush3.bf16.msra.mxu0 %v3568_v15  ;;  %v3586_v50 = vld [vmem:[#allocation9 + $0x30] sm:$0xff]  }
  0xfd   : > { %3318 = vmatpush3.bf16.msra.mxu1 %v3569_v16  ;;  %3299 = vmatprep.subr.bf16.mxu0 %v4037_v5  ;;  %v3055_v52 = vld [vmem:[%s4835_s20] ss:$0 sm:$0xff]  ;;  %s3188_s20 = sshll.u32 %s4187_s26, 8  ;;  %s4043_s26 = smov [#allocation15]  }
  0xfe   : > { %3319 = vmatprep.subr.bf16.mxu1 %v4037_v5  ;;  %v3064_v54 = vld [vmem:[%s4836_s2] ss:$0 sm:$0xff]  ;;  %s4837_s2 = sld [smem:[#allocation29_spill]] }
 0x100   : > { %3300 = vmatpush3.bf16.msra.mxu0 %v3570_v17 }
 0x101   : > { %3320 = vmatpush3.bf16.msra.mxu1 %v3571_v18  ;;  %3301 = vmatprep.subr.bf16.mxu0 %v4037_v5 }
 0x102   : > { %3321 = vmatprep.subr.bf16.mxu1 %v4037_v5 }
 0x104   : > { %3302 = vmatpush3.bf16.msra.mxu0 %v3572_v19 }
 0x105   : > { %3322 = vmatpush3.bf16.msra.mxu1 %v3573_v20  ;;  %3303 = vmatprep.subr.bf16.mxu0 %v4037_v5 }
 0x106   : > { %3323 = vmatprep.subr.bf16.mxu1 %v4037_v5 }
 0x108   : > { %3304 = vmatpush3.bf16.msra.mxu0 %v3574_v21 }
 0x109   : > { %3324 = vmatpush3.bf16.msra.mxu1 %v3575_v22  ;;  %3305 = vmatprep.subr.bf16.mxu0 %v4037_v5 }
 0x10a   : > { %3325 = vmatprep.subr.bf16.mxu1 %v4037_v5 }
 0x10c   : > { %3306 = vmatpush3.bf16.msra.mxu0 %v3576_v23 }
 0x10d   : > { %3326 = vmatpush3.bf16.msra.mxu1 %v3577_v24  ;;  %3307 = vmatprep.subr.bf16.mxu0 %v4037_v5 }
 0x10e   : > { %3327 = vmatprep.subr.bf16.mxu1 %v4037_v5 }
 0x110   : > { %3308 = vmatpush3.bf16.msra.mxu0 %v3578_v25 }
 0x111   : > { %3328 = vmatpush3.bf16.msra.mxu1 %v3579_v26  ;;  %3333 = vmatprep.subr.bf16.mxu0 %v4037_v5 }
 0x112   : > { %3353 = vmatprep.subr.bf16.mxu1 %v4037_v5 }
 0x180   : > { %v822_v6 = vpop.xlane.xlu0 %821 }
 0x181   : > { %v826_v7 = vmul.f32 0.0078125, %v822_v6  ;;  %v3073_v6 = vld [vmem:[%s4762_s8] ss:$0 sm:$0xff] }
 0x183   : > { %v828_v8 = vsub.f32 %v817_v0, %v826_v7 }
 0x184   : > { %v824_v9 = vpop.xlane.xlu0 %823 }
 0x185   : > { %v827_v10 = vmul.f32 0.0078125, %v824_v9  ;;  %v830_v11 = vmul.f32 %v828_v8, %v828_v8 }
 0x187   : > { %v829_v12 = vsub.f32 %v818_v1, %v827_v10  ;;  %832 = vadd.xlane.f32.xlu1 %v830_v11 }
 0x189   : > { %v831_v13 = vmul.f32 %v829_v12, %v829_v12 }
 0x18b   : > { %834 = vadd.xlane.f32.xlu1 %v831_v13 }
 0x214   : > { %v833_v27 = vpop.xlane.xlu1 %832 }
 0x215   : > { %v836_v28 = vmul.f32 0.0078125, %v833_v27 }
 0x217   : > { %v838_v29 = vadd.f32 1e-05, %v836_v28 }
 0x218   : > { %v835_v30 = vpop.xlane.xlu1 %834 }
 0x219   : > { %3676 = vrsqrt.f32 %v838_v29  ;;  %v837_v31 = vmul.f32 0.0078125, %v835_v30 }
 0x21b   : > { %v839_v32 = vadd.f32 1e-05, %v837_v31 }
 0x21d   : > { %3678 = vrsqrt.f32 %v839_v32 }
 0x223   : > { %v3677_v33 = vpop.eup %3676 }
 0x224   : > { %v842_v34 = vmul.f32 %v3677_v33, %v828_v8 }
 0x226   : > { %v850_v38 = vmul.f32 %v3053_v35, %v842_v34 }
 0x227   : > { %v3679_v36 = vpop.eup %3678 }
 0x228   : > { %v843_v37 = vmul.f32 %v3679_v36, %v829_v12  ;;  %v858_v41 = vadd.f32 %v3054_v39, %v850_v38 }
 0x22a   : > { %v851_v40 = vmul.f32 %v3053_v35, %v843_v37 }
 0x22c   : > { %v859_v42 = vadd.f32 %v3054_v39, %v851_v40 }
 0x22e   : > { %v860_v44 = vpack.c.bf16 %v859_v42, %v858_v41 }
 0x230   : > { %3310 = vmatmul.mubr.bf16.vlgmr.msra.gmra.mrb[0].mxu0 %v860_v44  ;;  %3330 = vmatmul.mubr.bf16.vlgmr.msra.gmra.mrb[0].mxu1 %v860_v44 }
 0x231   : > { %3334 = vmatpush3.bf16.msra.mxu0 %v3580_v43  ;;  %3349 = vmatprep.mubr.msk.bf16.mxu0 %vm4038_vm0, %v4037_v5 }
 0x232   : > { %3335 = vmatprep.subr.bf16.mxu0 %v4037_v5  ;;  %3355 = vmatprep.mubr.msk.bf16.mxu1 %vm4038_vm0, %v4037_v5 }
 0x235   : > { %3336 = vmatpush3.bf16.msra.mxu0 %v3581_v45 }
 0x236   : > { %3337 = vmatprep.subr.bf16.mxu0 %v4037_v5 }
 0x239   : > { %3338 = vmatpush3.bf16.msra.mxu0 %v3582_v46 }
 0x23a   : > { %3339 = vmatprep.subr.bf16.mxu0 %v4037_v5 }
 0x23d   : > { %3340 = vmatpush3.bf16.msra.mxu0 %v3583_v47 }
 0x23e   : > { %3341 = vmatprep.subr.bf16.mxu0 %v4037_v5 }
 0x241   : > { %3342 = vmatpush3.bf16.msra.mxu0 %v3584_v48 }
 0x242   : > { %3343 = vmatprep.subr.bf16.mxu0 %v4037_v5 }
 0x245   : > { %3344 = vmatpush3.bf16.msra.mxu0 %v3585_v49 }
 0x246   : > { %3345 = vmatprep.subr.bf16.mxu0 %v4037_v5 }
 0x249   : > { %3346 = vmatpush3.bf16.msra.mxu0 %v3586_v50 }
 0x24a   : > { %3347 = vmatprep.subr.bf16.mxu0 %v4037_v5 }
 0x24d   : > { %3348 = vmatpush3.bf16.msra.mxu0 %v3587_v51 }
 0x24e   : > { %3389 = vmatprep.subr.bf16.mxu0 %v4037_v5 }
 0x250   : > { %3350 = vmatmul.mubr.bf16.vlgmr.msra.gmra.mrb[4].mxu0 %v860_v44 }
 0x251   : > { %3391 = vmatprep.mubr.msk.bf16.mxu0 %vm4038_vm0, %v4037_v5 }
 0x303   : > { %v966_v53 = vpop.f32.mrb[0].mxu0  ;;  %v1078_v55 = vpop.f32.mrb[0].mxu1 }
 0x304   : > { %v3311_v56 = vpop.f32.mrb[1].mxu0  ;;  %v3331_v57 = vpop.f32.mrb[1].mxu1  ;;  %v967_v60 = vadd.f32 %v3055_v52, %v966_v53  ;;  %v1079_v61 = vadd.f32 %v3064_v54, %v1078_v55 }
 0x305   : > { %v969_v58 = vpop.f32.mrb[2].mxu0  ;;  %v1081_v59 = vpop.f32.mrb[2].mxu1 }
 0x306   : > { %v970_v62 = vadd.f32 %v3055_v52, %v969_v58  ;;  %v1082_v63 = vadd.f32 %v3064_v54, %v1081_v59  ;;  %v3312_v0 = vpop.f32.mrb[3].mxu0  ;;  %v3332_v1 = vpop.f32.mrb[3].mxu1 }
 0x308   : > { %v4510_v2 = vpack.c.bf16 %v970_v62, %v967_v60  ;;  %v4512_v3 = vpack.c.bf16 %v1082_v63, %v1079_v61 }
 0x30a   : > { %v1205_v4 = vsel %vm1200_vm1, %v4512_v3, 0 }
 0x30b   : > { %3354 = vmatpush3.bf16.xpose.msra.mxu1 %v1205_v4 }
 0x30c   : > { %3359 = vmatprep.subr.bf16.mxu1 %v4037_v5 }
 0x312   : > { %3356 = vmatmul.mubr.msk.bf16.vlgmr.msra.gmra.mrb[4].mxu1 %vm1200_vm1, %v4510_v2 }
 0x313   : > { %3361 = vmatprep.mubr.msk.bf16.mxu1 %vm4038_vm0, %v4037_v5 }
 0x323   : > { %v1190_v7 = vpop.f32.mrb[4].mxu0 }
 0x324   : > { %v3351_v8 = vpop.f32.mrb[5].mxu0  ;;  %v1191_v10 = vadd.f32 %v3073_v6, %v1190_v7 }
 0x325   : > { %v1193_v9 = vpop.f32.mrb[6].mxu0 }
 0x326   : > { %v1194_v11 = vadd.f32 %v3073_v6, %v1193_v9  ;;  %v3352_v12 = vpop.f32.mrb[7].mxu0 }
 0x328   : > { %v4524_v13 = vpack.c.bf16 %v1194_v11, %v1191_v10 }
 0x32a   : > { %3360 = vmatpush3.bf16.msra.mxu1 %v4524_v13 }
 0x32b   : > { %3365 = vmatprep.subr.bf16.mxu1 %v4037_v5 }
 0x3e5   : > { %v1241_v14 = vpop.f32.mrb[4].mxu1 }
 0x3e6   : > { %v1248_v15 = vmul.f32 0.17677669, %v1241_v14  ;;  %v3357_v16 = vpop.f32.mrb[5].mxu1 }
 0x3e7   : > { %v1244_v17 = vpop.f32.mrb[6].mxu1 }
 0x3e8   : > { %v1249_v18 = vmul.f32 0.17677669, %v1244_v17  ;;  %v3358_v19 = vpop.f32.mrb[7].mxu1  ;;  %v1251_v20 = vsel %vm1250_vm2, %v1248_v15, -inf }
 0x3e9   : > { %1252 = vmax.xlane.f32.xlu0 %v1251_v20 }
 0x3ea   : > { %v1254_v21 = vsel %vm1250_vm2, %v1249_v18, -inf }
 0x3eb   : > { %1255 = vmax.xlane.f32.xlu1 %v1254_v21 }
 0x476   : > { %v1253_v22 = vpop.xlane.xlu0 %1252 }
 0x477   : > { %v1257_v23 = vsub.f32 %v1248_v15, %v1253_v22 }
 0x478   : > { %v1256_v24 = vpop.xlane.xlu1 %1255 }
 0x479   : > { %v1259_v25 = vmul.f32 1.442695, %v1257_v23  ;;  %v1258_v26 = vsub.f32 %v1249_v18, %v1256_v24 }
 0x47b   : > { %3680 = vpow2.f32 %v1259_v25  ;;  %v1261_v27 = vmul.f32 1.442695, %v1258_v26 }
 0x47d   : > { %3682 = vpow2.f32 %v1261_v27 }
 0x485   : > { %v3681_v28 = vpop.eup %3680 }
 0x486   : > { %v1263_v29 = vsel %vm1250_vm2, %v3681_v28, 0.0 }
 0x487   : > { %v3683_v30 = vpop.eup %3682  ;;  %1264 = vadd.xlane.f32.xlu0 %v1263_v29 }
 0x488   : > { %v1266_v31 = vsel %vm1250_vm2, %v3683_v30, 0.0 }
 0x489   : > { %1267 = vadd.xlane.f32.xlu1 %v1266_v31 }
 0x49a   : > { %1321 = vrot.lane.b32.xlu1 %v4510_v2, %s4039_s28 }
 0x49d   : > { %1324 = vrot.lane.b32.xlu0 %v4512_v3, %s4039_s28 }
 0x514   : > { %v1265_v32 = vpop.xlane.xlu0 %1264 }
 0x515   : > { %3684 = vrcp.f32 %v1265_v32 }
 0x516   : > { %v1268_v33 = vpop.xlane.xlu1 %1267 }
 0x517   : > { %3686 = vrcp.f32 %v1268_v33 }
 0x518   : > { %v1325_v38 = vpop.permute.xlu0 %1324 }
 0x519   : > { %v1330_v40 = vsel %vm1200_vm1, %v1325_v38, 0 }
 0x51a   : > { %v1322_v41 = vpop.permute.xlu1 %1321 }
 0x51f   : > { %v3685_v34 = vpop.eup %3684 }
 0x520   : > { %v1270_v36 = vmul.f32 %v3685_v34, %v3681_v28 }
 0x521   : > { %v3687_v35 = vpop.eup %3686 }
 0x522   : > { %v1272_v37 = vmul.f32 %v3687_v35, %v3683_v30 }
 0x524   : > { %v1273_v39 = vpack.c.bf16 %v1272_v37, %v1270_v36 }
 0x526   : > { %3362 = vmatmul.mubr.msk.bf16.vlgmr.msra.gmra.mrb[8].mxu1 %vm1250_vm2, %v1273_v39 }
 0x527   : > { %3366 = vmatpush3.bf16.xpose.msra.mxu1 %v1330_v40  ;;  %3367 = vmatprep.mubr.msk.bf16.mxu1 %vm4038_vm0, %v4037_v5 }
 0x528   : > { %3371 = vmatprep.subr.bf16.mxu1 %v4037_v5 }
 0x52e   : > { %3368 = vmatmul.mubr.msk.bf16.vlgmr.msra.gmra.mrb[12].mxu1 %vm1200_vm1, %v1322_v41 }
 0x52f   : > { %3373 = vmatprep.mubr.msk.bf16.mxu1 %vm4038_vm0, %v4037_v5 }
 0x5f9   : > { %v1311_v42 = vpop.f32.mrb[8].mxu1 }
 0x5fa   : > { %1318 = vst.msk [vmem:[#allocation2] sm:$0xff] %vm1200_vm1, %v1311_v42  ;;  %v3363_v43 = vpop.f32.mrb[9].mxu1 }
 0x5fb   : > { %v1314_v44 = vpop.f32.mrb[10].mxu1 }
 0x5fc   : > { %1319 = vst.msk [vmem:[#allocation2 + $0x8] sm:$0xff] %vm1200_vm1, %v1314_v44  ;;  %v3364_v45 = vpop.f32.mrb[11].mxu1 }
 0x601   : > { %v1366_v46 = vpop.f32.mrb[12].mxu1 }
 0x602   : > { %v1373_v47 = vmul.f32 0.17677669, %v1366_v46  ;;  %v3369_v48 = vpop.f32.mrb[13].mxu1 }
 0x603   : > { %v1369_v49 = vpop.f32.mrb[14].mxu1 }
 0x604   : > { %v1374_v50 = vmul.f32 0.17677669, %v1369_v49  ;;  %v3370_v51 = vpop.f32.mrb[15].mxu1  ;;  %v1375_v52 = vsel %vm1250_vm2, %v1373_v47, -inf }
 0x605   : > { %1376 = vmax.xlane.f32.xlu1 %v1375_v52 }
 0x606   : > { %v1378_v53 = vsel %vm1250_vm2, %v1374_v50, -inf }
 0x607   : > { %1379 = vmax.xlane.f32.xlu0 %v1378_v53 }
 0x616   : > { %1459 = vrot.lane.b32.xlu1 %v4512_v3, %s4040_s7 }
 0x692   : > { %v1377_v54 = vpop.xlane.xlu1 %1376 }
 0x693   : > { %v1381_v55 = vsub.f32 %v1373_v47, %v1377_v54 }
 0x694   : > { %v1380_v56 = vpop.xlane.xlu0 %1379 }
 0x695   : > { %v1383_v57 = vmul.f32 1.442695, %v1381_v55  ;;  %v1382_v58 = vsub.f32 %v1374_v50, %v1380_v56 }
 0x696   : > { %v1460_v0 = vpop.permute.xlu1 %1459 }
 0x697   : > { %3688 = vpow2.f32 %v1383_v57  ;;  %v1385_v59 = vmul.f32 1.442695, %v1382_v58  ;;  %v1465_v14 = vsel %vm1200_vm1, %v1460_v0, 0 }
 0x699   : > { %3690 = vpow2.f32 %v1385_v59 }
 0x6a1   : > { %v3689_v60 = vpop.eup %3688 }
 0x6a2   : > { %v1387_v61 = vsel %vm1250_vm2, %v3689_v60, 0.0 }
 0x6a3   : > { %v3691_v62 = vpop.eup %3690  ;;  %1388 = vadd.xlane.f32.xlu0 %v1387_v61 }
 0x6a4   : > { %v1390_v63 = vsel %vm1250_vm2, %v3691_v62, 0.0 }
 0x6a5   : > { %1391 = vadd.xlane.f32.xlu1 %v1390_v63 }
 0x6b6   : > { %1457 = vrot.lane.b32.xlu1 %v4510_v2, %s4040_s7 }
 0x6b9   : > { %1399 = vrot.lane.b32.xlu0 %v4524_v13, %s4039_s28 }
 0x6ba   : > { %1593 = vrot.lane.b32.xlu1 %v4512_v3, %s4041_s23 }
 0x6bd   : > { %1591 = vrot.lane.b32.xlu0 %v4510_v2, %s4041_s23 }
 0x730   : > { %v1389_v1 = vpop.xlane.xlu0 %1388 }
 0x731   : > { %3692 = vrcp.f32 %v1389_v1 }
 0x732   : > { %v1392_v4 = vpop.xlane.xlu1 %1391 }
 0x733   : > { %3694 = vrcp.f32 %v1392_v4 }
 0x734   : > { %v1400_v6 = vpop.permute.xlu0 %1399 }
 0x735   : > { %3372 = vmatpush3.bf16.msra.mxu1 %v1400_v6 }
 0x736   : > { %v1458_v7 = vpop.permute.xlu1 %1457  ;;  %3377 = vmatprep.subr.bf16.mxu1 %v4037_v5 }
 0x738   : > { %v1592_v15 = vpop.permute.xlu0 %1591 }
 0x73a   : > { %v1594_v8 = vpop.permute.xlu1 %1593 }
 0x73b   : > { %v3693_v9 = vpop.eup %3692  ;;  %v1599_v10 = vsel %vm1200_vm1, %v1594_v8, 0 }
 0x73c   : > { %3390 = vmatpush3.bf16.xpose.msra.mxu0 %v1599_v10  ;;  %v1394_v3 = vmul.f32 %v3693_v9, %v3689_v60 }
 0x73d   : > { %v3695_v11 = vpop.eup %3694  ;;  %3401 = vmatprep.subr.bf16.mxu0 %v4037_v5 }
 0x73e   : > { %v1396_v2 = vmul.f32 %v3695_v11, %v3691_v62 }
 0x740   : > { %v1397_v12 = vpack.c.bf16 %v1396_v2, %v1394_v3  ;;  %v3588_v3 = vld [vmem:[#allocation11] sm:$0xff]   ;;  %v3589_v2 = vld [vmem:[#allocation11 + $0x8] sm:$0xff]  }
 0x742   : > { %3374 = vmatmul.mubr.msk.bf16.vlgmr.msra.gmra.mrb[16].mxu1 %vm1250_vm2, %v1397_v12  ;;  %v3590_v12 = vld [vmem:[#allocation11 + $0x10] sm:$0xff]  }
 0x743   : > { %3378 = vmatpush3.bf16.xpose.msra.mxu1 %v1465_v14  ;;  %3392 = vmatmul.mubr.msk.bf16.vlgmr.msra.gmra.mrb[8].mxu0 %vm1200_vm1, %v1592_v15  ;;  %v3591_v14 = vld [vmem:[#allocation11 + $0x18] sm:$0xff]   ;;  %v3592_v15 = vld [vmem:[#allocation11 + $0x20] sm:$0xff]  }
 0x744   : > { %3379 = vmatprep.mubr.msk.bf16.mxu1 %vm4038_vm0, %v4037_v5  ;;  %3383 = vmatprep.subr.bf16.mxu1 %v4037_v5 }
 0x745   : > { %3417 = vmatprep.mubr.msk.bf16.mxu0 %vm4038_vm0, %v4037_v5  ;;  %3402 = vmatpush3.bf16.msra.mxu0 %v3588_v3 }
 0x746   : > { %3403 = vmatprep.subr.bf16.mxu0 %v4037_v5 }
 0x749   : > { %3404 = vmatpush3.bf16.msra.mxu0 %v3589_v2 }
 0x74a   : > { %3380 = vmatmul.mubr.msk.bf16.vlgmr.msra.gmra.mrb[20].mxu1 %vm1200_vm1, %v1458_v7  ;;  %3405 = vmatprep.subr.bf16.mxu0 %v4037_v5 }
 0x74b   : > { %3385 = vmatprep.mubr.msk.bf16.mxu1 %vm4038_vm0, %v4037_v5 }
 0x74d   : > { %3406 = vmatpush3.bf16.msra.mxu0 %v3590_v12 }
 0x74e   : > { %3407 = vmatprep.subr.bf16.mxu0 %v4037_v5 }
 0x751   : > { %3408 = vmatpush3.bf16.msra.mxu0 %v3591_v14 }
 0x752   : > { %3409 = vmatprep.subr.bf16.mxu0 %v4037_v5 }
 0x755   : > { %3410 = vmatpush3.bf16.msra.mxu0 %v3592_v15 }
 0x756   : > { %3411 = vmatprep.subr.bf16.mxu0 %v4037_v5 }
 0x815   : > { %v1439_v16 = vpop.f32.mrb[16].mxu1 }
 0x816   : > { %v3375_v17 = vpop.f32.mrb[17].mxu1  ;;  %v1635_v18 = vpop.f32.mrb[8].mxu0 }
 0x817   : > { %v1442_v19 = vpop.f32.mrb[18].mxu1  ;;  %v3393_v20 = vpop.f32.mrb[9].mxu0  ;;  %v1642_v31 = vmul.f32 0.17677669, %v1635_v18  ;;  %v3594_v17 = vld [vmem:[#allocation11 + $0x30] sm:$0xff]  }
 0x818   : > { %v3376_v21 = vpop.f32.mrb[19].mxu1  ;;  %v1638_v22 = vpop.f32.mrb[10].mxu0 }
 0x819   : > { %v3394_v23 = vpop.f32.mrb[11].mxu0  ;;  %v1643_v33 = vmul.f32 0.17677669, %v1638_v22  ;;  %v1644_v34 = vsel %vm1250_vm2, %v1642_v31, -inf  ;;  %v3595_v21 = vld [vmem:[#allocation11 + $0x38] sm:$0xff]  }
 0x81b   : > { %v1647_v35 = vsel %vm1250_vm2, %v1643_v33, -inf }
 0x81d   : > { %v1501_v24 = vpop.f32.mrb[20].mxu1 }
 0x81e   : > { %v1508_v25 = vmul.f32 0.17677669, %v1501_v24  ;;  %v3381_v26 = vpop.f32.mrb[21].mxu1 }
 0x81f   : > { %v1504_v27 = vpop.f32.mrb[22].mxu1 }
 0x820   : > { %v1509_v28 = vmul.f32 0.17677669, %v1504_v27  ;;  %v3382_v29 = vpop.f32.mrb[23].mxu1  ;;  %v1510_v30 = vsel %vm1250_vm2, %v1508_v25, -inf }
 0x821   : > { %1511 = vmax.xlane.f32.xlu1 %v1510_v30 }
 0x822   : > { %v1513_v32 = vsel %vm1250_vm2, %v1509_v28, -inf }
 0x823   : > { %1514 = vmax.xlane.f32.xlu0 %v1513_v32 }
 0x827   : > { %1645 = vmax.xlane.f32.xlu0 %v1644_v34  ;;  %v3090_v34 = vld [vmem:[%s4764_s10] ss:$0 sm:$0xff] }
 0x82b   : > { %1648 = vmax.xlane.f32.xlu0 %v1647_v35 }
 0x8ae   : > { %v1512_v36 = vpop.xlane.xlu1 %1511 }
 0x8af   : > { %v1516_v39 = vsub.f32 %v1508_v25, %v1512_v36 }
 0x8b0   : > { %v1515_v37 = vpop.xlane.xlu0 %1514 }
 0x8b1   : > { %v1517_v38 = vsub.f32 %v1509_v28, %v1515_v37  ;;  %v1518_v43 = vmul.f32 1.442695, %v1516_v39  ;;  %v3744_v39 = vld [vmem:[%s4442_s3] sm:$0xff] }
 0x8b3   : > { %v1520_v40 = vmul.f32 1.442695, %v1517_v38 }
 0x8b4   : > { %v1646_v41 = vpop.xlane.xlu0 %1645 }
 0x8b5   : > { %3696 = vpow2.f32 %v1520_v40  ;;  %v1650_v42 = vsub.f32 %v1642_v31, %v1646_v41 }
 0x8b7   : > { %v1652_v44 = vmul.f32 1.442695, %v1650_v42 }
 0x8b8   : > { %v1649_v45 = vpop.xlane.xlu0 %1648 }
 0x8b9   : > { %3698 = vpow2.f32 %v1652_v44  ;;  %v1651_v46 = vsub.f32 %v1643_v33, %v1649_v45 }
 0x8ba   : > { %3700 = vpow2.f32 %v1518_v43  ;;  %v3745_v43 = vld [vmem:[%s4442_s3 + $0x8] sm:$0xff]  ;;  %s4842_s3 = sld [smem:[#allocation34_spill]] }
 0x8bb   : > { %v1654_v47 = vmul.f32 1.442695, %v1651_v46 }
 0x8bd   : > { %3702 = vpow2.f32 %v1654_v47 }
 0x8bf   : > { %v3697_v48 = vpop.eup %3696 }
 0x8c0   : > { %v1525_v49 = vsel %vm1250_vm2, %v3697_v48, 0.0 }
 0x8c1   : > { %1526 = vadd.xlane.f32.xlu0 %v1525_v49 }
 0x8c3   : > { %v3699_v50 = vpop.eup %3698 }
 0x8c4   : > { %v1656_v51 = vsel %vm1250_vm2, %v3699_v50, 0.0  ;;  %v3701_v52 = vpop.eup %3700 }
 0x8c5   : > { %1657 = vadd.xlane.f32.xlu1 %v1656_v51  ;;  %v1522_v54 = vsel %vm1250_vm2, %v3701_v52, 0.0 }
 0x8c7   : > { %v3703_v53 = vpop.eup %3702 }
 0x8c8   : > { %v1659_v55 = vsel %vm1250_vm2, %v3703_v53, 0.0 }
 0x8c9   : > { %1523 = vadd.xlane.f32.xlu1 %v1522_v54  ;;  %1660 = vadd.xlane.f32.xlu0 %v1659_v55 }
 0x8da   : > { %1533 = vrot.lane.b32.xlu1 %v4524_v13, %s4040_s7 }
 0x8de   : > { %1448 = vrot.lane.b32.xlu1 %v1439_v16, %s4041_s23  ;;  %v3593_v16 = vld [vmem:[#allocation11 + $0x28] sm:$0xff]  }
 0x8df   : > { %1667 = vrot.lane.b32.xlu0 %v4524_v13, %s4041_s23  ;;  %3412 = vmatpush3.bf16.msra.mxu0 %v3593_v16 }
 0x8e0   : > { %3413 = vmatprep.subr.bf16.mxu0 %v4037_v5 }
 0x8e2   : > { %1450 = vrot.lane.b32.xlu1 %v1442_v19, %s4041_s23  ;;  %s4841_s23 = sld [smem:[#allocation33_spill]] }
 0x8e3   : > { %3414 = vmatpush3.bf16.msra.mxu0 %v3594_v17 }
 0x8e4   : > { %3415 = vmatprep.subr.bf16.mxu0 %v4037_v5 }
 0x8e7   : > { %3416 = vmatpush3.bf16.msra.mxu0 %v3595_v21 }
 0x94e   : > { %v1527_v56 = vpop.xlane.xlu0 %1526 }
 0x94f   : > { %3704 = vrcp.f32 %v1527_v56 }
 0x952   : > { %v1658_v57 = vpop.xlane.xlu1 %1657 }
 0x956   : > { %v1524_v58 = vpop.xlane.xlu1 %1523  ;;  %v1661_v59 = vpop.xlane.xlu0 %1660 }
 0x957   : > { %3706 = vrcp.f32 %v1524_v58 }
 0x958   : > { %3708 = vrcp.f32 %v1661_v59 }
 0x959   : > { %3710 = vrcp.f32 %v1658_v57  ;;  %v3705_v62 = vpop.eup %3704 }
 0x95a   : > { %v1534_v60 = vpop.permute.xlu1 %1533  ;;  %v1531_v13 = vmul.f32 %v3705_v62, %v3697_v48  ;;  %v1668_v7 = vpop.permute.xlu0 %1667 }
 0x95b   : > { %3384 = vmatpush3.bf16.msra.mxu1 %v1534_v60 }
 0x95c   : > { %3395 = vmatprep.subr.bf16.mxu1 %v4037_v5 }
 0x95e   : > { %v1449_v61 = vpop.permute.xlu1 %1448 }
 0x95f   : > { %1455 = vst.msk [vmem:[#allocation2] sm:$0xff] %vm1454_vm3, %v1449_v61 }
 0x961   : > { %v3707_v63 = vpop.eup %3706 }
 0x962   : > { %v1529_v0 = vmul.f32 %v3707_v63, %v3701_v52  ;;  %v1451_v1 = vpop.permute.xlu1 %1450  ;;  %v3709_v6 = vpop.eup %3708 }
 0x963   : > { %1456 = vst.msk [vmem:[#allocation2 + $0x8] sm:$0xff] %vm1454_vm3, %v1451_v1  ;;  %v3711_v8 = vpop.eup %3710  ;;  %v1665_v9 = vmul.f32 %v3709_v6, %v3703_v53  ;;  %v1882_v53 = vlaneseq  ;;  %v3099_v1 = vld [vmem:[%s4765_s11] ss:$0 sm:$0xff] }
 0x964   : > { %v1532_v4 = vpack.c.bf16 %v1531_v13, %v1529_v0  ;;  %v1663_v10 = vmul.f32 %v3711_v8, %v3699_v50  ;;  %v3100_v8 = vld [vmem:[%s4837_s2] ss:$0 sm:$0xff]  ;;  %s4846_s2 = sld [smem:[#allocation38_spill]] }
 0x965   : > { %v1886_v54 = vand.u32 127, %v1882_v53  ;;  %v4617_v55 = vshrl.u32 %v1882_v53, 7 }
 0x966   : > { %3386 = vmatmul.mubr.msk.bf16.vlgmr.msra.gmra.mrb[24].mxu1 %vm1250_vm2, %v1532_v4  ;;  %v1666_v11 = vpack.c.bf16 %v1665_v9, %v1663_v10 }
 0x967   : > { %3396 = vmatpush3.bf16.msra.mxu1 %v1668_v7  ;;  %3397 = vmatprep.mubr.msk.bf16.mxu1 %vm4038_vm0, %v4037_v5  ;;  %v1887_v56 = vadd.s32 1, %v1886_v54  ;;  %v1884_v10 = vadd.s32 8, %v4617_v55 }
 0x969   : > { %vm1888_vm6 = vcmp.eq.s32.totalorder %v4617_v55, %v1887_v56  ;;  %vm1889_vm7 = vcmp.eq.s32.totalorder %v1884_v10, %v1887_v56  ;;  %v1976_v14 = vadd.s32 1, %v1884_v10 }
 0x96a   : > { %v3101_v57 = vsel %vm1888_vm6, 1.0, %v4037_v5  ;;  %v3102_v15 = vsel %vm1889_vm7, 1.0, %v4037_v5 }
 0x96b   : > { %vm1978_vm9 = vcmp.eq.s32.totalorder %v1976_v14, %v1886_v54 }
 0x96c   : > { %v3106_v17 = vsel %vm1978_vm9, 1.0, %v4037_v5 }
 0x96e   : > { %3398 = vmatmul.mubr.msk.bf16.vlgmr.msra.gmra.mrb[28].mxu1 %vm1250_vm2, %v1666_v11  ;;  %v1975_v11 = vadd.s32 1, %v4617_v55 }
 0x96f   : > { %3425 = vmatprep.mubr.msk.f32.mxu1 %vm1250_vm2, %v3101_v57 }
 0x970   : > { %vm1977_vm8 = vcmp.eq.s32.totalorder %v1975_v11, %v1886_v54  ;;  %v3113_v54 = vld [vmem:[%s4840_s5] ss:$0 sm:$0xff]  ;;  %s4708_s5 = scalar_lea.hbm %s4846_s2, %s3188_s20 }
 0x971   : > { %v3105_v16 = vsel %vm1977_vm8, 1.0, %v4037_v5 }
 0xa39   : > { %v1573_v18 = vpop.f32.mrb[24].mxu1 }
 0xa3a   : > { %1582 = vrot.lane.b32.xlu1 %v1573_v18, %s4040_s7  ;;  %v3387_v19 = vpop.f32.mrb[25].mxu1 }
 0xa3b   : > { %v1576_v20 = vpop.f32.mrb[26].mxu1 }
 0xa3c   : > { %1584 = vrot.lane.b32.xlu0 %v1576_v20, %s4040_s7  ;;  %v3388_v22 = vpop.f32.mrb[27].mxu1  ;;  %s3948_s7 = sshll.u32 %s4043_s26, 4  ;;  %s3949_s7 = int_to_ptr.vmem [resolvable:$false] %s3948_s7 }
 0xa41   : > { %v1707_v23 = vpop.f32.mrb[28].mxu1 }
 0xa42   : > { %1716 = vrot.lane.b32.xlu1 %v1707_v23, %s4039_s28  ;;  %v3399_v24 = vpop.f32.mrb[29].mxu1 }
 0xa43   : > { %v1710_v25 = vpop.f32.mrb[30].mxu1 }
 0xa44   : > { %1718 = vrot.lane.b32.xlu0 %v1710_v25, %s4039_s28  ;;  %v3400_v26 = vpop.f32.mrb[31].mxu1  ;;  %s4838_s28 = sld [smem:[#allocation30_spill]] }
 0xa4a   : > { %v3109_v18 = vld [vmem:[%s4838_s28] ss:$0 sm:$0xff]  ;;  %v3110_v19 = vld [vmem:[%s4838_s28 + $0x1] ss:$0 sm:$0xff]  ;;  %v3111_v5 = vld [vmem:[%s4838_s28 + $0x2] ss:$0 sm:$0xff] }
 0xaac   : > { %v1583_v27 = vpop.permute.xlu1 %1582 }
 0xaad   : > { %1589 = vst.msk [vmem:[#allocation2] sm:$0xff] %vm1588_vm4, %v1583_v27 }
 0xaae   : > { %v1585_v28 = vpop.permute.xlu0 %1584 }
 0xaaf   : > { %1590 = vst.msk [vmem:[#allocation2 + $0x8] sm:$0xff] %vm1588_vm4, %v1585_v28 }
 0xab4   : > { %v1717_v29 = vpop.permute.xlu1 %1716 }
 0xab5   : > { %1723 = vst.msk [vmem:[#allocation2] sm:$0xff] %vm1722_vm5, %v1717_v29 }
 0xab6   : > { %v1719_v30 = vpop.permute.xlu0 %1718 }
 0xab7   : > { %1724 = vst.msk [vmem:[#allocation2 + $0x8] sm:$0xff] %vm1722_vm5, %v1719_v30 }
 0xabc   : > { %v1725_v31 = vld [vmem:[#allocation2] sm:$0xff] }
 0xabe   : > { %v1726_v32 = vld [vmem:[#allocation2 + $0x8] sm:$0xff] }
 0xabf   : > { %v1727_v33 = vpack.c.bf16 %v1726_v32, %v1725_v31  ;;  %v3112_v32 = vld [vmem:[%s4839_s17] ss:$0 sm:$0xff] }
 0xac1   : > { %3418 = vmatmul.mubr.bf16.vlgmr.msra.gmra.mrb[12].mxu0 %v1727_v33 }
 0xb94   : > { %v1833_v35 = vpop.f32.mrb[12].mxu0 }
 0xb95   : > { %v1834_v36 = vadd.f32 %v3090_v34, %v1833_v35  ;;  %v3419_v37 = vpop.f32.mrb[13].mxu0 }
 0xb96   : > { %v1836_v38 = vpop.f32.mrb[14].mxu0 }
 0xb97   : > { %v4608_v40 = vadd.f32 %v3744_v39, %v1834_v36  ;;  %v1837_v41 = vadd.f32 %v3090_v34, %v1836_v38  ;;  %v3420_v42 = vpop.f32.mrb[15].mxu0 }
 0xb99   : > { %v4611_v44 = vadd.f32 %v3745_v43, %v1837_v41  ;;  %1844 = vadd.xlane.f32.xlu1 %v4608_v40 }
 0xb9b   : > { %1846 = vadd.xlane.f32.xlu0 %v4611_v44 }
 0xc26   : > { %v1845_v45 = vpop.xlane.xlu1 %1844 }
 0xc27   : > { %v1848_v46 = vmul.f32 0.0078125, %v1845_v45 }
 0xc28   : > { %v1847_v47 = vpop.xlane.xlu0 %1846 }
 0xc29   : > { %v1850_v48 = vsub.f32 %v4608_v40, %v1848_v46  ;;  %v1849_v49 = vmul.f32 0.0078125, %v1847_v47 }
 0xc2b   : > { %v1851_v50 = vsub.f32 %v4611_v44, %v1849_v49  ;;  %v1852_v51 = vmul.f32 %v1850_v48, %v1850_v48 }
 0xc2d   : > { %1854 = vadd.xlane.f32.xlu0 %v1852_v51  ;;  %v1853_v52 = vmul.f32 %v1851_v50, %v1851_v50 }
 0xc31   : > { %1856 = vadd.xlane.f32.xlu0 %v1853_v52 }
 0xcba   : > { %v1855_v58 = vpop.xlane.xlu0 %1854 }
 0xcbb   : > { %v1858_v59 = vmul.f32 0.0078125, %v1855_v58 }
 0xcbd   : > { %v1860_v60 = vadd.f32 1e-05, %v1858_v59  ;;  %v3114_v59 = vld [vmem:[%s4841_s23] ss:$0 sm:$0xff]  ;;  %s3950_s23 = scalar_lea.vmem %s3949_s7, 512 }
 0xcbe   : > { %v1857_v61 = vpop.xlane.xlu0 %1856 }
 0xcbf   : > { %3712 = vrsqrt.f32 %v1860_v60  ;;  %v1859_v62 = vmul.f32 0.0078125, %v1857_v61 }
 0xcc1   : > { %v1861_v63 = vadd.f32 1e-05, %v1859_v62 }
 0xcc3   : > { %3714 = vrsqrt.f32 %v1861_v63 }
 0xcc9   : > { %v3713_v13 = vpop.eup %3712 }
 0xcca   : > { %v1864_v0 = vmul.f32 %v3713_v13, %v1850_v48 }
 0xccc   : > { %v1872_v7 = vmul.f32 %v3099_v1, %v1864_v0 }
 0xccd   : > { %v3715_v4 = vpop.eup %3714 }
 0xcce   : > { %v1865_v6 = vmul.f32 %v3715_v4, %v1851_v50  ;;  %v4630_v3 = vadd.f32 %v3100_v8, %v1872_v7 }
 0xcd0   : > { %v1873_v9 = vmul.f32 %v3099_v1, %v1865_v6  ;;  %v2076_v25 = vmul.f32 %v3110_v19, %v4630_v3 }
 0xcd2   : > { %v4632_v2 = vadd.f32 %v3100_v8, %v1873_v9 }
 0xcd4   : > { %v3435_v12 = vpack.c.bf16 %v4632_v2, %v4630_v3  ;;  %v2077_v22 = vmul.f32 %v3110_v19, %v4632_v2  ;;  %v2099_v10 = vadd.f32 %v4632_v2, %v4611_v44  ;;  %v3599_v19 = vld [vmem:[#allocation12 + $0x8] ss:$16 sps:$4 sm:$0xff]   ;;  %v3607_v44 = vld [vmem:[#allocation12 + $0x2c] ss:$16 sps:$4 sm:$0xff]   ;;  %v3602_v2 = vld [vmem:[#allocation12 + $0x20] ss:$16 sps:$4 sm:$0xff]  }
 0xcd6   : > { %3436 = vmatprep.subr.bf16.mxu1 %v3435_v12 }
 0xcd7   : > { %3438 = vmatpush3.bf16.msra.mxu1 %v3435_v12 }
 0xcd8   : > { %3440 = vmatprep.subr.bf16.mxu1 %v3435_v12 }
 0xcda   : > { %3426 = vmatmul.mubr.msk.f32.vlgmr.msra.gmra.mrb[32].mxu1 %vm1250_vm2, %v3102_v15 }
 0xcdb   : > { %3442 = vmatpush3.bf16.msra.mxu1 %v3435_v12  ;;  %3432 = vmatprep.mubr.msk.f32.mxu1 %vm1250_vm2, %v3105_v16  ;;  %v2098_v12 = vadd.f32 %v4630_v3, %v4608_v40  ;;  %v3605_v40 = vld [vmem:[#allocation12 + $0x28] ss:$16 sps:$4 sm:$0xff]  }
 0xcde   : > { %3433 = vmatmul.mubr.msk.f32.vlgmr.msra.gmra.mrb[34].mxu1 %vm1250_vm2, %v3106_v17  ;;  %v3596_v17 = vld [vmem:[#allocation12] ss:$16 sps:$4 sm:$0xff]  }
 0xdad   : > { %v3427_v20 = vpop.f32.mrb[32].mxu1 }
 0xdae   : > { %v2070_v21 = vmul.f32 %v3427_v20, %v3109_v18  ;;  %v1966_v23 = vpop.f32.mrb[33].mxu1  ;;  %v3601_v20 = vld [vmem:[#allocation12 + $0xc] ss:$16 sps:$4 sm:$0xff]  }
 0xdaf   : > { %v2069_v24 = vmul.f32 %v3109_v18, %v1966_v23  ;;  %v3598_v18 = vld [vmem:[#allocation12 + $0x4] ss:$16 sps:$4 sm:$0xff]   ;;  %2450 = vmatprep.subr.bf16.mxu0 %v3601_v20  ;;  %v3650_v20 = vld [vmem:[#allocation14 + $0x8] sm:$0xff]  }
 0xdb0   : > { %v2079_v26 = vadd.f32 %v2077_v22, %v2070_v21  ;;  %v3604_v21 = vld [vmem:[#allocation12 + $0x24] ss:$16 sps:$4 sm:$0xff]   ;;  %2407 = vmatprep.subr.bf16.mxu1 %v3598_v18  ;;  %2451 = vmatpush1.bf16.msra.mxu0 %v3599_v19  ;;  %v3648_v18 = vld [vmem:[#allocation14 + $0x48] sm:$0xff]  }
 0xdb1   : > { %v2078_v27 = vadd.f32 %v2076_v25, %v2069_v24  ;;  %v3434_v28 = vpop.f32.mrb[34].mxu1  ;;  %2408 = vmatpush1.bf16.msra.mxu1 %v3596_v17  ;;  %2452 = vmatprep.subr.bf16.mxu0 %v3607_v44  ;;  %v3649_v19 = vld [vmem:[#allocation14 + $0xc8] sm:$0xff]   ;;  %v3652_v44 = vld [vmem:[#allocation14 + $0x50] sm:$0xff]  }
 0xdb2   : > { %v2086_v29 = vmul.f32 %v3434_v28, %v3111_v5  ;;  %v2055_v30 = vpop.f32.mrb[35].mxu1  ;;  %2409 = vmatprep.subr.bf16.mxu1 %v3604_v21  ;;  %v3610_v28 = vld [vmem:[#allocation12 + $0x44] ss:$16 sps:$4 sm:$0xff]   ;;  %v3651_v21 = vld [vmem:[#allocation14 + $0x88] sm:$0xff]  }
 0xdb3   : > { %v2085_v31 = vmul.f32 %v3111_v5, %v2055_v30  ;;  %v3608_v30 = vld [vmem:[#allocation12 + $0x40] ss:$16 sps:$4 sm:$0xff]  }
 0xdb4   : > { %v2088_v33 = vadd.f32 %v2086_v29, %v2079_v26  ;;  %2453 = vmatpush1.bf16.msra.mxu0 %v3605_v40  ;;  %v3613_v29 = vld [vmem:[#allocation12 + $0x4c] ss:$16 sps:$4 sm:$0xff]   ;;  %v3654_v40 = vld [vmem:[#allocation14 + $0x10] sm:$0xff]  }
 0xdb5   : > { %v2087_v34 = vadd.f32 %v2085_v31, %v2078_v27  ;;  %2410 = vmatpush1.bf16.msra.mxu1 %v3602_v2  ;;  %v3611_v31 = vld [vmem:[#allocation12 + $0x48] ss:$16 sps:$4 sm:$0xff]   ;;  %2454 = vmatprep.subr.bf16.mxu0 %v3613_v29  ;;  %v3653_v2 = vld [vmem:[#allocation14 + $0xd0] sm:$0xff]  }
 0xdb6   : > { %v2097_v35 = vadd.f32 %v3112_v32, %v2088_v33  ;;  %2411 = vmatprep.subr.bf16.mxu1 %v3610_v28  ;;  %v3619_v33 = vld [vmem:[#allocation12 + $0x6c] ss:$16 sps:$4 sm:$0xff]   ;;  %v3663_v28 = vld [vmem:[#allocation14 + $0xa0] sm:$0xff]  }
 0xdb7   : > { %v2096_v36 = vadd.f32 %v3112_v32, %v2087_v34  ;;  %v3616_v32 = vld [vmem:[#allocation12 + $0x64] ss:$16 sps:$4 sm:$0xff]   ;;  %v3614_v34 = vld [vmem:[#allocation12 + $0x60] ss:$16 sps:$4 sm:$0xff]   ;;  %v3664_v29 = vld [vmem:[#allocation14 + $0x68] sm:$0xff]  }
 0xdb8   : > { %2104 = vadd.xlane.f32.xlu0 %v2097_v35  ;;  %2455 = vmatpush1.bf16.msra.mxu0 %v3611_v31  ;;  %v3666_v31 = vld [vmem:[#allocation14 + $0x28] sm:$0xff]  }
 0xdb9   : > { %2102 = vadd.xlane.f32.xlu1 %v2096_v36  ;;  %2412 = vmatpush1.bf16.msra.mxu1 %v3608_v30  ;;  %v3665_v30 = vld [vmem:[#allocation14 + $0xe8] sm:$0xff]  }
 0xdba   : > { %2413 = vmatprep.subr.bf16.mxu1 %v3616_v32  ;;  %2456 = vmatprep.subr.bf16.mxu0 %v3619_v33  ;;  %v3667_v32 = vld [vmem:[#allocation14 + $0xa8] sm:$0xff]   ;;  %v3668_v33 = vld [vmem:[#allocation14 + $0x70] sm:$0xff]  }
 0xdbd   : > { %2414 = vmatpush1.bf16.msra.mxu1 %v3614_v34  ;;  %v3669_v34 = vld [vmem:[#allocation14 + $0xf0] sm:$0xff]  }
 0xe45   : > { %v2105_v37 = vpop.xlane.xlu0 %2104 }
 0xe46   : > { %v2107_v38 = vmul.f32 0.0078125, %v2105_v37  ;;  %v2103_v39 = vpop.xlane.xlu1 %2102  ;;  %v3625_v37 = vld [vmem:[#allocation12 + $0x8c] ss:$16 sps:$4 sm:$0xff]  }
 0xe47   : > { %v2106_v41 = vmul.f32 0.0078125, %v2103_v39  ;;  %v3623_v39 = vld [vmem:[#allocation12 + $0x88] ss:$16 sps:$4 sm:$0xff]  }
 0xe48   : > { %v2109_v42 = vsub.f32 %v2097_v35, %v2107_v38  ;;  %v3617_v35 = vld [vmem:[#allocation12 + $0x68] ss:$16 sps:$4 sm:$0xff]   ;;  %v3620_v38 = vld [vmem:[#allocation12 + $0x80] ss:$16 sps:$4 sm:$0xff]  }
 0xe49   : > { %v2108_v43 = vsub.f32 %v2096_v36, %v2106_v41  ;;  %2457 = vmatpush1.bf16.msra.mxu0 %v3617_v35  ;;  %v3622_v36 = vld [vmem:[#allocation12 + $0x84] ss:$16 sps:$4 sm:$0xff]  }
 0xe4a   : > { %v2111_v45 = vmul.f32 %v2109_v42, %v2109_v42  ;;  %2415 = vmatprep.subr.bf16.mxu1 %v3622_v36  ;;  %2458 = vmatprep.subr.bf16.mxu0 %v3625_v37  ;;  %v3628_v41 = vld [vmem:[#allocation12 + $0xa4] ss:$16 sps:$4 sm:$0xff]   ;;  %v3672_v37 = vld [vmem:[#allocation14 + $0x78] sm:$0xff]  }
 0xe4b   : > { %v2110_v46 = vmul.f32 %v2108_v43, %v2108_v43  ;;  %2416 = vmatpush1.bf16.msra.mxu1 %v3620_v38  ;;  %v3670_v35 = vld [vmem:[#allocation14 + $0x30] sm:$0xff]   ;;  %v3673_v38 = vld [vmem:[#allocation14 + $0xf8] sm:$0xff]  }
 0xe4c   : > { %2114 = vadd.xlane.f32.xlu0 %v2111_v45  ;;  %v3629_v45 = vld [vmem:[#allocation12 + $0xa8] ss:$16 sps:$4 sm:$0xff]   ;;  %2417 = vmatprep.subr.bf16.mxu1 %v3628_v41  ;;  %v3671_v36 = vld [vmem:[#allocation14 + $0xb0] sm:$0xff]  }
 0xe4d   : > { %2112 = vadd.xlane.f32.xlu1 %v2110_v46  ;;  %2459 = vmatpush1.bf16.msra.mxu0 %v3623_v39  ;;  %v3634_v46 = vld [vmem:[#allocation12 + $0xc4] ss:$16 sps:$4 sm:$0xff]   ;;  %v3674_v39 = vld [vmem:[#allocation14 + $0x38] sm:$0xff]  }
 0xe4e   : > { %v3675_v41 = vld [vmem:[#allocation14 + $0xb8] sm:$0xff]  }
 0xed9   : > { %v2115_v47 = vpop.xlane.xlu0 %2114 }
 0xeda   : > { %v2117_v48 = vmul.f32 0.0078125, %v2115_v47  ;;  %v2113_v49 = vpop.xlane.xlu1 %2112  ;;  %v3637_v47 = vld [vmem:[#allocation12 + $0xcc] ss:$16 sps:$4 sm:$0xff]  }
 0xedb   : > { %v2116_v50 = vmul.f32 0.0078125, %v2113_v49  ;;  %v3635_v49 = vld [vmem:[#allocation12 + $0xc8] ss:$16 sps:$4 sm:$0xff]  }
 0xedc   : > { %v2119_v51 = vadd.f32 1e-05, %v2117_v48  ;;  %v3632_v48 = vld [vmem:[#allocation12 + $0xc0] ss:$16 sps:$4 sm:$0xff]  }
 0xedd   : > { %v2118_v52 = vadd.f32 1e-05, %v2116_v50  ;;  %v3640_v50 = vld [vmem:[#allocation12 + $0xe4] ss:$16 sps:$4 sm:$0xff]  }
 0xede   : > { %3716 = vrsqrt.f32 %v2119_v51  ;;  %v3643_v51 = vld [vmem:[#allocation12 + $0xec] ss:$16 sps:$4 sm:$0xff]  }
 0xedf   : > { %3718 = vrsqrt.f32 %v2118_v52  ;;  %v3638_v52 = vld [vmem:[#allocation12 + $0xe0] ss:$16 sps:$4 sm:$0xff]  }
 0xee8   : > { %v3717_v53 = vpop.eup %3716 }
 0xee9   : > { %v3719_v56 = vpop.eup %3718  ;;  %v2123_v57 = vmul.f32 %v3717_v53, %v2109_v42  ;;  %v3631_v42 = vld [vmem:[#allocation12 + $0xac] ss:$16 sps:$4 sm:$0xff]   ;;  %v3641_v53 = vld [vmem:[#allocation12 + $0xe8] ss:$16 sps:$4 sm:$0xff]  }
 0xeea   : > { %v2122_v58 = vmul.f32 %v3719_v56, %v2108_v43  ;;  %v3626_v43 = vld [vmem:[#allocation12 + $0xa0] ss:$16 sps:$4 sm:$0xff]   ;;  %2460 = vmatprep.subr.bf16.mxu0 %v3631_v42  ;;  %v2229_v42 = vsub.s32 0, %v4617_v55 }
 0xeeb   : > { %v2131_v60 = vmul.f32 %v3113_v54, %v2123_v57  ;;  %2418 = vmatpush1.bf16.msra.mxu1 %v3626_v43  ;;  %2461 = vmatpush1.bf16.msra.mxu0 %v3629_v45  ;;  %v3644_v56 = vld [vmem:[#allocation14 + $0x40] sm:$0xff]   ;;  %v2237_v43 = vsub.s32 2, %v4617_v55  ;;  %v2225_v45 = vld [vmem:[%s4844_s0] sm:$0xf] }
 0xeec   : > { %v2130_v61 = vmul.f32 %v3113_v54, %v2122_v58  ;;  %2419 = vmatprep.subr.bf16.mxu1 %v3634_v46  ;;  %2462 = vmatprep.subr.bf16.mxu0 %v3637_v47  ;;  %v4042_v54 = vmov 0   ;;  %v3645_v57 = vld [vmem:[#allocation14 + $0xc0] sm:$0xff]   ;;  %v2233_v46 = vsub.s32 1, %v4617_v55  ;;  %v2241_v47 = vsub.s32 3, %v4617_v55 }
 0xeed   : > { %v2139_v62 = vadd.f32 %v3114_v59, %v2131_v60  ;;  %2439 = vmatprep.mubr.bf16.mxu1 %v4042_v54  ;;  %2482 = vmatprep.mubr.bf16.mxu0 %v4042_v54 }
 0xeee   : > { %v2138_v63 = vadd.f32 %v3114_v59, %v2130_v61 }
 0xeef   : > { %v2143_v13 = vmul.f32 0.70710677, %v2139_v62  ;;  %v2141_v6 = vmul.f32 0.5, %v2139_v62  ;;  %2420 = vmatpush1.bf16.msra.mxu1 %v3632_v48  ;;  %2463 = vmatpush1.bf16.msra.mxu0 %v3635_v49  ;;  %v2230_v48 = vrot.slane %v2225_v45, %v2229_v42  ;;  %v2238_v49 = vrot.slane %v2225_v45, %v2237_v43 }
 0xef0   : > { %v2142_v0 = vmul.f32 0.70710677, %v2138_v63  ;;  %v2140_v8 = vmul.f32 0.5, %v2138_v63  ;;  %2421 = vmatprep.subr.bf16.mxu1 %v3640_v50  ;;  %2464 = vmatprep.subr.bf16.mxu0 %v3643_v51  ;;  %v2234_v50 = vrot.slane %v2225_v45, %v2233_v46  ;;  %v2242_v51 = vrot.slane %v2225_v45, %v2241_v47 }
 0xef1   : > { %3720 = verf.f32 %v2143_v13 }
 0xef2   : > { %3722 = verf.f32 %v2142_v0  ;;  %v3115_v0 = vld [vmem:[%s4842_s3] ss:$0 sm:$0xff]  ;;  %s2902_s3 = sshll.u32 %s815_s13, 4  ;;  %s4710_s3 = int_to_ptr.vmem [resolvable:$true] %s2902_s3 }
 0xef3   : > { %2422 = vmatpush1.bf16.msra.mxu1 %v3638_v52  ;;  %2465 = vmatpush1.bf16.msra.mxu0 %v3641_v53  ;;  %s3944_s0 = scalar_lea.vmem %s4710_s3, 256  ;;  %p3951_p13 = scmp.lt.s32.totalorder %s4710_s3, %s3949_s7 }
 0xef4   : > { %3249 = vmatprep.subr.bf16.mxu1 %v3644_v56  ;;  %3271 = vmatprep.subr.bf16.mxu0 %v3645_v57  ;;  %p3945_p6 = scmp.ne.s32.totalorder %s4710_s3, %s3944_s0  ;;  %p3952_p0 = scmp.lt.s32.totalorder %s3950_s23, %s3944_s0 }
 0xef6   : > { %p3946_p12 = pnand %p3945_p6, %p4847_p9  ;;  %p3953_p2 = por %p3952_p0, %p3951_p13 }
 0xef8   : > { %p3947_p1 = pneg %p3946_p12 }
 0xefa   : > { %p3954_p8 = pnand %p3953_p2, %p3947_p1 }
 0xefb   : > { %v3721_v1 = vpop.eup %3720 }
 0xefc   : > { %v3723_v4 = vpop.eup %3722  ;;  %v2147_v7 = vadd.f32 1.0, %v3721_v1 }
 0xefd   : > { %v2146_v9 = vadd.f32 1.0, %v3723_v4 }
 0xefe   : > { %v2149_v11 = vmul.f32 %v2147_v7, %v2141_v6  ;;  %v3116_v7 = vld [vmem:[%s4843_s18] ss:$0 sm:$0xff] }
 0xeff   : > { %v2148_v14 = vmul.f32 %v2146_v9, %v2140_v8 }
 0xf00   : > { %v4666_v15 = vadd.f32 %v2149_v11, %v2099_v10 }
 0xf01   : > { %v4668_v16 = vadd.f32 %v2148_v14, %v2098_v12  ;;  %v3646_v12 = vld [vmem:[#allocation14] sm:$0xff]  }
 0xf02   : > { %2156 = vadd.xlane.f32.xlu0 %v4666_v15  ;;  %v3647_v14 = vld [vmem:[#allocation14 + $0x80] sm:$0xff]  }
 0xf03   : > { %2154 = vadd.xlane.f32.xlu1 %v4668_v16 }
 0xf8f   : > { %v2157_v3 = vpop.xlane.xlu0 %2156 }
 0xf90   : > { %v2159_v22 = vmul.f32 0.0078125, %v2157_v3  ;;  %v2155_v23 = vpop.xlane.xlu1 %2154  ;;  %v3655_v3 = vld [vmem:[#allocation14 + $0x90] sm:$0xff]  }
 0xf91   : > { %v2158_v24 = vmul.f32 0.0078125, %v2155_v23  ;;  %v3657_v23 = vld [vmem:[#allocation14 + $0xd8] sm:$0xff]  }
 0xf92   : > { %v4673_v25 = vsub.f32 %v4666_v15, %v2159_v22  ;;  %v3656_v22 = vld [vmem:[#allocation14 + $0x58] sm:$0xff]  }
 0xf93   : > { %v4676_v5 = vsub.f32 %v4668_v16, %v2158_v24  ;;  %v3658_v24 = vld [vmem:[#allocation14 + $0x18] sm:$0xff]  }
 0xf94   : > { %v2163_v26 = vmul.f32 %v4673_v25, %v4673_v25 }
 0xf95   : > { %v2162_v27 = vmul.f32 %v4676_v5, %v4676_v5 }
 0xf96   : > { %2166 = vadd.xlane.f32.xlu0 %v2163_v26  ;;  %v3661_v26 = vld [vmem:[#allocation14 + $0xe0] sm:$0xff]  }
 0xf97   : > { %2164 = vadd.xlane.f32.xlu1 %v2162_v27  ;;  %v3662_v27 = vld [vmem:[#allocation14 + $0x20] sm:$0xff]  }
0x1023   : > { %v2167_v58 = vpop.xlane.xlu0 %2166 }
0x1024   : > { %v2169_v59 = vmul.f32 0.0078125, %v2167_v58  ;;  %v2165_v60 = vpop.xlane.xlu1 %2164 }
0x1025   : > { %v2168_v61 = vmul.f32 0.0078125, %v2165_v60 }
0x1026   : > { %v2171_v62 = vadd.f32 1e-05, %v2169_v59 }
0x1027   : > { %v2170_v63 = vadd.f32 1e-05, %v2168_v61 }
0x1028   : > { %3724 = vrsqrt.f32 %v2171_v62 }
0x1029   : > { %3726 = vrsqrt.f32 %v2170_v63 }
0x1032   : > { %v3725_v13 = vpop.eup %3724 }
0x1033   : > { %v3727_v1 = vpop.eup %3726  ;;  %v2175_v4 = vmul.f32 %v3725_v13, %v4673_v25  ;;  %v3659_v25 = vld [vmem:[#allocation14 + $0x98] sm:$0xff]  }
0x1034   : > { %v2174_v6 = vmul.f32 %v3727_v1, %v4676_v5  ;;  %v3660_v5 = vld [vmem:[#allocation14 + $0x60] sm:$0xff]  }
0x1035   : > { %v2183_v8 = vmul.f32 %v3115_v0, %v2175_v4 }
0x1036   : > { %v2182_v9 = vmul.f32 %v3115_v0, %v2174_v6 }
0x1037   : > { %v2191_v10 = vadd.f32 %v3116_v7, %v2183_v8 }
0x1038   : > { %v2190_v11 = vadd.f32 %v3116_v7, %v2182_v9 }
0x103a   : > { %v2192_v17 = vpack.c.bf16 %v2191_v10, %v2190_v11 }
0x103c   : > { %2440 = vmatmul.mubr.bf16.vlgmr.msra.gmra.mrb[36].mxu1 %v2192_v17  ;;  %2483 = vmatmul.mubr.bf16.vlgmr.msra.gmra.mrb[16].mxu0 %v2192_v17 }
0x103d   : > { %3250 = vmatpush3.bf16.msra.mxu1 %v3646_v12  ;;  %3272 = vmatpush3.bf16.msra.mxu0 %v3647_v14 }
0x103e   : > { %3251 = vmatprep.subr.bf16.mxu1 %v3648_v18  ;;  %3273 = vmatprep.subr.bf16.mxu0 %v3649_v19 }
0x1041   : > { %3252 = vmatpush3.bf16.msra.mxu1 %v3650_v20  ;;  %3274 = vmatpush3.bf16.msra.mxu0 %v3651_v21 }
0x1042   : > { %3253 = vmatprep.subr.bf16.mxu1 %v3652_v44  ;;  %3275 = vmatprep.subr.bf16.mxu0 %v3653_v2 }
0x1045   : > { %3254 = vmatpush3.bf16.msra.mxu1 %v3654_v40  ;;  %3276 = vmatpush3.bf16.msra.mxu0 %v3655_v3 }
0x1046   : > { %3255 = vmatprep.subr.bf16.mxu1 %v3656_v22  ;;  %3277 = vmatprep.subr.bf16.mxu0 %v3657_v23 }
0x1049   : > { %3256 = vmatpush3.bf16.msra.mxu1 %v3658_v24  ;;  %3278 = vmatpush3.bf16.msra.mxu0 %v3659_v25 }
0x104a   : > { %3257 = vmatprep.subr.bf16.mxu1 %v3660_v5  ;;  %3279 = vmatprep.subr.bf16.mxu0 %v3661_v26 }
0x104d   : > { %3258 = vmatpush3.bf16.msra.mxu1 %v3662_v27  ;;  %3280 = vmatpush3.bf16.msra.mxu0 %v3663_v28 }
0x104e   : > { %3259 = vmatprep.subr.bf16.mxu1 %v3664_v29  ;;  %3281 = vmatprep.subr.bf16.mxu0 %v3665_v30 }
0x1051   : > { %3260 = vmatpush3.bf16.msra.mxu1 %v3666_v31  ;;  %3282 = vmatpush3.bf16.msra.mxu0 %v3667_v32 }
0x1052   : > { %3261 = vmatprep.subr.bf16.mxu1 %v3668_v33  ;;  %3283 = vmatprep.subr.bf16.mxu0 %v3669_v34 }
0x1055   : > { %3262 = vmatpush3.bf16.msra.mxu1 %v3670_v35  ;;  %3284 = vmatpush3.bf16.msra.mxu0 %v3671_v36 }
0x1056   : > { %3263 = vmatprep.subr.bf16.mxu1 %v3672_v37  ;;  %3285 = vmatprep.subr.bf16.mxu0 %v3673_v38 }
0x1059   : > { %3264 = vmatpush3.bf16.msra.mxu1 %v3674_v39  ;;  %3286 = vmatpush3.bf16.msra.mxu0 %v3675_v41 }
0x110f   : > { %v2441_v52 = vpop.f32.mrb[36].mxu1  ;;  %v2484_v53 = vpop.f32.mrb[16].mxu0 }
0x1110   : > { %v2442_v54 = vadd.f32 %v2441_v52, %v2230_v48  ;;  %v2485_v56 = vadd.f32 %v2484_v53, %v2238_v49  ;;  %v2443_v57 = vpop.f32.mrb[37].mxu1  ;;  %v2486_v58 = vpop.f32.mrb[17].mxu0 }
0x1111   : > { %v2444_v59 = vadd.f32 %v2443_v57, %v2234_v50  ;;  %v2487_v60 = vadd.f32 %v2486_v58, %v2242_v51  ;;  %v2445_v61 = vpop.f32.mrb[38].mxu1  ;;  %v2488_v62 = vpop.f32.mrb[18].mxu0 }
0x1112   : > { %v2501_v63 = vmul.f32 0.70710677, %v2442_v54  ;;  %v2503_v13 = vmul.f32 0.70710677, %v2485_v56  ;;  %v2446_v55 = vadd.f32 %v2445_v61, %v2230_v48  ;;  %v2489_v4 = vadd.f32 %v2488_v62, %v2238_v49  ;;  %v2447_v6 = vpop.f32.mrb[39].mxu1  ;;  %v2490_v7 = vpop.f32.mrb[19].mxu0 }
0x1113   : > { %v2502_v0 = vmul.f32 0.70710677, %v2444_v59  ;;  %v2504_v1 = vmul.f32 0.70710677, %v2487_v60  ;;  %v2448_v8 = vadd.f32 %v2447_v6, %v2234_v50  ;;  %v2491_v9 = vadd.f32 %v2490_v7, %v2242_v51 }
0x1114   : > { %3728 = verf.f32 %v2501_v63  ;;  %v2505_v10 = vmul.f32 0.70710677, %v2446_v55  ;;  %v2507_v11 = vmul.f32 0.70710677, %v2489_v4  ;;  %v2493_v2 = vmul.f32 0.5, %v2442_v54 }
0x1115   : > { %3730 = verf.f32 %v2503_v13  ;;  %v2506_v12 = vmul.f32 0.70710677, %v2448_v8  ;;  %v2508_v14 = vmul.f32 0.70710677, %v2491_v9  ;;  %v2495_v40 = vmul.f32 0.5, %v2485_v56 }
0x1116   : > { %3732 = verf.f32 %v2502_v0  ;;  %v2494_v23 = vmul.f32 0.5, %v2444_v59  ;;  %v2497_v25 = vmul.f32 0.5, %v2446_v55  ;;  %v2496_v27 = vmul.f32 0.5, %v2487_v60  ;;  %v3181_v13 = vld [vmem:[%s4845_s1] ss:$0 sm:$0xff] }
0x1117   : > { %3734 = verf.f32 %v2504_v1  ;;  %v2499_v29 = vmul.f32 0.5, %v2489_v4  ;;  %v2498_v34 = vmul.f32 0.5, %v2448_v8  ;;  %v2500_v38 = vmul.f32 0.5, %v2491_v9 }
0x1118   : > { %3736 = verf.f32 %v2505_v10 }
0x1119   : > { %3738 = verf.f32 %v2507_v11 }
0x111a   : > { %3740 = verf.f32 %v2506_v12 }
0x111b   : > { %3742 = verf.f32 %v2508_v14 }
0x111e   : > { %v3729_v17 = vpop.eup %3728 }
0x111f   : > { %v3731_v18 = vpop.eup %3730  ;;  %v2517_v21 = vadd.f32 1.0, %v3729_v17 }
0x1120   : > { %v3733_v19 = vpop.eup %3732  ;;  %v2519_v3 = vadd.f32 1.0, %v3731_v18 }
0x1121   : > { %v3735_v20 = vpop.eup %3734  ;;  %v2518_v24 = vadd.f32 1.0, %v3733_v19  ;;  %v2525_v32 = vmul.f32 %v2517_v21, %v2493_v2 }
0x1122   : > { %v3737_v44 = vpop.eup %3736  ;;  %v2520_v28 = vadd.f32 1.0, %v3735_v20  ;;  %v2527_v36 = vmul.f32 %v2519_v3, %v2495_v40 }
0x1123   : > { %v3739_v22 = vpop.eup %3738  ;;  %v2521_v5 = vadd.f32 1.0, %v3737_v44  ;;  %v2526_v41 = vmul.f32 %v2518_v24, %v2494_v23 }
0x1124   : > { %v3741_v26 = vpop.eup %3740  ;;  %v2523_v30 = vadd.f32 1.0, %v3739_v22  ;;  %v2528_v45 = vmul.f32 %v2520_v28, %v2496_v27 }
0x1125   : > { %v3743_v31 = vpop.eup %3742  ;;  %v2529_v33 = vmul.f32 %v2521_v5, %v2497_v25  ;;  %v2522_v35 = vadd.f32 1.0, %v3741_v26 }
0x1126   : > { %v2531_v37 = vmul.f32 %v2523_v30, %v2499_v29  ;;  %v2524_v39 = vadd.f32 1.0, %v3743_v31 }
0x1127   : > { %v2533_v42 = vpack.c.bf16 %v2529_v33, %v2525_v32  ;;  %v2530_v43 = vmul.f32 %v2522_v35, %v2498_v34 }
0x1128   : > { %v2535_v46 = vpack.c.bf16 %v2531_v37, %v2527_v36  ;;  %v2532_v47 = vmul.f32 %v2524_v39, %v2500_v38 }
0x1129   : > { %v2534_v48 = vpack.c.bf16 %v2530_v43, %v2526_v41 }
0x112a   : > { %v2536_v49 = vpack.c.bf16 %v2532_v47, %v2528_v45 }
0x112b   : > { %2825 = vmatprep.mubr.bf16.mxu1 %v2534_v48 }
0x112c   : > { %2866 = vmatprep.mubr.bf16.mxu0 %v2536_v49  ;;  %2826 = vmatmul.mubr.bf16.vlgmr.msra.gmra.mrb[40].mxu1 %v2533_v42 }
0x112d   : > { %2867 = vmatmul.mubr.bf16.vlgmr.msra.gmra.mrb[20].mxu0 %v2535_v46 }
0x11ff   : > { %v3265_v50 = vpop.f32.mrb[40].mxu1 }
0x1200   : > { %v3287_v51 = vpop.f32.mrb[20].mxu0  ;;  %v3266_v52 = vpop.f32.mrb[41].mxu1 }
0x1201   : > { %v3267_v53 = vadd.f32 %v3266_v52, %v3265_v50  ;;  %v3288_v54 = vpop.f32.mrb[21].mxu0  ;;  %v3268_v56 = vpop.f32.mrb[42].mxu1 }
0x1202   : > { %v3289_v57 = vadd.f32 %v3288_v54, %v3287_v51  ;;  %v3290_v58 = vpop.f32.mrb[22].mxu0  ;;  %v3269_v59 = vpop.f32.mrb[43].mxu1 }
0x1203   : > { %v3270_v60 = vadd.f32 %v3269_v59, %v3268_v56  ;;  %v3291_v61 = vpop.f32.mrb[23].mxu0 }
0x1204   : > { %v2869_v62 = vadd.f32 %v3289_v57, %v3267_v53  ;;  %v3292_v63 = vadd.f32 %v3291_v61, %v3290_v58 }
0x1206   : > { %v2875_v0 = vadd.f32 %v2869_v62, %v4668_v16  ;;  %v2872_v1 = vadd.f32 %v3292_v63, %v3270_v60 }
0x1208   : > { %v2884_v55 = vadd.f32 %v3181_v13, %v2875_v0  ;;  %v2876_v4 = vadd.f32 %v2872_v1, %v4666_v15 }
0x120a   : > { %2886 = vst [vmem:[%s815_s13] sm:$0xff] %v2884_v55  ;;  %v2885_v16 = vadd.f32 %v3181_v13, %v2876_v4 }
0x120c   : > { %2887 = vst [vmem:[%s815_s13 + $0x8] sm:$0xff] %v2885_v16 }
0x120d   : > { %3957 = shalt.err (!%p3954_p8)
}
0x120e   : > { %s3958_s1 = scalar_lea.hbm %s4708_s5, 256  ;;  %s3962_s17 = scalar_lea.hbm %s4846_s2, 512 }
0x120f   : > { %p3959_p4 = scmp.ne.s32.totalorder %s4708_s5, %s3958_s1  ;;  %p3963_p3 = scmp.lt.u32.totalorder %s4708_s5, %s4846_s2 }
0x1210   : > { %p3964_p5 = scmp.lt.u32.totalorder %s3962_s17, %s3958_s1  ;;  %p3966_p6 = scmp.lt.u32.totalorder %s3958_s1, %s4708_s5 }
0x1211   : > { %p3960_p10 = pnand %p3959_p4, %p4847_p9 }
0x1212   : > { %p3965_p7 = por %p3964_p5, %p3963_p3 }
0x1213   : > { %p3961_p11 = pneg %p3960_p10 }
0x1214   : > { %p3967_p12 = por %p3966_p6, %p3965_p7 }
0x1216   : > { %p3968_p1 = pnand %p3967_p12, %p3961_p11 }
0x1218   : > { %3971 = shalt.err (!%p3968_p1)
}
0x1219   : > { %s4044_s0 = smov 128   ;;  %s4045_s7 = smov 8  }
0x121a   : > { %3469 = dma.vmem_to_hbm [thread:$0]  (%p4847_p9), %s4710_s3, 256, %s4708_s5, %s2889_s15, %s4044_s0, %s4044_s0, %s4045_s7  }
0x121b PF: > { %s2917_s23 = sand.u32 1, %s4010_s4   ;;  %p4848_p13 = scmp.ne.s32.totalorder %s4823_s22, 0 }
0x121c   : > { %p4849_p0 = scmp.ge.s32.totalorder %s4022_s25, 2  ;;  %s2918_s1 = scalar_lea.sflag [#allocation5], %s2917_s23 }
0x121e   : > { %p3495_p2 = pnand %p4849_p0, %p4848_p13 }
0x1220   : > { %4005 = dma.done.wait (!%p3495_p2), %s2918_s1, 256  }
0x1221   : > { %4007 = vsyncadd (!%p3495_p2), %s2918_s1, 4294967040  ;;  %p39_p8 = scmp.ge.s32.totalorder %s4357_s6, 4   ;;  %s4850_s4 = smov %s4014_s30 }
0x1222   : > { %s4851_s30 = smov %s4018_s24  ;;  %s4852_s24 = smov %s4368_s29 }
0x1223   : > { %s4853_s25 = smov %s4357_s6  ;;  %41 = sbr.rel (!%p39_p8) target bundleno = 27 (0x1b), region = 181 }
0x122a   :  { %2923 = vsyncpa [#allocation4], 1 }
0x122b   :  { %2925 = vsyncpa [#allocation4 + $0x1], 1 }
0x122c   :  { %2926 = vsyncpa [#allocation7], 1 }
0x122d   :  { %2927 = vsyncpa [#allocation10], 1 }
0x122e   :  { %2928 = vsyncpa [#allocation13], 1 }
0x122f   :  { %2929 = vsyncpa [#allocation5], 1 }
0x1230   :  { %2931 = vsyncpa [#allocation5 + $0x1], 1 }

</bundles_post_ra>
